<compile_context>
chip_gen: v7x
topology: tpu7x:2x2x1
jax: 0.10.0
libtpu: 0.0.40
codegen_flags: <defaults>
</compile_context>

<pallas_src>
import functools

import jax
import jax.numpy as jnp
from jax.experimental import pallas as pl
from jax.experimental.pallas import tpu as pltpu

_SQRT1_2 = 0.7071067811865476
_RP = 8           # halo interior row origin: keeps interior stores (8, ...)-sublane aligned


def _gelu_exact(x):
    """Exact (erf-based) GELU.  erf via Abramowitz-Stegun 7.1.26 (|err| ~1.5e-7); the divide
    is an EUP reciprocal estimate + one Newton step; sign handling folded away."""
    z = jnp.abs(x) * _SQRT1_2
    d = 1.0 + 0.3275911 * z
    r = pl.reciprocal(d, approx=True)          # EUP slot
    r = r * (2.0 - d * r)                      # one Newton step -> ~f32 accurate 1/d
    poly = ((((1.061405429 * r - 1.453152027) * r + 1.421413741) * r
             - 0.284496736) * r + 0.254829592) * r
    erf_abs = 1.0 - poly * jnp.exp(-z * z)     # erf(|x|/sqrt2) >= 0
    # x*erf(x/sqrt2) == |x|*erf(|x|/sqrt2)  ->  no select / sign op needed.
    return 0.5 * (x + jnp.abs(x) * erf_abs)


def _fused_block_kernel(C, H, W, Wp, shift_size,
                        x_ref,
                        conv_w_ref, conv_b_ref,
                        ln_g_ref, ln_b_ref,
                        fc1_w_ref, fc1_b_ref,
                        dw_w_ref, dw_b_ref,
                        fc2_w_ref, fc2_b_ref,
                        o_ref,
                        halo_ref, res_ref):
    """One batch sample: conv3x3 -> shifted-MLP block -> InstanceNorm2d, all inside VMEM."""
    pad = shift_size // 2                       # 2 for shift_size=5 (>= the conv pad of 1)
    chunk = -(-C // shift_size)                 # torch.chunk chunk size (ceil)
    shift_list = list(range(-pad, pad + 1))
    ch_shift = [shift_list[c // chunk] for c in range(C)]

    # ---------------- ring-only zeroing (every grid step: "parallel"-safe) ----------------
    # Only halo cells that are actually read need to be zero:
    #   * pad rows above/below the interior (full width)  -> conv ky taps + H-shift padding
    #   * columns [W, Wp) of the interior rows            -> right padding of the lane taps
    #     AND (via pltpu.roll's circular wrap) the LEFT padding.
    zrows = jnp.zeros((pad, Wp), jnp.float32)
    zcols = jnp.zeros((H, Wp - W), jnp.float32)
    for bank in range(2):
        for c in range(C):
            halo_ref[bank, c, _RP - pad:_RP, :] = zrows
            halo_ref[bank, c, _RP + H:_RP + H + pad, :] = zrows
            halo_ref[bank, c, _RP:_RP + H, W:Wp] = zcols

    def stash(bank, c, plane):                  # write an (H, W) plane into the interior
        halo_ref[bank, c, _RP:_RP + H, 0:W] = plane

    def row_slab(bank, c, dy):                  # aligned full-width row window, offset dy rows
        return halo_ref[bank, c, _RP + dy:_RP + dy + H, :]

    def lane_tap(slab, dx):                     # slab[:, j + dx] with zero fill at both edges
        if dx == 0:
            return slab[:, 0:W]
        return pltpu.roll(slab, shift=(-dx) % Wp, axis=1)[:, 0:W]

    # -------------- conv2D_1: Conv2d(C, C, kernel 3, stride 1, padding 1) ------------------
    for c in range(C):
        stash(0, c, x_ref[0, c].astype(jnp.float32))
    for co in range(C):                         # co outermost: one live accumulator plane
        acc = None
        for ci in range(C):
            for ky in range(3):
                slab = row_slab(0, ci, ky - 1)
                for kx in range(3):
                    w = conv_w_ref[((co * C + ci) * 3 + ky) * 3 + kx]
                    t = lane_tap(slab, kx - 1) * w
                    acc = t if acc is None else acc + t
        # tokens (pre-LN) -> staged in scratch, reused for the residual at the very end.
        res_ref[co, :, 0:W] = acc + conv_b_ref[co]

    # -------------- norm2: LayerNorm over channels (per spatial position) ------------------
    inv_c = 1.0 / C
    mean = res_ref[0, :, 0:W]
    for c in range(1, C):
        mean = mean + res_ref[c, :, 0:W]
    mean = mean * inv_c
    var = None
    for c in range(C):
        d = res_ref[c, :, 0:W] - mean
        var = d * d if var is None else var + d * d
    inv_std = jax.lax.rsqrt(var * inv_c + 1e-5)
    for c in range(C):                          # LN result -> halo bank 1
        stash(1, c, (res_ref[c, :, 0:W] - mean) * inv_std * ln_g_ref[c] + ln_b_ref[c])

    # -------------- shiftmlp: shift rows (H) per channel chunk, then fc1 -------------------
    for co in range(C):                         # hidden == C (mlp_ratio = 1)
        a = None
        for ci in range(C):
            s = ch_shift[ci]
            t = halo_ref[1, ci, _RP - s:_RP - s + H, 0:W] * fc1_w_ref[co * C + ci]
            a = t if a is None else a + t
        stash(0, co, a + fc1_b_ref[co])         # h -> halo bank 0 (x is dead)

    # -------------- DWConv 3x3 (groups=C, zero pad 1) + exact GELU -------------------------
    for c in range(C):
        a = None
        for ky in range(3):
            slab = row_slab(0, c, ky - 1)
            for kx in range(3):
                t = lane_tap(slab, kx - 1) * dw_w_ref[c * 9 + ky * 3 + kx]
                a = t if a is None else a + t
        stash(1, c, _gelu_exact(a + dw_b_ref[c]))   # act -> halo bank 1 (ln is dead)

    # ------ shift columns (W) per channel chunk, fc2, residual, InstanceNorm2d -------------
    inv_n = 1.0 / (H * W)
    for co in range(C):
        mlp = None
        for ci in range(C):
            t = lane_tap(row_slab(1, ci, 0), -ch_shift[ci]) * fc2_w_ref[co * C + ci]
            mlp = t if mlp is None else mlp + t
        y = res_ref[co, :, 0:W] + mlp + fc2_b_ref[co]      # tokens + shiftmlp(LN(tokens))
        # single-pass statistics: var = E[y^2] - mean^2 (values are O(1) post-residual)
        s1 = jnp.sum(jnp.sum(y, axis=1, keepdims=True), axis=0, keepdims=True)
        s2 = jnp.sum(jnp.sum(y * y, axis=1, keepdims=True), axis=0, keepdims=True)
        m = s1 * inv_n
        v = s2 * inv_n - m * m
        o_ref[0, co] = ((y - m) * jax.lax.rsqrt(v + 1e-5)).astype(o_ref.dtype)


def tokenized_mlp_block_l_forward(params, x, *, shift_size=5):
    """Forward pass of Tokenized_MLP_Block_L.  x: (B, C, H, W) float, returns (B, C, H, W)."""
    x = x.astype(jnp.float32)
    B, C, H, W = x.shape
    pad = shift_size // 2
    assert pad <= _RP
    # Halo trailing dim: multiple of 128 so all slab loads / interior stores are lane-aligned;
    # the (Wp - W) >= pad rightmost columns hold the zero padding (left padding comes from the
    # circular wrap of pltpu.roll reading those same zeros).
    Wp = ((W + pad + 127) // 128) * 128

    def flat(a):
        return jnp.asarray(a, jnp.float32).reshape(-1)

    smem = pl.BlockSpec(memory_space=pltpu.MemorySpace.SMEM)
    kernel = functools.partial(_fused_block_kernel, C, H, W, Wp, shift_size)
    return pl.pallas_call(
        kernel,
        out_shape=jax.ShapeDtypeStruct((B, C, H, W), jnp.float32),
        grid=(B,),
        in_specs=[pl.BlockSpec((1, C, H, W), lambda b: (b, 0, 0, 0))] + [smem] * 10,
        out_specs=pl.BlockSpec((1, C, H, W), lambda b: (b, 0, 0, 0)),
        scratch_shapes=[
            pltpu.VMEM((2, C, _RP + H + pad, Wp), jnp.float32),   # ping-pong halo banks
            pltpu.VMEM((C, H, Wp), jnp.float32),                  # conv_out (token residual)
        ],
        compiler_params=pltpu.CompilerParams(
            dimension_semantics=("parallel",),
            vmem_limit_bytes=32 * 1024 * 1024),
    )(x,
      flat(params["conv_w"]), flat(params["conv_b"]),
      flat(params["ln_g"]), flat(params["ln_b"]),
      flat(params["fc1_w"]), flat(params["fc1_b"]),
      flat(params["dw_w"]), flat(params["dw_b"]),
      flat(params["fc2_w"]), flat(params["fc2_b"]))


# --------------------------- pure-JAX reference (for the self-check) ---------------------------

def _reference_forward(params, x, *, shift_size=5):
    x = x.astype(jnp.float32)
    B, C, H, W = x.shape
    pad = shift_size // 2

    def shift(img, axis):
        xp = jnp.pad(img, ((0, 0), (0, 0), (pad, pad), (pad, pad)))
        chunk = -(-C // shift_size)
        shifts = list(range(-pad, pad + 1))
        pieces, start, i = [], 0, 0
        while start < C:
            end = min(start + chunk, C)
            pieces.append(jnp.roll(xp[:, start:end], shifts[i], axis=axis))
            start, i = end, i + 1
        xc = jnp.concatenate(pieces, axis=1)
        return xc[:, :, pad:pad + H, pad:pad + W]

    out = jax.lax.conv_general_dilated(
        x, params["conv_w"], (1, 1), ((1, 1), (1, 1)),
        dimension_numbers=("NCHW", "OIHW", "NCHW"))
    out = out + params["conv_b"].reshape(1, C, 1, 1)

    tok = out.reshape(B, C, H * W).transpose(0, 2, 1)             # (B, N, C)
    mu = tok.mean(-1, keepdims=True)
    var = ((tok - mu) ** 2).mean(-1, keepdims=True)
    t = (tok - mu) * jax.lax.rsqrt(var + 1e-5) * params["ln_g"] + params["ln_b"]

    ts = shift(t.transpose(0, 2, 1).reshape(B, C, H, W), axis=2)  # shift along H
    h = ts.reshape(B, C, H * W).transpose(0, 2, 1) @ params["fc1_w"].T + params["fc1_b"]

    dw = jax.lax.conv_general_dilated(
        h.transpose(0, 2, 1).reshape(B, C, H, W), params["dw_w"], (1, 1), ((1, 1), (1, 1)),
        dimension_numbers=("NCHW", "OIHW", "NCHW"), feature_group_count=C)
    dw = dw + params["dw_b"].reshape(1, C, 1, 1)
    g = jax.nn.gelu(dw, approximate=False)

    gs = shift(g, axis=3)                                         # shift along W
    o = gs.reshape(B, C, H * W).transpose(0, 2, 1) @ params["fc2_w"].T + params["fc2_b"]

    img = (tok + o).transpose(0, 2, 1).reshape(B, C, H, W)
    mu = img.mean(axis=(2, 3), keepdims=True)
    var = ((img - mu) ** 2).mean(axis=(2, 3), keepdims=True)
    return (img - mu) * jax.lax.rsqrt(var + 1e-5)


def init_params(key, C):
    ks = jax.random.split(key, 8)
    s = 0.1
    return {
        "conv_w": s * jax.random.normal(ks[0], (C, C, 3, 3), jnp.float32),   # Conv2d (O,I,kh,kw)
        "conv_b": s * jax.random.normal(ks[1], (C,), jnp.float32),
        "ln_g": jnp.ones((C,), jnp.float32),                                 # LayerNorm affine
        "ln_b": jnp.zeros((C,), jnp.float32),
        "fc1_w": s * jax.random.normal(ks[2], (C, C), jnp.float32),          # Linear (out, in)
        "fc1_b": s * jax.random.normal(ks[3], (C,), jnp.float32),
        "dw_w": s * jax.random.normal(ks[4], (C, 1, 3, 3), jnp.float32),     # depthwise (C,1,3,3)
        "dw_b": s * jax.random.normal(ks[5], (C,), jnp.float32),
        "fc2_w": s * jax.random.normal(ks[6], (C, C), jnp.float32),
        "fc2_b": s * jax.random.normal(ks[7], (C,), jnp.float32),
    }


if __name__ == "__main__":
    B, C, H, W = 2, 3, 16, 16       # input_channels=3 (module default), small spatial test
    shift_size = 5

    key = jax.random.PRNGKey(0)
    pkey, xkey = jax.random.split(key)
    params = init_params(pkey, C)
    x = jax.random.normal(xkey, (B, C, H, W), jnp.float32)

    fwd = jax.jit(functools.partial(tokenized_mlp_block_l_forward, shift_size=shift_size))
    out = fwd(params, x)
    jax.block_until_ready(out)

    assert out.shape == (B, C, H, W), out.shape
    assert bool(jnp.all(jnp.isfinite(out)))

    ref = _reference_forward(params, x, shift_size=shift_size)
    err = float(jnp.max(jnp.abs(out - ref)))
    assert err < 2e-4, f"mismatch vs pure-JAX reference: max abs err {err}"
    print("KERNEL_OK")
</pallas_src>

<mosaic_0001>
module attributes {stable_mosaic.version = 11 : i64} {
  func.func @_fused_block_kernel(%arg0: i32, %arg1: memref<1x3x16x16xf32, #tpu.memory_space<vmem>>, %arg2: memref<81xf32, #tpu.memory_space<smem>>, %arg3: memref<3xf32, #tpu.memory_space<smem>>, %arg4: memref<3xf32, #tpu.memory_space<smem>>, %arg5: memref<3xf32, #tpu.memory_space<smem>>, %arg6: memref<9xf32, #tpu.memory_space<smem>>, %arg7: memref<3xf32, #tpu.memory_space<smem>>, %arg8: memref<27xf32, #tpu.memory_space<smem>>, %arg9: memref<3xf32, #tpu.memory_space<smem>>, %arg10: memref<9xf32, #tpu.memory_space<smem>>, %arg11: memref<3xf32, #tpu.memory_space<smem>>, %arg12: memref<1x3x16x16xf32, #tpu.memory_space<vmem>>, %arg13: memref<2x3x26x128xf32, #tpu.memory_space<vmem>>, %arg14: memref<3x16x128xf32, #tpu.memory_space<vmem>>) attributes {dimension_semantics = [#tpu.dimension_semantics<parallel>], iteration_bounds = array<i64: 2>, scalar_prefetch = 0 : i64, scratch_operands = 2 : i64, tpu.core_type = #tpu.core_type<tc>, window_params = [{transform_indices = @transform_0, window_bounds = array<i64: 1, 3, 16, 16>}, {transform_indices = @transform_1, window_bounds = array<i64: 81>}, {transform_indices = @transform_2, window_bounds = array<i64: 3>}, {transform_indices = @transform_3, window_bounds = array<i64: 3>}, {transform_indices = @transform_4, window_bounds = array<i64: 3>}, {transform_indices = @transform_5, window_bounds = array<i64: 9>}, {transform_indices = @transform_6, window_bounds = array<i64: 3>}, {transform_indices = @transform_7, window_bounds = array<i64: 27>}, {transform_indices = @transform_8, window_bounds = array<i64: 3>}, {transform_indices = @transform_9, window_bounds = array<i64: 9>}, {transform_indices = @transform_10, window_bounds = array<i64: 3>}, {transform_indices = @transform_11, window_bounds = array<i64: 1, 3, 16, 16>}]} {
    %cst = arith.constant 0.000000e+00 : f32
    %0 = vector.broadcast %cst : f32 to vector<2x128xf32>
    %cst_0 = arith.constant 0.000000e+00 : f32
    %1 = vector.broadcast %cst_0 : f32 to vector<16x112xf32>
    %c0 = arith.constant 0 : index
    %c0_1 = arith.constant 0 : index
    %c6 = arith.constant 6 : index
    %c0_2 = arith.constant 0 : index
    %2 = vector.load %arg13[%c0, %c0_1, %c6, %c0_2] : memref<2x3x26x128xf32, #tpu.memory_space<vmem>>, vector<1x1x2x128xf32>
    %3 = vector.shape_cast %2 : vector<1x1x2x128xf32> to vector<2x128xf32>
    %4 = vector.shape_cast %0 : vector<2x128xf32> to vector<1x1x2x128xf32>
    tpu.vector_store %arg13[%c0, %c0_1, %c6, %c0_2], %4 {strides = array<i32>} : memref<2x3x26x128xf32, #tpu.memory_space<vmem>>, vector<1x1x2x128xf32>,
    %c0_3 = arith.constant 0 : index
    %c0_4 = arith.constant 0 : index
    %c24 = arith.constant 24 : index
    %c0_5 = arith.constant 0 : index
    %5 = vector.load %arg13[%c0_3, %c0_4, %c24, %c0_5] : memref<2x3x26x128xf32, #tpu.memory_space<vmem>>, vector<1x1x2x128xf32>
    %6 = vector.shape_cast %5 : vector<1x1x2x128xf32> to vector<2x128xf32>
    %7 = vector.shape_cast %0 : vector<2x128xf32> to vector<1x1x2x128xf32>
    tpu.vector_store %arg13[%c0_3, %c0_4, %c24, %c0_5], %7 {strides = array<i32>} : memref<2x3x26x128xf32, #tpu.memory_space<vmem>>, vector<1x1x2x128xf32>,
    %c0_6 = arith.constant 0 : index
    %c0_7 = arith.constant 0 : index
    %c8 = arith.constant 8 : index
    %c16 = arith.constant 16 : index
    %8 = vector.load %arg13[%c0_6, %c0_7, %c8, %c16] : memref<2x3x26x128xf32, #tpu.memory_space<vmem>>, vector<1x1x16x112xf32>
    %9 = vector.shape_cast %8 : vector<1x1x16x112xf32> to vector<16x112xf32>
    %10 = vector.shape_cast %1 : vector<16x112xf32> to vector<1x1x16x112xf32>
    tpu.vector_store %arg13[%c0_6, %c0_7, %c8, %c16], %10 {strides = array<i32>} : memref<2x3x26x128xf32, #tpu.memory_space<vmem>>, vector<1x1x16x112xf32>,
    %c0_8 = arith.constant 0 : index
    %c1 = arith.constant 1 : index
    %c6_9 = arith.constant 6 : index
    %c0_10 = arith.constant 0 : index
    %11 = vector.load %arg13[%c0_8, %c1, %c6_9, %c0_10] : memref<2x3x26x128xf32, #tpu.memory_space<vmem>>, vector<1x1x2x128xf32>
    %12 = vector.shape_cast %11 : vector<1x1x2x128xf32> to vector<2x128xf32>
    %13 = vector.shape_cast %0 : vector<2x128xf32> to vector<1x1x2x128xf32>
    tpu.vector_store %arg13[%c0_8, %c1, %c6_9, %c0_10], %13 {strides = array<i32>} : memref<2x3x26x128xf32, #tpu.memory_space<vmem>>, vector<1x1x2x128xf32>,
    %c0_11 = arith.constant 0 : index
    %c1_12 = arith.constant 1 : index
    %c24_13 = arith.constant 24 : index
    %c0_14 = arith.constant 0 : index
    %14 = vector.load %arg13[%c0_11, %c1_12, %c24_13, %c0_14] : memref<2x3x26x128xf32, #tpu.memory_space<vmem>>, vector<1x1x2x128xf32>
    %15 = vector.shape_cast %14 : vector<1x1x2x128xf32> to vector<2x128xf32>
    %16 = vector.shape_cast %0 : vector<2x128xf32> to vector<1x1x2x128xf32>
    tpu.vector_store %arg13[%c0_11, %c1_12, %c24_13, %c0_14], %16 {strides = array<i32>} : memref<2x3x26x128xf32, #tpu.memory_space<vmem>>, vector<1x1x2x128xf32>,
    %c0_15 = arith.constant 0 : index
    %c1_16 = arith.constant 1 : index
    %c8_17 = arith.constant 8 : index
    %c16_18 = arith.constant 16 : index
    %17 = vector.load %arg13[%c0_15, %c1_16, %c8_17, %c16_18] : memref<2x3x26x128xf32, #tpu.memory_space<vmem>>, vector<1x1x16x112xf32>
    %18 = vector.shape_cast %17 : vector<1x1x16x112xf32> to vector<16x112xf32>
    %19 = vector.shape_cast %1 : vector<16x112xf32> to vector<1x1x16x112xf32>
    tpu.vector_store %arg13[%c0_15, %c1_16, %c8_17, %c16_18], %19 {strides = array<i32>} : memref<2x3x26x128xf32, #tpu.memory_space<vmem>>, vector<1x1x16x112xf32>,
    %c0_19 = arith.constant 0 : index
    %c2 = arith.constant 2 : index
    %c6_20 = arith.constant 6 : index
    %c0_21 = arith.constant 0 : index
    %20 = vector.load %arg13[%c0_19, %c2, %c6_20, %c0_21] : memref<2x3x26x128xf32, #tpu.memory_space<vmem>>, vector<1x1x2x128xf32>
    %21 = vector.shape_cast %20 : vector<1x1x2x128xf32> to vector<2x128xf32>
    %22 = vector.shape_cast %0 : vector<2x128xf32> to vector<1x1x2x128xf32>
    tpu.vector_store %arg13[%c0_19, %c2, %c6_20, %c0_21], %22 {strides = array<i32>} : memref<2x3x26x128xf32, #tpu.memory_space<vmem>>, vector<1x1x2x128xf32>,
    %c0_22 = arith.constant 0 : index
    %c2_23 = arith.constant 2 : index
    %c24_24 = arith.constant 24 : index
    %c0_25 = arith.constant 0 : index
    %23 = vector.load %arg13[%c0_22, %c2_23, %c24_24, %c0_25] : memref<2x3x26x128xf32, #tpu.memory_space<vmem>>, vector<1x1x2x128xf32>
    %24 = vector.shape_cast %23 : vector<1x1x2x128xf32> to vector<2x128xf32>
    %25 = vector.shape_cast %0 : vector<2x128xf32> to vector<1x1x2x128xf32>
    tpu.vector_store %arg13[%c0_22, %c2_23, %c24_24, %c0_25], %25 {strides = array<i32>} : memref<2x3x26x128xf32, #tpu.memory_space<vmem>>, vector<1x1x2x128xf32>,
    %c0_26 = arith.constant 0 : index
    %c2_27 = arith.constant 2 : index
    %c8_28 = arith.constant 8 : index
    %c16_29 = arith.constant 16 : index
    %26 = vector.load %arg13[%c0_26, %c2_27, %c8_28, %c16_29] : memref<2x3x26x128xf32, #tpu.memory_space<vmem>>, vector<1x1x16x112xf32>
    %27 = vector.shape_cast %26 : vector<1x1x16x112xf32> to vector<16x112xf32>
    %28 = vector.shape_cast %1 : vector<16x112xf32> to vector<1x1x16x112xf32>
    tpu.vector_store %arg13[%c0_26, %c2_27, %c8_28, %c16_29], %28 {strides = array<i32>} : memref<2x3x26x128xf32, #tpu.memory_space<vmem>>, vector<1x1x16x112xf32>,
    %c1_30 = arith.constant 1 : index
    %c0_31 = arith.constant 0 : index
    %c6_32 = arith.constant 6 : index
    %c0_33 = arith.constant 0 : index
    %29 = vector.load %arg13[%c1_30, %c0_31, %c6_32, %c0_33] : memref<2x3x26x128xf32, #tpu.memory_space<vmem>>, vector<1x1x2x128xf32>
    %30 = vector.shape_cast %29 : vector<1x1x2x128xf32> to vector<2x128xf32>
    %31 = vector.shape_cast %0 : vector<2x128xf32> to vector<1x1x2x128xf32>
    tpu.vector_store %arg13[%c1_30, %c0_31, %c6_32, %c0_33], %31 {strides = array<i32>} : memref<2x3x26x128xf32, #tpu.memory_space<vmem>>, vector<1x1x2x128xf32>,
    %c1_34 = arith.constant 1 : index
    %c0_35 = arith.constant 0 : index
    %c24_36 = arith.constant 24 : index
    %c0_37 = arith.constant 0 : index
    %32 = vector.load %arg13[%c1_34, %c0_35, %c24_36, %c0_37] : memref<2x3x26x128xf32, #tpu.memory_space<vmem>>, vector<1x1x2x128xf32>
    %33 = vector.shape_cast %32 : vector<1x1x2x128xf32> to vector<2x128xf32>
    %34 = vector.shape_cast %0 : vector<2x128xf32> to vector<1x1x2x128xf32>
    tpu.vector_store %arg13[%c1_34, %c0_35, %c24_36, %c0_37], %34 {strides = array<i32>} : memref<2x3x26x128xf32, #tpu.memory_space<vmem>>, vector<1x1x2x128xf32>,
    %c1_38 = arith.constant 1 : index
    %c0_39 = arith.constant 0 : index
    %c8_40 = arith.constant 8 : index
    %c16_41 = arith.constant 16 : index
    %35 = vector.load %arg13[%c1_38, %c0_39, %c8_40, %c16_41] : memref<2x3x26x128xf32, #tpu.memory_space<vmem>>, vector<1x1x16x112xf32>
    %36 = vector.shape_cast %35 : vector<1x1x16x112xf32> to vector<16x112xf32>
    %37 = vector.shape_cast %1 : vector<16x112xf32> to vector<1x1x16x112xf32>
    tpu.vector_store %arg13[%c1_38, %c0_39, %c8_40, %c16_41], %37 {strides = array<i32>} : memref<2x3x26x128xf32, #tpu.memory_space<vmem>>, vector<1x1x16x112xf32>,
    %c1_42 = arith.constant 1 : index
    %c1_43 = arith.constant 1 : index
    %c6_44 = arith.constant 6 : index
    %c0_45 = arith.constant 0 : index
    %38 = vector.load %arg13[%c1_42, %c1_43, %c6_44, %c0_45] : memref<2x3x26x128xf32, #tpu.memory_space<vmem>>, vector<1x1x2x128xf32>
    %39 = vector.shape_cast %38 : vector<1x1x2x128xf32> to vector<2x128xf32>
    %40 = vector.shape_cast %0 : vector<2x128xf32> to vector<1x1x2x128xf32>
    tpu.vector_store %arg13[%c1_42, %c1_43, %c6_44, %c0_45], %40 {strides = array<i32>} : memref<2x3x26x128xf32, #tpu.memory_space<vmem>>, vector<1x1x2x128xf32>,
    %c1_46 = arith.constant 1 : index
    %c1_47 = arith.constant 1 : index
    %c24_48 = arith.constant 24 : index
    %c0_49 = arith.constant 0 : index
    %41 = vector.load %arg13[%c1_46, %c1_47, %c24_48, %c0_49] : memref<2x3x26x128xf32, #tpu.memory_space<vmem>>, vector<1x1x2x128xf32>
    %42 = vector.shape_cast %41 : vector<1x1x2x128xf32> to vector<2x128xf32>
    %43 = vector.shape_cast %0 : vector<2x128xf32> to vector<1x1x2x128xf32>
    tpu.vector_store %arg13[%c1_46, %c1_47, %c24_48, %c0_49], %43 {strides = array<i32>} : memref<2x3x26x128xf32, #tpu.memory_space<vmem>>, vector<1x1x2x128xf32>,
    %c1_50 = arith.constant 1 : index
    %c1_51 = arith.constant 1 : index
    %c8_52 = arith.constant 8 : index
    %c16_53 = arith.constant 16 : index
    %44 = vector.load %arg13[%c1_50, %c1_51, %c8_52, %c16_53] : memref<2x3x26x128xf32, #tpu.memory_space<vmem>>, vector<1x1x16x112xf32>
    %45 = vector.shape_cast %44 : vector<1x1x16x112xf32> to vector<16x112xf32>
    %46 = vector.shape_cast %1 : vector<16x112xf32> to vector<1x1x16x112xf32>
    tpu.vector_store %arg13[%c1_50, %c1_51, %c8_52, %c16_53], %46 {strides = array<i32>} : memref<2x3x26x128xf32, #tpu.memory_space<vmem>>, vector<1x1x16x112xf32>,
    %c1_54 = arith.constant 1 : index
    %c2_55 = arith.constant 2 : index
    %c6_56 = arith.constant 6 : index
    %c0_57 = arith.constant 0 : index
    %47 = vector.load %arg13[%c1_54, %c2_55, %c6_56, %c0_57] : memref<2x3x26x128xf32, #tpu.memory_space<vmem>>, vector<1x1x2x128xf32>
    %48 = vector.shape_cast %47 : vector<1x1x2x128xf32> to vector<2x128xf32>
    %49 = vector.shape_cast %0 : vector<2x128xf32> to vector<1x1x2x128xf32>
    tpu.vector_store %arg13[%c1_54, %c2_55, %c6_56, %c0_57], %49 {strides = array<i32>} : memref<2x3x26x128xf32, #tpu.memory_space<vmem>>, vector<1x1x2x128xf32>,
    %c1_58 = arith.constant 1 : index
    %c2_59 = arith.constant 2 : index
    %c24_60 = arith.constant 24 : index
    %c0_61 = arith.constant 0 : index
    %50 = vector.load %arg13[%c1_58, %c2_59, %c24_60, %c0_61] : memref<2x3x26x128xf32, #tpu.memory_space<vmem>>, vector<1x1x2x128xf32>
    %51 = vector.shape_cast %50 : vector<1x1x2x128xf32> to vector<2x128xf32>
    %52 = vector.shape_cast %0 : vector<2x128xf32> to vector<1x1x2x128xf32>
    tpu.vector_store %arg13[%c1_58, %c2_59, %c24_60, %c0_61], %52 {strides = array<i32>} : memref<2x3x26x128xf32, #tpu.memory_space<vmem>>, vector<1x1x2x128xf32>,
    %c1_62 = arith.constant 1 : index
    %c2_63 = arith.constant 2 : index
    %c8_64 = arith.constant 8 : index
    %c16_65 = arith.constant 16 : index
    %53 = vector.load %arg13[%c1_62, %c2_63, %c8_64, %c16_65] : memref<2x3x26x128xf32, #tpu.memory_space<vmem>>, vector<1x1x16x112xf32>
    %54 = vector.shape_cast %53 : vector<1x1x16x112xf32> to vector<16x112xf32>
    %55 = vector.shape_cast %1 : vector<16x112xf32> to vector<1x1x16x112xf32>
    tpu.vector_store %arg13[%c1_62, %c2_63, %c8_64, %c16_65], %55 {strides = array<i32>} : memref<2x3x26x128xf32, #tpu.memory_space<vmem>>, vector<1x1x16x112xf32>,
    %c0_66 = arith.constant 0 : index
    %c0_67 = arith.constant 0 : index
    %c0_68 = arith.constant 0 : index
    %c0_69 = arith.constant 0 : index
    %56 = vector.load %arg1[%c0_66, %c0_67, %c0_68, %c0_69] : memref<1x3x16x16xf32, #tpu.memory_space<vmem>>, vector<1x1x16x16xf32>
    %57 = vector.shape_cast %56 : vector<1x1x16x16xf32> to vector<16x16xf32>
    %c0_70 = arith.constant 0 : index
    %c0_71 = arith.constant 0 : index
    %c8_72 = arith.constant 8 : index
    %c0_73 = arith.constant 0 : index
    %58 = vector.load %arg13[%c0_70, %c0_71, %c8_72, %c0_73] : memref<2x3x26x128xf32, #tpu.memory_space<vmem>>, vector<1x1x16x16xf32>
    %59 = vector.shape_cast %58 : vector<1x1x16x16xf32> to vector<16x16xf32>
    %60 = vector.shape_cast %57 : vector<16x16xf32> to vector<1x1x16x16xf32>
    tpu.vector_store %arg13[%c0_70, %c0_71, %c8_72, %c0_73], %60 {strides = array<i32>} : memref<2x3x26x128xf32, #tpu.memory_space<vmem>>, vector<1x1x16x16xf32>,
    %c0_74 = arith.constant 0 : index
    %c1_75 = arith.constant 1 : index
    %c0_76 = arith.constant 0 : index
    %c0_77 = arith.constant 0 : index
    %61 = vector.load %arg1[%c0_74, %c1_75, %c0_76, %c0_77] : memref<1x3x16x16xf32, #tpu.memory_space<vmem>>, vector<1x1x16x16xf32>
    %62 = vector.shape_cast %61 : vector<1x1x16x16xf32> to vector<16x16xf32>
    %c0_78 = arith.constant 0 : index
    %c1_79 = arith.constant 1 : index
    %c8_80 = arith.constant 8 : index
    %c0_81 = arith.constant 0 : index
    %63 = vector.load %arg13[%c0_78, %c1_79, %c8_80, %c0_81] : memref<2x3x26x128xf32, #tpu.memory_space<vmem>>, vector<1x1x16x16xf32>
    %64 = vector.shape_cast %63 : vector<1x1x16x16xf32> to vector<16x16xf32>
    %65 = vector.shape_cast %62 : vector<16x16xf32> to vector<1x1x16x16xf32>
    tpu.vector_store %arg13[%c0_78, %c1_79, %c8_80, %c0_81], %65 {strides = array<i32>} : memref<2x3x26x128xf32, #tpu.memory_space<vmem>>, vector<1x1x16x16xf32>,
    %c0_82 = arith.constant 0 : index
    %c2_83 = arith.constant 2 : index
    %c0_84 = arith.constant 0 : index
    %c0_85 = arith.constant 0 : index
    %66 = vector.load %arg1[%c0_82, %c2_83, %c0_84, %c0_85] : memref<1x3x16x16xf32, #tpu.memory_space<vmem>>, vector<1x1x16x16xf32>
    %67 = vector.shape_cast %66 : vector<1x1x16x16xf32> to vector<16x16xf32>
    %c0_86 = arith.constant 0 : index
    %c2_87 = arith.constant 2 : index
    %c8_88 = arith.constant 8 : index
    %c0_89 = arith.constant 0 : index
    %68 = vector.load %arg13[%c0_86, %c2_87, %c8_88, %c0_89] : memref<2x3x26x128xf32, #tpu.memory_space<vmem>>, vector<1x1x16x16xf32>
    %69 = vector.shape_cast %68 : vector<1x1x16x16xf32> to vector<16x16xf32>
    %70 = vector.shape_cast %67 : vector<16x16xf32> to vector<1x1x16x16xf32>
    tpu.vector_store %arg13[%c0_86, %c2_87, %c8_88, %c0_89], %70 {strides = array<i32>} : memref<2x3x26x128xf32, #tpu.memory_space<vmem>>, vector<1x1x16x16xf32>,
    %c0_90 = arith.constant 0 : index
    %c0_91 = arith.constant 0 : index
    %c7 = arith.constant 7 : index
    %c0_92 = arith.constant 0 : index
    %71 = vector.load %arg13[%c0_90, %c0_91, %c7, %c0_92] : memref<2x3x26x128xf32, #tpu.memory_space<vmem>>, vector<1x1x16x128xf32>
    %72 = vector.shape_cast %71 : vector<1x1x16x128xf32> to vector<16x128xf32>
    %c0_93 = arith.constant 0 : index
    %73 = memref.load %arg2[%c0_93] : memref<81xf32, #tpu.memory_space<smem>>
    %c1_i32 = arith.constant 1 : i32
    %74 = tpu.dynamic_rotate %72 by %c1_i32 dim 1 : vector<16x128xf32>, i32 -> vector<16x128xf32>
    %75 = vector.extract_strided_slice %74 {offsets = [0, 0], sizes = [16, 16], strides = [1, 1]} : vector<16x128xf32> to vector<16x16xf32>
    %76 = vector.broadcast %73 : f32 to vector<16x16xf32>
    %77 = arith.mulf %75, %76 : vector<16x16xf32>
    %c1_94 = arith.constant 1 : index
    %78 = memref.load %arg2[%c1_94] : memref<81xf32, #tpu.memory_space<smem>>
    %79 = vector.extract_strided_slice %72 {offsets = [0, 0], sizes = [16, 16], strides = [1, 1]} : vector<16x128xf32> to vector<16x16xf32>
    %80 = vector.broadcast %78 : f32 to vector<16x16xf32>
    %81 = arith.mulf %79, %80 : vector<16x16xf32>
    %82 = arith.addf %77, %81 : vector<16x16xf32>
    %c2_95 = arith.constant 2 : index
    %83 = memref.load %arg2[%c2_95] : memref<81xf32, #tpu.memory_space<smem>>
    %c127_i32 = arith.constant 127 : i32
    %84 = tpu.dynamic_rotate %72 by %c127_i32 dim 1 : vector<16x128xf32>, i32 -> vector<16x128xf32>
    %85 = vector.extract_strided_slice %84 {offsets = [0, 0], sizes = [16, 16], strides = [1, 1]} : vector<16x128xf32> to vector<16x16xf32>
    %86 = vector.broadcast %83 : f32 to vector<16x16xf32>
    %87 = arith.mulf %85, %86 : vector<16x16xf32>
    %88 = arith.addf %82, %87 : vector<16x16xf32>
    %c0_96 = arith.constant 0 : index
    %c0_97 = arith.constant 0 : index
    %c8_98 = arith.constant 8 : index
    %c0_99 = arith.constant 0 : index
    %89 = vector.load %arg13[%c0_96, %c0_97, %c8_98, %c0_99] : memref<2x3x26x128xf32, #tpu.memory_space<vmem>>, vector<1x1x16x128xf32>
    %90 = vector.shape_cast %89 : vector<1x1x16x128xf32> to vector<16x128xf32>
    %c3 = arith.constant 3 : index
    %91 = memref.load %arg2[%c3] : memref<81xf32, #tpu.memory_space<smem>>
    %c1_i32_100 = arith.constant 1 : i32
    %92 = tpu.dynamic_rotate %90 by %c1_i32_100 dim 1 : vector<16x128xf32>, i32 -> vector<16x128xf32>
    %93 = vector.extract_strided_slice %92 {offsets = [0, 0], sizes = [16, 16], strides = [1, 1]} : vector<16x128xf32> to vector<16x16xf32>
    %94 = vector.broadcast %91 : f32 to vector<16x16xf32>
    %95 = arith.mulf %93, %94 : vector<16x16xf32>
    %96 = arith.addf %88, %95 : vector<16x16xf32>
    %c4 = arith.constant 4 : index
    %97 = memref.load %arg2[%c4] : memref<81xf32, #tpu.memory_space<smem>>
    %98 = vector.extract_strided_slice %90 {offsets = [0, 0], sizes = [16, 16], strides = [1, 1]} : vector<16x128xf32> to vector<16x16xf32>
    %99 = vector.broadcast %97 : f32 to vector<16x16xf32>
    %100 = arith.mulf %98, %99 : vector<16x16xf32>
    %101 = arith.addf %96, %100 : vector<16x16xf32>
    %c5 = arith.constant 5 : index
    %102 = memref.load %arg2[%c5] : memref<81xf32, #tpu.memory_space<smem>>
    %c127_i32_101 = arith.constant 127 : i32
    %103 = tpu.dynamic_rotate %90 by %c127_i32_101 dim 1 : vector<16x128xf32>, i32 -> vector<16x128xf32>
    %104 = vector.extract_strided_slice %103 {offsets = [0, 0], sizes = [16, 16], strides = [1, 1]} : vector<16x128xf32> to vector<16x16xf32>
    %105 = vector.broadcast %102 : f32 to vector<16x16xf32>
    %106 = arith.mulf %104, %105 : vector<16x16xf32>
    %107 = arith.addf %101, %106 : vector<16x16xf32>
    %c0_102 = arith.constant 0 : index
    %c0_103 = arith.constant 0 : index
    %c9 = arith.constant 9 : index
    %c0_104 = arith.constant 0 : index
    %108 = vector.load %arg13[%c0_102, %c0_103, %c9, %c0_104] : memref<2x3x26x128xf32, #tpu.memory_space<vmem>>, vector<1x1x16x128xf32>
    %109 = vector.shape_cast %108 : vector<1x1x16x128xf32> to vector<16x128xf32>
    %c6_105 = arith.constant 6 : index
    %110 = memref.load %arg2[%c6_105] : memref<81xf32, #tpu.memory_space<smem>>
    %c1_i32_106 = arith.constant 1 : i32
    %111 = tpu.dynamic_rotate %109 by %c1_i32_106 dim 1 : vector<16x128xf32>, i32 -> vector<16x128xf32>
    %112 = vector.extract_strided_slice %111 {offsets = [0, 0], sizes = [16, 16], strides = [1, 1]} : vector<16x128xf32> to vector<16x16xf32>
    %113 = vector.broadcast %110 : f32 to vector<16x16xf32>
    %114 = arith.mulf %112, %113 : vector<16x16xf32>
    %115 = arith.addf %107, %114 : vector<16x16xf32>
    %c7_107 = arith.constant 7 : index
    %116 = memref.load %arg2[%c7_107] : memref<81xf32, #tpu.memory_space<smem>>
    %117 = vector.extract_strided_slice %109 {offsets = [0, 0], sizes = [16, 16], strides = [1, 1]} : vector<16x128xf32> to vector<16x16xf32>
    %118 = vector.broadcast %116 : f32 to vector<16x16xf32>
    %119 = arith.mulf %117, %118 : vector<16x16xf32>
    %120 = arith.addf %115, %119 : vector<16x16xf32>
    %c8_108 = arith.constant 8 : index
    %121 = memref.load %arg2[%c8_108] : memref<81xf32, #tpu.memory_space<smem>>
    %c127_i32_109 = arith.constant 127 : i32
    %122 = tpu.dynamic_rotate %109 by %c127_i32_109 dim 1 : vector<16x128xf32>, i32 -> vector<16x128xf32>
    %123 = vector.extract_strided_slice %122 {offsets = [0, 0], sizes = [16, 16], strides = [1, 1]} : vector<16x128xf32> to vector<16x16xf32>
    %124 = vector.broadcast %121 : f32 to vector<16x16xf32>
    %125 = arith.mulf %123, %124 : vector<16x16xf32>
    %126 = arith.addf %120, %125 : vector<16x16xf32>
    %c0_110 = arith.constant 0 : index
    %c1_111 = arith.constant 1 : index
    %c7_112 = arith.constant 7 : index
    %c0_113 = arith.constant 0 : index
    %127 = vector.load %arg13[%c0_110, %c1_111, %c7_112, %c0_113] : memref<2x3x26x128xf32, #tpu.memory_space<vmem>>, vector<1x1x16x128xf32>
    %128 = vector.shape_cast %127 : vector<1x1x16x128xf32> to vector<16x128xf32>
    %c9_114 = arith.constant 9 : index
    %129 = memref.load %arg2[%c9_114] : memref<81xf32, #tpu.memory_space<smem>>
    %c1_i32_115 = arith.constant 1 : i32
    %130 = tpu.dynamic_rotate %128 by %c1_i32_115 dim 1 : vector<16x128xf32>, i32 -> vector<16x128xf32>
    %131 = vector.extract_strided_slice %130 {offsets = [0, 0], sizes = [16, 16], strides = [1, 1]} : vector<16x128xf32> to vector<16x16xf32>
    %132 = vector.broadcast %129 : f32 to vector<16x16xf32>
    %133 = arith.mulf %131, %132 : vector<16x16xf32>
    %134 = arith.addf %126, %133 : vector<16x16xf32>
    %c10 = arith.constant 10 : index
    %135 = memref.load %arg2[%c10] : memref<81xf32, #tpu.memory_space<smem>>
    %136 = vector.extract_strided_slice %128 {offsets = [0, 0], sizes = [16, 16], strides = [1, 1]} : vector<16x128xf32> to vector<16x16xf32>
    %137 = vector.broadcast %135 : f32 to vector<16x16xf32>
    %138 = arith.mulf %136, %137 : vector<16x16xf32>
    %139 = arith.addf %134, %138 : vector<16x16xf32>
    %c11 = arith.constant 11 : index
    %140 = memref.load %arg2[%c11] : memref<81xf32, #tpu.memory_space<smem>>
    %c127_i32_116 = arith.constant 127 : i32
    %141 = tpu.dynamic_rotate %128 by %c127_i32_116 dim 1 : vector<16x128xf32>, i32 -> vector<16x128xf32>
    %142 = vector.extract_strided_slice %141 {offsets = [0, 0], sizes = [16, 16], strides = [1, 1]} : vector<16x128xf32> to vector<16x16xf32>
    %143 = vector.broadcast %140 : f32 to vector<16x16xf32>
    %144 = arith.mulf %142, %143 : vector<16x16xf32>
    %145 = arith.addf %139, %144 : vector<16x16xf32>
    %c0_117 = arith.constant 0 : index
    %c1_118 = arith.constant 1 : index
    %c8_119 = arith.constant 8 : index
    %c0_120 = arith.constant 0 : index
    %146 = vector.load %arg13[%c0_117, %c1_118, %c8_119, %c0_120] : memref<2x3x26x128xf32, #tpu.memory_space<vmem>>, vector<1x1x16x128xf32>
    %147 = vector.shape_cast %146 : vector<1x1x16x128xf32> to vector<16x128xf32>
    %c12 = arith.constant 12 : index
    %148 = memref.load %arg2[%c12] : memref<81xf32, #tpu.memory_space<smem>>
    %c1_i32_121 = arith.constant 1 : i32
    %149 = tpu.dynamic_rotate %147 by %c1_i32_121 dim 1 : vector<16x128xf32>, i32 -> vector<16x128xf32>
    %150 = vector.extract_strided_slice %149 {offsets = [0, 0], sizes = [16, 16], strides = [1, 1]} : vector<16x128xf32> to vector<16x16xf32>
    %151 = vector.broadcast %148 : f32 to vector<16x16xf32>
    %152 = arith.mulf %150, %151 : vector<16x16xf32>
    %153 = arith.addf %145, %152 : vector<16x16xf32>
    %c13 = arith.constant 13 : index
    %154 = memref.load %arg2[%c13] : memref<81xf32, #tpu.memory_space<smem>>
    %155 = vector.extract_strided_slice %147 {offsets = [0, 0], sizes = [16, 16], strides = [1, 1]} : vector<16x128xf32> to vector<16x16xf32>
    %156 = vector.broadcast %154 : f32 to vector<16x16xf32>
    %157 = arith.mulf %155, %156 : vector<16x16xf32>
    %158 = arith.addf %153, %157 : vector<16x16xf32>
    %c14 = arith.constant 14 : index
    %159 = memref.load %arg2[%c14] : memref<81xf32, #tpu.memory_space<smem>>
    %c127_i32_122 = arith.constant 127 : i32
    %160 = tpu.dynamic_rotate %147 by %c127_i32_122 dim 1 : vector<16x128xf32>, i32 -> vector<16x128xf32>
    %161 = vector.extract_strided_slice %160 {offsets = [0, 0], sizes = [16, 16], strides = [1, 1]} : vector<16x128xf32> to vector<16x16xf32>
    %162 = vector.broadcast %159 : f32 to vector<16x16xf32>
    %163 = arith.mulf %161, %162 : vector<16x16xf32>
    %164 = arith.addf %158, %163 : vector<16x16xf32>
    %c0_123 = arith.constant 0 : index
    %c1_124 = arith.constant 1 : index
    %c9_125 = arith.constant 9 : index
    %c0_126 = arith.constant 0 : index
    %165 = vector.load %arg13[%c0_123, %c1_124, %c9_125, %c0_126] : memref<2x3x26x128xf32, #tpu.memory_space<vmem>>, vector<1x1x16x128xf32>
    %166 = vector.shape_cast %165 : vector<1x1x16x128xf32> to vector<16x128xf32>
    %c15 = arith.constant 15 : index
    %167 = memref.load %arg2[%c15] : memref<81xf32, #tpu.memory_space<smem>>
    %c1_i32_127 = arith.constant 1 : i32
    %168 = tpu.dynamic_rotate %166 by %c1_i32_127 dim 1 : vector<16x128xf32>, i32 -> vector<16x128xf32>
    %169 = vector.extract_strided_slice %168 {offsets = [0, 0], sizes = [16, 16], strides = [1, 1]} : vector<16x128xf32> to vector<16x16xf32>
    %170 = vector.broadcast %167 : f32 to vector<16x16xf32>
    %171 = arith.mulf %169, %170 : vector<16x16xf32>
    %172 = arith.addf %164, %171 : vector<16x16xf32>
    %c16_128 = arith.constant 16 : index
    %173 = memref.load %arg2[%c16_128] : memref<81xf32, #tpu.memory_space<smem>>
    %174 = vector.extract_strided_slice %166 {offsets = [0, 0], sizes = [16, 16], strides = [1, 1]} : vector<16x128xf32> to vector<16x16xf32>
    %175 = vector.broadcast %173 : f32 to vector<16x16xf32>
    %176 = arith.mulf %174, %175 : vector<16x16xf32>
    %177 = arith.addf %172, %176 : vector<16x16xf32>
    %c17 = arith.constant 17 : index
    %178 = memref.load %arg2[%c17] : memref<81xf32, #tpu.memory_space<smem>>
    %c127_i32_129 = arith.constant 127 : i32
    %179 = tpu.dynamic_rotate %166 by %c127_i32_129 dim 1 : vector<16x128xf32>, i32 -> vector<16x128xf32>
    %180 = vector.extract_strided_slice %179 {offsets = [0, 0], sizes = [16, 16], strides = [1, 1]} : vector<16x128xf32> to vector<16x16xf32>
    %181 = vector.broadcast %178 : f32 to vector<16x16xf32>
    %182 = arith.mulf %180, %181 : vector<16x16xf32>
    %183 = arith.addf %177, %182 : vector<16x16xf32>
    %c0_130 = arith.constant 0 : index
    %c2_131 = arith.constant 2 : index
    %c7_132 = arith.constant 7 : index
    %c0_133 = arith.constant 0 : index
    %184 = vector.load %arg13[%c0_130, %c2_131, %c7_132, %c0_133] : memref<2x3x26x128xf32, #tpu.memory_space<vmem>>, vector<1x1x16x128xf32>
    %185 = vector.shape_cast %184 : vector<1x1x16x128xf32> to vector<16x128xf32>
    %c18 = arith.constant 18 : index
    %186 = memref.load %arg2[%c18] : memref<81xf32, #tpu.memory_space<smem>>
    %c1_i32_134 = arith.constant 1 : i32
    %187 = tpu.dynamic_rotate %185 by %c1_i32_134 dim 1 : vector<16x128xf32>, i32 -> vector<16x128xf32>
    %188 = vector.extract_strided_slice %187 {offsets = [0, 0], sizes = [16, 16], strides = [1, 1]} : vector<16x128xf32> to vector<16x16xf32>
    %189 = vector.broadcast %186 : f32 to vector<16x16xf32>
    %190 = arith.mulf %188, %189 : vector<16x16xf32>
    %191 = arith.addf %183, %190 : vector<16x16xf32>
    %c19 = arith.constant 19 : index
    %192 = memref.load %arg2[%c19] : memref<81xf32, #tpu.memory_space<smem>>
    %193 = vector.extract_strided_slice %185 {offsets = [0, 0], sizes = [16, 16], strides = [1, 1]} : vector<16x128xf32> to vector<16x16xf32>
    %194 = vector.broadcast %192 : f32 to vector<16x16xf32>
    %195 = arith.mulf %193, %194 : vector<16x16xf32>
    %196 = arith.addf %191, %195 : vector<16x16xf32>
    %c20 = arith.constant 20 : index
    %197 = memref.load %arg2[%c20] : memref<81xf32, #tpu.memory_space<smem>>
    %c127_i32_135 = arith.constant 127 : i32
    %198 = tpu.dynamic_rotate %185 by %c127_i32_135 dim 1 : vector<16x128xf32>, i32 -> vector<16x128xf32>
    %199 = vector.extract_strided_slice %198 {offsets = [0, 0], sizes = [16, 16], strides = [1, 1]} : vector<16x128xf32> to vector<16x16xf32>
    %200 = vector.broadcast %197 : f32 to vector<16x16xf32>
    %201 = arith.mulf %199, %200 : vector<16x16xf32>
    %202 = arith.addf %196, %201 : vector<16x16xf32>
    %c0_136 = arith.constant 0 : index
    %c2_137 = arith.constant 2 : index
    %c8_138 = arith.constant 8 : index
    %c0_139 = arith.constant 0 : index
    %203 = vector.load %arg13[%c0_136, %c2_137, %c8_138, %c0_139] : memref<2x3x26x128xf32, #tpu.memory_space<vmem>>, vector<1x1x16x128xf32>
    %204 = vector.shape_cast %203 : vector<1x1x16x128xf32> to vector<16x128xf32>
    %c21 = arith.constant 21 : index
    %205 = memref.load %arg2[%c21] : memref<81xf32, #tpu.memory_space<smem>>
    %c1_i32_140 = arith.constant 1 : i32
    %206 = tpu.dynamic_rotate %204 by %c1_i32_140 dim 1 : vector<16x128xf32>, i32 -> vector<16x128xf32>
    %207 = vector.extract_strided_slice %206 {offsets = [0, 0], sizes = [16, 16], strides = [1, 1]} : vector<16x128xf32> to vector<16x16xf32>
    %208 = vector.broadcast %205 : f32 to vector<16x16xf32>
    %209 = arith.mulf %207, %208 : vector<16x16xf32>
    %210 = arith.addf %202, %209 : vector<16x16xf32>
    %c22 = arith.constant 22 : index
    %211 = memref.load %arg2[%c22] : memref<81xf32, #tpu.memory_space<smem>>
    %212 = vector.extract_strided_slice %204 {offsets = [0, 0], sizes = [16, 16], strides = [1, 1]} : vector<16x128xf32> to vector<16x16xf32>
    %213 = vector.broadcast %211 : f32 to vector<16x16xf32>
    %214 = arith.mulf %212, %213 : vector<16x16xf32>
    %215 = arith.addf %210, %214 : vector<16x16xf32>
    %c23 = arith.constant 23 : index
    %216 = memref.load %arg2[%c23] : memref<81xf32, #tpu.memory_space<smem>>
    %c127_i32_141 = arith.constant 127 : i32
    %217 = tpu.dynamic_rotate %204 by %c127_i32_141 dim 1 : vector<16x128xf32>, i32 -> vector<16x128xf32>
    %218 = vector.extract_strided_slice %217 {offsets = [0, 0], sizes = [16, 16], strides = [1, 1]} : vector<16x128xf32> to vector<16x16xf32>
    %219 = vector.broadcast %216 : f32 to vector<16x16xf32>
    %220 = arith.mulf %218, %219 : vector<16x16xf32>
    %221 = arith.addf %215, %220 : vector<16x16xf32>
    %c0_142 = arith.constant 0 : index
    %c2_143 = arith.constant 2 : index
    %c9_144 = arith.constant 9 : index
    %c0_145 = arith.constant 0 : index
    %222 = vector.load %arg13[%c0_142, %c2_143, %c9_144, %c0_145] : memref<2x3x26x128xf32, #tpu.memory_space<vmem>>, vector<1x1x16x128xf32>
    %223 = vector.shape_cast %222 : vector<1x1x16x128xf32> to vector<16x128xf32>
    %c24_146 = arith.constant 24 : index
    %224 = memref.load %arg2[%c24_146] : memref<81xf32, #tpu.memory_space<smem>>
    %c1_i32_147 = arith.constant 1 : i32
    %225 = tpu.dynamic_rotate %223 by %c1_i32_147 dim 1 : vector<16x128xf32>, i32 -> vector<16x128xf32>
    %226 = vector.extract_strided_slice %225 {offsets = [0, 0], sizes = [16, 16], strides = [1, 1]} : vector<16x128xf32> to vector<16x16xf32>
    %227 = vector.broadcast %224 : f32 to vector<16x16xf32>
    %228 = arith.mulf %226, %227 : vector<16x16xf32>
    %229 = arith.addf %221, %228 : vector<16x16xf32>
    %c25 = arith.constant 25 : index
    %230 = memref.load %arg2[%c25] : memref<81xf32, #tpu.memory_space<smem>>
    %231 = vector.extract_strided_slice %223 {offsets = [0, 0], sizes = [16, 16], strides = [1, 1]} : vector<16x128xf32> to vector<16x16xf32>
    %232 = vector.broadcast %230 : f32 to vector<16x16xf32>
    %233 = arith.mulf %231, %232 : vector<16x16xf32>
    %234 = arith.addf %229, %233 : vector<16x16xf32>
    %c26 = arith.constant 26 : index
    %235 = memref.load %arg2[%c26] : memref<81xf32, #tpu.memory_space<smem>>
    %c127_i32_148 = arith.constant 127 : i32
    %236 = tpu.dynamic_rotate %223 by %c127_i32_148 dim 1 : vector<16x128xf32>, i32 -> vector<16x128xf32>
    %237 = vector.extract_strided_slice %236 {offsets = [0, 0], sizes = [16, 16], strides = [1, 1]} : vector<16x128xf32> to vector<16x16xf32>
    %238 = vector.broadcast %235 : f32 to vector<16x16xf32>
    %239 = arith.mulf %237, %238 : vector<16x16xf32>
    %240 = arith.addf %234, %239 : vector<16x16xf32>
    %c0_149 = arith.constant 0 : index
    %241 = memref.load %arg3[%c0_149] : memref<3xf32, #tpu.memory_space<smem>>
    %242 = vector.broadcast %241 : f32 to vector<16x16xf32>
    %243 = arith.addf %240, %242 : vector<16x16xf32>
    %c0_150 = arith.constant 0 : index
    %c0_151 = arith.constant 0 : index
    %c0_152 = arith.constant 0 : index
    %244 = vector.load %arg14[%c0_150, %c0_151, %c0_152] : memref<3x16x128xf32, #tpu.memory_space<vmem>>, vector<1x16x16xf32>
    %245 = vector.shape_cast %244 : vector<1x16x16xf32> to vector<16x16xf32>
    %246 = vector.shape_cast %243 : vector<16x16xf32> to vector<1x16x16xf32>
    tpu.vector_store %arg14[%c0_150, %c0_151, %c0_152], %246 {strides = array<i32>} : memref<3x16x128xf32, #tpu.memory_space<vmem>>, vector<1x16x16xf32>,
    %c0_153 = arith.constant 0 : index
    %c0_154 = arith.constant 0 : index
    %c7_155 = arith.constant 7 : index
    %c0_156 = arith.constant 0 : index
    %247 = vector.load %arg13[%c0_153, %c0_154, %c7_155, %c0_156] : memref<2x3x26x128xf32, #tpu.memory_space<vmem>>, vector<1x1x16x128xf32>
    %248 = vector.shape_cast %247 : vector<1x1x16x128xf32> to vector<16x128xf32>
    %c27 = arith.constant 27 : index
    %249 = memref.load %arg2[%c27] : memref<81xf32, #tpu.memory_space<smem>>
    %c1_i32_157 = arith.constant 1 : i32
    %250 = tpu.dynamic_rotate %248 by %c1_i32_157 dim 1 : vector<16x128xf32>, i32 -> vector<16x128xf32>
    %251 = vector.extract_strided_slice %250 {offsets = [0, 0], sizes = [16, 16], strides = [1, 1]} : vector<16x128xf32> to vector<16x16xf32>
    %252 = vector.broadcast %249 : f32 to vector<16x16xf32>
    %253 = arith.mulf %251, %252 : vector<16x16xf32>
    %c28 = arith.constant 28 : index
    %254 = memref.load %arg2[%c28] : memref<81xf32, #tpu.memory_space<smem>>
    %255 = vector.extract_strided_slice %248 {offsets = [0, 0], sizes = [16, 16], strides = [1, 1]} : vector<16x128xf32> to vector<16x16xf32>
    %256 = vector.broadcast %254 : f32 to vector<16x16xf32>
    %257 = arith.mulf %255, %256 : vector<16x16xf32>
    %258 = arith.addf %253, %257 : vector<16x16xf32>
    %c29 = arith.constant 29 : index
    %259 = memref.load %arg2[%c29] : memref<81xf32, #tpu.memory_space<smem>>
    %c127_i32_158 = arith.constant 127 : i32
    %260 = tpu.dynamic_rotate %248 by %c127_i32_158 dim 1 : vector<16x128xf32>, i32 -> vector<16x128xf32>
    %261 = vector.extract_strided_slice %260 {offsets = [0, 0], sizes = [16, 16], strides = [1, 1]} : vector<16x128xf32> to vector<16x16xf32>
    %262 = vector.broadcast %259 : f32 to vector<16x16xf32>
    %263 = arith.mulf %261, %262 : vector<16x16xf32>
    %264 = arith.addf %258, %263 : vector<16x16xf32>
    %c0_159 = arith.constant 0 : index
    %c0_160 = arith.constant 0 : index
    %c8_161 = arith.constant 8 : index
    %c0_162 = arith.constant 0 : index
    %265 = vector.load %arg13[%c0_159, %c0_160, %c8_161, %c0_162] : memref<2x3x26x128xf32, #tpu.memory_space<vmem>>, vector<1x1x16x128xf32>
    %266 = vector.shape_cast %265 : vector<1x1x16x128xf32> to vector<16x128xf32>
    %c30 = arith.constant 30 : index
    %267 = memref.load %arg2[%c30] : memref<81xf32, #tpu.memory_space<smem>>
    %c1_i32_163 = arith.constant 1 : i32
    %268 = tpu.dynamic_rotate %266 by %c1_i32_163 dim 1 : vector<16x128xf32>, i32 -> vector<16x128xf32>
    %269 = vector.extract_strided_slice %268 {offsets = [0, 0], sizes = [16, 16], strides = [1, 1]} : vector<16x128xf32> to vector<16x16xf32>
    %270 = vector.broadcast %267 : f32 to vector<16x16xf32>
    %271 = arith.mulf %269, %270 : vector<16x16xf32>
    %272 = arith.addf %264, %271 : vector<16x16xf32>
    %c31 = arith.constant 31 : index
    %273 = memref.load %arg2[%c31] : memref<81xf32, #tpu.memory_space<smem>>
    %274 = vector.extract_strided_slice %266 {offsets = [0, 0], sizes = [16, 16], strides = [1, 1]} : vector<16x128xf32> to vector<16x16xf32>
    %275 = vector.broadcast %273 : f32 to vector<16x16xf32>
    %276 = arith.mulf %274, %275 : vector<16x16xf32>
    %277 = arith.addf %272, %276 : vector<16x16xf32>
    %c32 = arith.constant 32 : index
    %278 = memref.load %arg2[%c32] : memref<81xf32, #tpu.memory_space<smem>>
    %c127_i32_164 = arith.constant 127 : i32
    %279 = tpu.dynamic_rotate %266 by %c127_i32_164 dim 1 : vector<16x128xf32>, i32 -> vector<16x128xf32>
    %280 = vector.extract_strided_slice %279 {offsets = [0, 0], sizes = [16, 16], strides = [1, 1]} : vector<16x128xf32> to vector<16x16xf32>
    %281 = vector.broadcast %278 : f32 to vector<16x16xf32>
    %282 = arith.mulf %280, %281 : vector<16x16xf32>
    %283 = arith.addf %277, %282 : vector<16x16xf32>
    %c0_165 = arith.constant 0 : index
    %c0_166 = arith.constant 0 : index
    %c9_167 = arith.constant 9 : index
    %c0_168 = arith.constant 0 : index
    %284 = vector.load %arg13[%c0_165, %c0_166, %c9_167, %c0_168] : memref<2x3x26x128xf32, #tpu.memory_space<vmem>>, vector<1x1x16x128xf32>
    %285 = vector.shape_cast %284 : vector<1x1x16x128xf32> to vector<16x128xf32>
    %c33 = arith.constant 33 : index
    %286 = memref.load %arg2[%c33] : memref<81xf32, #tpu.memory_space<smem>>
    %c1_i32_169 = arith.constant 1 : i32
    %287 = tpu.dynamic_rotate %285 by %c1_i32_169 dim 1 : vector<16x128xf32>, i32 -> vector<16x128xf32>
    %288 = vector.extract_strided_slice %287 {offsets = [0, 0], sizes = [16, 16], strides = [1, 1]} : vector<16x128xf32> to vector<16x16xf32>
    %289 = vector.broadcast %286 : f32 to vector<16x16xf32>
    %290 = arith.mulf %288, %289 : vector<16x16xf32>
    %291 = arith.addf %283, %290 : vector<16x16xf32>
    %c34 = arith.constant 34 : index
    %292 = memref.load %arg2[%c34] : memref<81xf32, #tpu.memory_space<smem>>
    %293 = vector.extract_strided_slice %285 {offsets = [0, 0], sizes = [16, 16], strides = [1, 1]} : vector<16x128xf32> to vector<16x16xf32>
    %294 = vector.broadcast %292 : f32 to vector<16x16xf32>
    %295 = arith.mulf %293, %294 : vector<16x16xf32>
    %296 = arith.addf %291, %295 : vector<16x16xf32>
    %c35 = arith.constant 35 : index
    %297 = memref.load %arg2[%c35] : memref<81xf32, #tpu.memory_space<smem>>
    %c127_i32_170 = arith.constant 127 : i32
    %298 = tpu.dynamic_rotate %285 by %c127_i32_170 dim 1 : vector<16x128xf32>, i32 -> vector<16x128xf32>
    %299 = vector.extract_strided_slice %298 {offsets = [0, 0], sizes = [16, 16], strides = [1, 1]} : vector<16x128xf32> to vector<16x16xf32>
    %300 = vector.broadcast %297 : f32 to vector<16x16xf32>
    %301 = arith.mulf %299, %300 : vector<16x16xf32>
    %302 = arith.addf %296, %301 : vector<16x16xf32>
    %c0_171 = arith.constant 0 : index
    %c1_172 = arith.constant 1 : index
    %c7_173 = arith.constant 7 : index
    %c0_174 = arith.constant 0 : index
    %303 = vector.load %arg13[%c0_171, %c1_172, %c7_173, %c0_174] : memref<2x3x26x128xf32, #tpu.memory_space<vmem>>, vector<1x1x16x128xf32>
    %304 = vector.shape_cast %303 : vector<1x1x16x128xf32> to vector<16x128xf32>
    %c36 = arith.constant 36 : index
    %305 = memref.load %arg2[%c36] : memref<81xf32, #tpu.memory_space<smem>>
    %c1_i32_175 = arith.constant 1 : i32
    %306 = tpu.dynamic_rotate %304 by %c1_i32_175 dim 1 : vector<16x128xf32>, i32 -> vector<16x128xf32>
    %307 = vector.extract_strided_slice %306 {offsets = [0, 0], sizes = [16, 16], strides = [1, 1]} : vector<16x128xf32> to vector<16x16xf32>
    %308 = vector.broadcast %305 : f32 to vector<16x16xf32>
    %309 = arith.mulf %307, %308 : vector<16x16xf32>
    %310 = arith.addf %302, %309 : vector<16x16xf32>
    %c37 = arith.constant 37 : index
    %311 = memref.load %arg2[%c37] : memref<81xf32, #tpu.memory_space<smem>>
    %312 = vector.extract_strided_slice %304 {offsets = [0, 0], sizes = [16, 16], strides = [1, 1]} : vector<16x128xf32> to vector<16x16xf32>
    %313 = vector.broadcast %311 : f32 to vector<16x16xf32>
    %314 = arith.mulf %312, %313 : vector<16x16xf32>
    %315 = arith.addf %310, %314 : vector<16x16xf32>
    %c38 = arith.constant 38 : index
    %316 = memref.load %arg2[%c38] : memref<81xf32, #tpu.memory_space<smem>>
    %c127_i32_176 = arith.constant 127 : i32
    %317 = tpu.dynamic_rotate %304 by %c127_i32_176 dim 1 : vector<16x128xf32>, i32 -> vector<16x128xf32>
    %318 = vector.extract_strided_slice %317 {offsets = [0, 0], sizes = [16, 16], strides = [1, 1]} : vector<16x128xf32> to vector<16x16xf32>
    %319 = vector.broadcast %316 : f32 to vector<16x16xf32>
    %320 = arith.mulf %318, %319 : vector<16x16xf32>
    %321 = arith.addf %315, %320 : vector<16x16xf32>
    %c0_177 = arith.constant 0 : index
    %c1_178 = arith.constant 1 : index
    %c8_179 = arith.constant 8 : index
    %c0_180 = arith.constant 0 : index
    %322 = vector.load %arg13[%c0_177, %c1_178, %c8_179, %c0_180] : memref<2x3x26x128xf32, #tpu.memory_space<vmem>>, vector<1x1x16x128xf32>
    %323 = vector.shape_cast %322 : vector<1x1x16x128xf32> to vector<16x128xf32>
    %c39 = arith.constant 39 : index
    %324 = memref.load %arg2[%c39] : memref<81xf32, #tpu.memory_space<smem>>
    %c1_i32_181 = arith.constant 1 : i32
    %325 = tpu.dynamic_rotate %323 by %c1_i32_181 dim 1 : vector<16x128xf32>, i32 -> vector<16x128xf32>
    %326 = vector.extract_strided_slice %325 {offsets = [0, 0], sizes = [16, 16], strides = [1, 1]} : vector<16x128xf32> to vector<16x16xf32>
    %327 = vector.broadcast %324 : f32 to vector<16x16xf32>
    %328 = arith.mulf %326, %327 : vector<16x16xf32>
    %329 = arith.addf %321, %328 : vector<16x16xf32>
    %c40 = arith.constant 40 : index
    %330 = memref.load %arg2[%c40] : memref<81xf32, #tpu.memory_space<smem>>
    %331 = vector.extract_strided_slice %323 {offsets = [0, 0], sizes = [16, 16], strides = [1, 1]} : vector<16x128xf32> to vector<16x16xf32>
    %332 = vector.broadcast %330 : f32 to vector<16x16xf32>
    %333 = arith.mulf %331, %332 : vector<16x16xf32>
    %334 = arith.addf %329, %333 : vector<16x16xf32>
    %c41 = arith.constant 41 : index
    %335 = memref.load %arg2[%c41] : memref<81xf32, #tpu.memory_space<smem>>
    %c127_i32_182 = arith.constant 127 : i32
    %336 = tpu.dynamic_rotate %323 by %c127_i32_182 dim 1 : vector<16x128xf32>, i32 -> vector<16x128xf32>
    %337 = vector.extract_strided_slice %336 {offsets = [0, 0], sizes = [16, 16], strides = [1, 1]} : vector<16x128xf32> to vector<16x16xf32>
    %338 = vector.broadcast %335 : f32 to vector<16x16xf32>
    %339 = arith.mulf %337, %338 : vector<16x16xf32>
    %340 = arith.addf %334, %339 : vector<16x16xf32>
    %c0_183 = arith.constant 0 : index
    %c1_184 = arith.constant 1 : index
    %c9_185 = arith.constant 9 : index
    %c0_186 = arith.constant 0 : index
    %341 = vector.load %arg13[%c0_183, %c1_184, %c9_185, %c0_186] : memref<2x3x26x128xf32, #tpu.memory_space<vmem>>, vector<1x1x16x128xf32>
    %342 = vector.shape_cast %341 : vector<1x1x16x128xf32> to vector<16x128xf32>
    %c42 = arith.constant 42 : index
    %343 = memref.load %arg2[%c42] : memref<81xf32, #tpu.memory_space<smem>>
    %c1_i32_187 = arith.constant 1 : i32
    %344 = tpu.dynamic_rotate %342 by %c1_i32_187 dim 1 : vector<16x128xf32>, i32 -> vector<16x128xf32>
    %345 = vector.extract_strided_slice %344 {offsets = [0, 0], sizes = [16, 16], strides = [1, 1]} : vector<16x128xf32> to vector<16x16xf32>
    %346 = vector.broadcast %343 : f32 to vector<16x16xf32>
    %347 = arith.mulf %345, %346 : vector<16x16xf32>
    %348 = arith.addf %340, %347 : vector<16x16xf32>
    %c43 = arith.constant 43 : index
    %349 = memref.load %arg2[%c43] : memref<81xf32, #tpu.memory_space<smem>>
    %350 = vector.extract_strided_slice %342 {offsets = [0, 0], sizes = [16, 16], strides = [1, 1]} : vector<16x128xf32> to vector<16x16xf32>
    %351 = vector.broadcast %349 : f32 to vector<16x16xf32>
    %352 = arith.mulf %350, %351 : vector<16x16xf32>
    %353 = arith.addf %348, %352 : vector<16x16xf32>
    %c44 = arith.constant 44 : index
    %354 = memref.load %arg2[%c44] : memref<81xf32, #tpu.memory_space<smem>>
    %c127_i32_188 = arith.constant 127 : i32
    %355 = tpu.dynamic_rotate %342 by %c127_i32_188 dim 1 : vector<16x128xf32>, i32 -> vector<16x128xf32>
    %356 = vector.extract_strided_slice %355 {offsets = [0, 0], sizes = [16, 16], strides = [1, 1]} : vector<16x128xf32> to vector<16x16xf32>
    %357 = vector.broadcast %354 : f32 to vector<16x16xf32>
    %358 = arith.mulf %356, %357 : vector<16x16xf32>
    %359 = arith.addf %353, %358 : vector<16x16xf32>
    %c0_189 = arith.constant 0 : index
    %c2_190 = arith.constant 2 : index
    %c7_191 = arith.constant 7 : index
    %c0_192 = arith.constant 0 : index
    %360 = vector.load %arg13[%c0_189, %c2_190, %c7_191, %c0_192] : memref<2x3x26x128xf32, #tpu.memory_space<vmem>>, vector<1x1x16x128xf32>
    %361 = vector.shape_cast %360 : vector<1x1x16x128xf32> to vector<16x128xf32>
    %c45 = arith.constant 45 : index
    %362 = memref.load %arg2[%c45] : memref<81xf32, #tpu.memory_space<smem>>
    %c1_i32_193 = arith.constant 1 : i32
    %363 = tpu.dynamic_rotate %361 by %c1_i32_193 dim 1 : vector<16x128xf32>, i32 -> vector<16x128xf32>
    %364 = vector.extract_strided_slice %363 {offsets = [0, 0], sizes = [16, 16], strides = [1, 1]} : vector<16x128xf32> to vector<16x16xf32>
    %365 = vector.broadcast %362 : f32 to vector<16x16xf32>
    %366 = arith.mulf %364, %365 : vector<16x16xf32>
    %367 = arith.addf %359, %366 : vector<16x16xf32>
    %c46 = arith.constant 46 : index
    %368 = memref.load %arg2[%c46] : memref<81xf32, #tpu.memory_space<smem>>
    %369 = vector.extract_strided_slice %361 {offsets = [0, 0], sizes = [16, 16], strides = [1, 1]} : vector<16x128xf32> to vector<16x16xf32>
    %370 = vector.broadcast %368 : f32 to vector<16x16xf32>
    %371 = arith.mulf %369, %370 : vector<16x16xf32>
    %372 = arith.addf %367, %371 : vector<16x16xf32>
    %c47 = arith.constant 47 : index
    %373 = memref.load %arg2[%c47] : memref<81xf32, #tpu.memory_space<smem>>
    %c127_i32_194 = arith.constant 127 : i32
    %374 = tpu.dynamic_rotate %361 by %c127_i32_194 dim 1 : vector<16x128xf32>, i32 -> vector<16x128xf32>
    %375 = vector.extract_strided_slice %374 {offsets = [0, 0], sizes = [16, 16], strides = [1, 1]} : vector<16x128xf32> to vector<16x16xf32>
    %376 = vector.broadcast %373 : f32 to vector<16x16xf32>
    %377 = arith.mulf %375, %376 : vector<16x16xf32>
    %378 = arith.addf %372, %377 : vector<16x16xf32>
    %c0_195 = arith.constant 0 : index
    %c2_196 = arith.constant 2 : index
    %c8_197 = arith.constant 8 : index
    %c0_198 = arith.constant 0 : index
    %379 = vector.load %arg13[%c0_195, %c2_196, %c8_197, %c0_198] : memref<2x3x26x128xf32, #tpu.memory_space<vmem>>, vector<1x1x16x128xf32>
    %380 = vector.shape_cast %379 : vector<1x1x16x128xf32> to vector<16x128xf32>
    %c48 = arith.constant 48 : index
    %381 = memref.load %arg2[%c48] : memref<81xf32, #tpu.memory_space<smem>>
    %c1_i32_199 = arith.constant 1 : i32
    %382 = tpu.dynamic_rotate %380 by %c1_i32_199 dim 1 : vector<16x128xf32>, i32 -> vector<16x128xf32>
    %383 = vector.extract_strided_slice %382 {offsets = [0, 0], sizes = [16, 16], strides = [1, 1]} : vector<16x128xf32> to vector<16x16xf32>
    %384 = vector.broadcast %381 : f32 to vector<16x16xf32>
    %385 = arith.mulf %383, %384 : vector<16x16xf32>
    %386 = arith.addf %378, %385 : vector<16x16xf32>
    %c49 = arith.constant 49 : index
    %387 = memref.load %arg2[%c49] : memref<81xf32, #tpu.memory_space<smem>>
    %388 = vector.extract_strided_slice %380 {offsets = [0, 0], sizes = [16, 16], strides = [1, 1]} : vector<16x128xf32> to vector<16x16xf32>
    %389 = vector.broadcast %387 : f32 to vector<16x16xf32>
    %390 = arith.mulf %388, %389 : vector<16x16xf32>
    %391 = arith.addf %386, %390 : vector<16x16xf32>
    %c50 = arith.constant 50 : index
    %392 = memref.load %arg2[%c50] : memref<81xf32, #tpu.memory_space<smem>>
    %c127_i32_200 = arith.constant 127 : i32
    %393 = tpu.dynamic_rotate %380 by %c127_i32_200 dim 1 : vector<16x128xf32>, i32 -> vector<16x128xf32>
    %394 = vector.extract_strided_slice %393 {offsets = [0, 0], sizes = [16, 16], strides = [1, 1]} : vector<16x128xf32> to vector<16x16xf32>
    %395 = vector.broadcast %392 : f32 to vector<16x16xf32>
    %396 = arith.mulf %394, %395 : vector<16x16xf32>
    %397 = arith.addf %391, %396 : vector<16x16xf32>
    %c0_201 = arith.constant 0 : index
    %c2_202 = arith.constant 2 : index
    %c9_203 = arith.constant 9 : index
    %c0_204 = arith.constant 0 : index
    %398 = vector.load %arg13[%c0_201, %c2_202, %c9_203, %c0_204] : memref<2x3x26x128xf32, #tpu.memory_space<vmem>>, vector<1x1x16x128xf32>
    %399 = vector.shape_cast %398 : vector<1x1x16x128xf32> to vector<16x128xf32>
    %c51 = arith.constant 51 : index
    %400 = memref.load %arg2[%c51] : memref<81xf32, #tpu.memory_space<smem>>
    %c1_i32_205 = arith.constant 1 : i32
    %401 = tpu.dynamic_rotate %399 by %c1_i32_205 dim 1 : vector<16x128xf32>, i32 -> vector<16x128xf32>
    %402 = vector.extract_strided_slice %401 {offsets = [0, 0], sizes = [16, 16], strides = [1, 1]} : vector<16x128xf32> to vector<16x16xf32>
    %403 = vector.broadcast %400 : f32 to vector<16x16xf32>
    %404 = arith.mulf %402, %403 : vector<16x16xf32>
    %405 = arith.addf %397, %404 : vector<16x16xf32>
    %c52 = arith.constant 52 : index
    %406 = memref.load %arg2[%c52] : memref<81xf32, #tpu.memory_space<smem>>
    %407 = vector.extract_strided_slice %399 {offsets = [0, 0], sizes = [16, 16], strides = [1, 1]} : vector<16x128xf32> to vector<16x16xf32>
    %408 = vector.broadcast %406 : f32 to vector<16x16xf32>
    %409 = arith.mulf %407, %408 : vector<16x16xf32>
    %410 = arith.addf %405, %409 : vector<16x16xf32>
    %c53 = arith.constant 53 : index
    %411 = memref.load %arg2[%c53] : memref<81xf32, #tpu.memory_space<smem>>
    %c127_i32_206 = arith.constant 127 : i32
    %412 = tpu.dynamic_rotate %399 by %c127_i32_206 dim 1 : vector<16x128xf32>, i32 -> vector<16x128xf32>
    %413 = vector.extract_strided_slice %412 {offsets = [0, 0], sizes = [16, 16], strides = [1, 1]} : vector<16x128xf32> to vector<16x16xf32>
    %414 = vector.broadcast %411 : f32 to vector<16x16xf32>
    %415 = arith.mulf %413, %414 : vector<16x16xf32>
    %416 = arith.addf %410, %415 : vector<16x16xf32>
    %c1_207 = arith.constant 1 : index
    %417 = memref.load %arg3[%c1_207] : memref<3xf32, #tpu.memory_space<smem>>
    %418 = vector.broadcast %417 : f32 to vector<16x16xf32>
    %419 = arith.addf %416, %418 : vector<16x16xf32>
    %c1_208 = arith.constant 1 : index
    %c0_209 = arith.constant 0 : index
    %c0_210 = arith.constant 0 : index
    %420 = vector.load %arg14[%c1_208, %c0_209, %c0_210] : memref<3x16x128xf32, #tpu.memory_space<vmem>>, vector<1x16x16xf32>
    %421 = vector.shape_cast %420 : vector<1x16x16xf32> to vector<16x16xf32>
    %422 = vector.shape_cast %419 : vector<16x16xf32> to vector<1x16x16xf32>
    tpu.vector_store %arg14[%c1_208, %c0_209, %c0_210], %422 {strides = array<i32>} : memref<3x16x128xf32, #tpu.memory_space<vmem>>, vector<1x16x16xf32>,
    %c0_211 = arith.constant 0 : index
    %c0_212 = arith.constant 0 : index
    %c7_213 = arith.constant 7 : index
    %c0_214 = arith.constant 0 : index
    %423 = vector.load %arg13[%c0_211, %c0_212, %c7_213, %c0_214] : memref<2x3x26x128xf32, #tpu.memory_space<vmem>>, vector<1x1x16x128xf32>
    %424 = vector.shape_cast %423 : vector<1x1x16x128xf32> to vector<16x128xf32>
    %c54 = arith.constant 54 : index
    %425 = memref.load %arg2[%c54] : memref<81xf32, #tpu.memory_space<smem>>
    %c1_i32_215 = arith.constant 1 : i32
    %426 = tpu.dynamic_rotate %424 by %c1_i32_215 dim 1 : vector<16x128xf32>, i32 -> vector<16x128xf32>
    %427 = vector.extract_strided_slice %426 {offsets = [0, 0], sizes = [16, 16], strides = [1, 1]} : vector<16x128xf32> to vector<16x16xf32>
    %428 = vector.broadcast %425 : f32 to vector<16x16xf32>
    %429 = arith.mulf %427, %428 : vector<16x16xf32>
    %c55 = arith.constant 55 : index
    %430 = memref.load %arg2[%c55] : memref<81xf32, #tpu.memory_space<smem>>
    %431 = vector.extract_strided_slice %424 {offsets = [0, 0], sizes = [16, 16], strides = [1, 1]} : vector<16x128xf32> to vector<16x16xf32>
    %432 = vector.broadcast %430 : f32 to vector<16x16xf32>
    %433 = arith.mulf %431, %432 : vector<16x16xf32>
    %434 = arith.addf %429, %433 : vector<16x16xf32>
    %c56 = arith.constant 56 : index
    %435 = memref.load %arg2[%c56] : memref<81xf32, #tpu.memory_space<smem>>
    %c127_i32_216 = arith.constant 127 : i32
    %436 = tpu.dynamic_rotate %424 by %c127_i32_216 dim 1 : vector<16x128xf32>, i32 -> vector<16x128xf32>
    %437 = vector.extract_strided_slice %436 {offsets = [0, 0], sizes = [16, 16], strides = [1, 1]} : vector<16x128xf32> to vector<16x16xf32>
    %438 = vector.broadcast %435 : f32 to vector<16x16xf32>
    %439 = arith.mulf %437, %438 : vector<16x16xf32>
    %440 = arith.addf %434, %439 : vector<16x16xf32>
    %c0_217 = arith.constant 0 : index
    %c0_218 = arith.constant 0 : index
    %c8_219 = arith.constant 8 : index
    %c0_220 = arith.constant 0 : index
    %441 = vector.load %arg13[%c0_217, %c0_218, %c8_219, %c0_220] : memref<2x3x26x128xf32, #tpu.memory_space<vmem>>, vector<1x1x16x128xf32>
    %442 = vector.shape_cast %441 : vector<1x1x16x128xf32> to vector<16x128xf32>
    %c57 = arith.constant 57 : index
    %443 = memref.load %arg2[%c57] : memref<81xf32, #tpu.memory_space<smem>>
    %c1_i32_221 = arith.constant 1 : i32
    %444 = tpu.dynamic_rotate %442 by %c1_i32_221 dim 1 : vector<16x128xf32>, i32 -> vector<16x128xf32>
    %445 = vector.extract_strided_slice %444 {offsets = [0, 0], sizes = [16, 16], strides = [1, 1]} : vector<16x128xf32> to vector<16x16xf32>
    %446 = vector.broadcast %443 : f32 to vector<16x16xf32>
    %447 = arith.mulf %445, %446 : vector<16x16xf32>
    %448 = arith.addf %440, %447 : vector<16x16xf32>
    %c58 = arith.constant 58 : index
    %449 = memref.load %arg2[%c58] : memref<81xf32, #tpu.memory_space<smem>>
    %450 = vector.extract_strided_slice %442 {offsets = [0, 0], sizes = [16, 16], strides = [1, 1]} : vector<16x128xf32> to vector<16x16xf32>
    %451 = vector.broadcast %449 : f32 to vector<16x16xf32>
    %452 = arith.mulf %450, %451 : vector<16x16xf32>
    %453 = arith.addf %448, %452 : vector<16x16xf32>
    %c59 = arith.constant 59 : index
    %454 = memref.load %arg2[%c59] : memref<81xf32, #tpu.memory_space<smem>>
    %c127_i32_222 = arith.constant 127 : i32
    %455 = tpu.dynamic_rotate %442 by %c127_i32_222 dim 1 : vector<16x128xf32>, i32 -> vector<16x128xf32>
    %456 = vector.extract_strided_slice %455 {offsets = [0, 0], sizes = [16, 16], strides = [1, 1]} : vector<16x128xf32> to vector<16x16xf32>
    %457 = vector.broadcast %454 : f32 to vector<16x16xf32>
    %458 = arith.mulf %456, %457 : vector<16x16xf32>
    %459 = arith.addf %453, %458 : vector<16x16xf32>
    %c0_223 = arith.constant 0 : index
    %c0_224 = arith.constant 0 : index
    %c9_225 = arith.constant 9 : index
    %c0_226 = arith.constant 0 : index
    %460 = vector.load %arg13[%c0_223, %c0_224, %c9_225, %c0_226] : memref<2x3x26x128xf32, #tpu.memory_space<vmem>>, vector<1x1x16x128xf32>
    %461 = vector.shape_cast %460 : vector<1x1x16x128xf32> to vector<16x128xf32>
    %c60 = arith.constant 60 : index
    %462 = memref.load %arg2[%c60] : memref<81xf32, #tpu.memory_space<smem>>
    %c1_i32_227 = arith.constant 1 : i32
    %463 = tpu.dynamic_rotate %461 by %c1_i32_227 dim 1 : vector<16x128xf32>, i32 -> vector<16x128xf32>
    %464 = vector.extract_strided_slice %463 {offsets = [0, 0], sizes = [16, 16], strides = [1, 1]} : vector<16x128xf32> to vector<16x16xf32>
    %465 = vector.broadcast %462 : f32 to vector<16x16xf32>
    %466 = arith.mulf %464, %465 : vector<16x16xf32>
    %467 = arith.addf %459, %466 : vector<16x16xf32>
    %c61 = arith.constant 61 : index
    %468 = memref.load %arg2[%c61] : memref<81xf32, #tpu.memory_space<smem>>
    %469 = vector.extract_strided_slice %461 {offsets = [0, 0], sizes = [16, 16], strides = [1, 1]} : vector<16x128xf32> to vector<16x16xf32>
    %470 = vector.broadcast %468 : f32 to vector<16x16xf32>
    %471 = arith.mulf %469, %470 : vector<16x16xf32>
    %472 = arith.addf %467, %471 : vector<16x16xf32>
    %c62 = arith.constant 62 : index
    %473 = memref.load %arg2[%c62] : memref<81xf32, #tpu.memory_space<smem>>
    %c127_i32_228 = arith.constant 127 : i32
    %474 = tpu.dynamic_rotate %461 by %c127_i32_228 dim 1 : vector<16x128xf32>, i32 -> vector<16x128xf32>
    %475 = vector.extract_strided_slice %474 {offsets = [0, 0], sizes = [16, 16], strides = [1, 1]} : vector<16x128xf32> to vector<16x16xf32>
    %476 = vector.broadcast %473 : f32 to vector<16x16xf32>
    %477 = arith.mulf %475, %476 : vector<16x16xf32>
    %478 = arith.addf %472, %477 : vector<16x16xf32>
    %c0_229 = arith.constant 0 : index
    %c1_230 = arith.constant 1 : index
    %c7_231 = arith.constant 7 : index
    %c0_232 = arith.constant 0 : index
    %479 = vector.load %arg13[%c0_229, %c1_230, %c7_231, %c0_232] : memref<2x3x26x128xf32, #tpu.memory_space<vmem>>, vector<1x1x16x128xf32>
    %480 = vector.shape_cast %479 : vector<1x1x16x128xf32> to vector<16x128xf32>
    %c63 = arith.constant 63 : index
    %481 = memref.load %arg2[%c63] : memref<81xf32, #tpu.memory_space<smem>>
    %c1_i32_233 = arith.constant 1 : i32
    %482 = tpu.dynamic_rotate %480 by %c1_i32_233 dim 1 : vector<16x128xf32>, i32 -> vector<16x128xf32>
    %483 = vector.extract_strided_slice %482 {offsets = [0, 0], sizes = [16, 16], strides = [1, 1]} : vector<16x128xf32> to vector<16x16xf32>
    %484 = vector.broadcast %481 : f32 to vector<16x16xf32>
    %485 = arith.mulf %483, %484 : vector<16x16xf32>
    %486 = arith.addf %478, %485 : vector<16x16xf32>
    %c64 = arith.constant 64 : index
    %487 = memref.load %arg2[%c64] : memref<81xf32, #tpu.memory_space<smem>>
    %488 = vector.extract_strided_slice %480 {offsets = [0, 0], sizes = [16, 16], strides = [1, 1]} : vector<16x128xf32> to vector<16x16xf32>
    %489 = vector.broadcast %487 : f32 to vector<16x16xf32>
    %490 = arith.mulf %488, %489 : vector<16x16xf32>
    %491 = arith.addf %486, %490 : vector<16x16xf32>
    %c65 = arith.constant 65 : index
    %492 = memref.load %arg2[%c65] : memref<81xf32, #tpu.memory_space<smem>>
    %c127_i32_234 = arith.constant 127 : i32
    %493 = tpu.dynamic_rotate %480 by %c127_i32_234 dim 1 : vector<16x128xf32>, i32 -> vector<16x128xf32>
    %494 = vector.extract_strided_slice %493 {offsets = [0, 0], sizes = [16, 16], strides = [1, 1]} : vector<16x128xf32> to vector<16x16xf32>
    %495 = vector.broadcast %492 : f32 to vector<16x16xf32>
    %496 = arith.mulf %494, %495 : vector<16x16xf32>
    %497 = arith.addf %491, %496 : vector<16x16xf32>
    %c0_235 = arith.constant 0 : index
    %c1_236 = arith.constant 1 : index
    %c8_237 = arith.constant 8 : index
    %c0_238 = arith.constant 0 : index
    %498 = vector.load %arg13[%c0_235, %c1_236, %c8_237, %c0_238] : memref<2x3x26x128xf32, #tpu.memory_space<vmem>>, vector<1x1x16x128xf32>
    %499 = vector.shape_cast %498 : vector<1x1x16x128xf32> to vector<16x128xf32>
    %c66 = arith.constant 66 : index
    %500 = memref.load %arg2[%c66] : memref<81xf32, #tpu.memory_space<smem>>
    %c1_i32_239 = arith.constant 1 : i32
    %501 = tpu.dynamic_rotate %499 by %c1_i32_239 dim 1 : vector<16x128xf32>, i32 -> vector<16x128xf32>
    %502 = vector.extract_strided_slice %501 {offsets = [0, 0], sizes = [16, 16], strides = [1, 1]} : vector<16x128xf32> to vector<16x16xf32>
    %503 = vector.broadcast %500 : f32 to vector<16x16xf32>
    %504 = arith.mulf %502, %503 : vector<16x16xf32>
    %505 = arith.addf %497, %504 : vector<16x16xf32>
    %c67 = arith.constant 67 : index
    %506 = memref.load %arg2[%c67] : memref<81xf32, #tpu.memory_space<smem>>
    %507 = vector.extract_strided_slice %499 {offsets = [0, 0], sizes = [16, 16], strides = [1, 1]} : vector<16x128xf32> to vector<16x16xf32>
    %508 = vector.broadcast %506 : f32 to vector<16x16xf32>
    %509 = arith.mulf %507, %508 : vector<16x16xf32>
    %510 = arith.addf %505, %509 : vector<16x16xf32>
    %c68 = arith.constant 68 : index
    %511 = memref.load %arg2[%c68] : memref<81xf32, #tpu.memory_space<smem>>
    %c127_i32_240 = arith.constant 127 : i32
    %512 = tpu.dynamic_rotate %499 by %c127_i32_240 dim 1 : vector<16x128xf32>, i32 -> vector<16x128xf32>
    %513 = vector.extract_strided_slice %512 {offsets = [0, 0], sizes = [16, 16], strides = [1, 1]} : vector<16x128xf32> to vector<16x16xf32>
    %514 = vector.broadcast %511 : f32 to vector<16x16xf32>
    %515 = arith.mulf %513, %514 : vector<16x16xf32>
    %516 = arith.addf %510, %515 : vector<16x16xf32>
    %c0_241 = arith.constant 0 : index
    %c1_242 = arith.constant 1 : index
    %c9_243 = arith.constant 9 : index
    %c0_244 = arith.constant 0 : index
    %517 = vector.load %arg13[%c0_241, %c1_242, %c9_243, %c0_244] : memref<2x3x26x128xf32, #tpu.memory_space<vmem>>, vector<1x1x16x128xf32>
    %518 = vector.shape_cast %517 : vector<1x1x16x128xf32> to vector<16x128xf32>
    %c69 = arith.constant 69 : index
    %519 = memref.load %arg2[%c69] : memref<81xf32, #tpu.memory_space<smem>>
    %c1_i32_245 = arith.constant 1 : i32
    %520 = tpu.dynamic_rotate %518 by %c1_i32_245 dim 1 : vector<16x128xf32>, i32 -> vector<16x128xf32>
    %521 = vector.extract_strided_slice %520 {offsets = [0, 0], sizes = [16, 16], strides = [1, 1]} : vector<16x128xf32> to vector<16x16xf32>
    %522 = vector.broadcast %519 : f32 to vector<16x16xf32>
    %523 = arith.mulf %521, %522 : vector<16x16xf32>
    %524 = arith.addf %516, %523 : vector<16x16xf32>
    %c70 = arith.constant 70 : index
    %525 = memref.load %arg2[%c70] : memref<81xf32, #tpu.memory_space<smem>>
    %526 = vector.extract_strided_slice %518 {offsets = [0, 0], sizes = [16, 16], strides = [1, 1]} : vector<16x128xf32> to vector<16x16xf32>
    %527 = vector.broadcast %525 : f32 to vector<16x16xf32>
    %528 = arith.mulf %526, %527 : vector<16x16xf32>
    %529 = arith.addf %524, %528 : vector<16x16xf32>
    %c71 = arith.constant 71 : index
    %530 = memref.load %arg2[%c71] : memref<81xf32, #tpu.memory_space<smem>>
    %c127_i32_246 = arith.constant 127 : i32
    %531 = tpu.dynamic_rotate %518 by %c127_i32_246 dim 1 : vector<16x128xf32>, i32 -> vector<16x128xf32>
    %532 = vector.extract_strided_slice %531 {offsets = [0, 0], sizes = [16, 16], strides = [1, 1]} : vector<16x128xf32> to vector<16x16xf32>
    %533 = vector.broadcast %530 : f32 to vector<16x16xf32>
    %534 = arith.mulf %532, %533 : vector<16x16xf32>
    %535 = arith.addf %529, %534 : vector<16x16xf32>
    %c0_247 = arith.constant 0 : index
    %c2_248 = arith.constant 2 : index
    %c7_249 = arith.constant 7 : index
    %c0_250 = arith.constant 0 : index
    %536 = vector.load %arg13[%c0_247, %c2_248, %c7_249, %c0_250] : memref<2x3x26x128xf32, #tpu.memory_space<vmem>>, vector<1x1x16x128xf32>
    %537 = vector.shape_cast %536 : vector<1x1x16x128xf32> to vector<16x128xf32>
    %c72 = arith.constant 72 : index
    %538 = memref.load %arg2[%c72] : memref<81xf32, #tpu.memory_space<smem>>
    %c1_i32_251 = arith.constant 1 : i32
    %539 = tpu.dynamic_rotate %537 by %c1_i32_251 dim 1 : vector<16x128xf32>, i32 -> vector<16x128xf32>
    %540 = vector.extract_strided_slice %539 {offsets = [0, 0], sizes = [16, 16], strides = [1, 1]} : vector<16x128xf32> to vector<16x16xf32>
    %541 = vector.broadcast %538 : f32 to vector<16x16xf32>
    %542 = arith.mulf %540, %541 : vector<16x16xf32>
    %543 = arith.addf %535, %542 : vector<16x16xf32>
    %c73 = arith.constant 73 : index
    %544 = memref.load %arg2[%c73] : memref<81xf32, #tpu.memory_space<smem>>
    %545 = vector.extract_strided_slice %537 {offsets = [0, 0], sizes = [16, 16], strides = [1, 1]} : vector<16x128xf32> to vector<16x16xf32>
    %546 = vector.broadcast %544 : f32 to vector<16x16xf32>
    %547 = arith.mulf %545, %546 : vector<16x16xf32>
    %548 = arith.addf %543, %547 : vector<16x16xf32>
    %c74 = arith.constant 74 : index
    %549 = memref.load %arg2[%c74] : memref<81xf32, #tpu.memory_space<smem>>
    %c127_i32_252 = arith.constant 127 : i32
    %550 = tpu.dynamic_rotate %537 by %c127_i32_252 dim 1 : vector<16x128xf32>, i32 -> vector<16x128xf32>
    %551 = vector.extract_strided_slice %550 {offsets = [0, 0], sizes = [16, 16], strides = [1, 1]} : vector<16x128xf32> to vector<16x16xf32>
    %552 = vector.broadcast %549 : f32 to vector<16x16xf32>
    %553 = arith.mulf %551, %552 : vector<16x16xf32>
    %554 = arith.addf %548, %553 : vector<16x16xf32>
    %c0_253 = arith.constant 0 : index
    %c2_254 = arith.constant 2 : index
    %c8_255 = arith.constant 8 : index
    %c0_256 = arith.constant 0 : index
    %555 = vector.load %arg13[%c0_253, %c2_254, %c8_255, %c0_256] : memref<2x3x26x128xf32, #tpu.memory_space<vmem>>, vector<1x1x16x128xf32>
    %556 = vector.shape_cast %555 : vector<1x1x16x128xf32> to vector<16x128xf32>
    %c75 = arith.constant 75 : index
    %557 = memref.load %arg2[%c75] : memref<81xf32, #tpu.memory_space<smem>>
    %c1_i32_257 = arith.constant 1 : i32
    %558 = tpu.dynamic_rotate %556 by %c1_i32_257 dim 1 : vector<16x128xf32>, i32 -> vector<16x128xf32>
    %559 = vector.extract_strided_slice %558 {offsets = [0, 0], sizes = [16, 16], strides = [1, 1]} : vector<16x128xf32> to vector<16x16xf32>
    %560 = vector.broadcast %557 : f32 to vector<16x16xf32>
    %561 = arith.mulf %559, %560 : vector<16x16xf32>
    %562 = arith.addf %554, %561 : vector<16x16xf32>
    %c76 = arith.constant 76 : index
    %563 = memref.load %arg2[%c76] : memref<81xf32, #tpu.memory_space<smem>>
    %564 = vector.extract_strided_slice %556 {offsets = [0, 0], sizes = [16, 16], strides = [1, 1]} : vector<16x128xf32> to vector<16x16xf32>
    %565 = vector.broadcast %563 : f32 to vector<16x16xf32>
    %566 = arith.mulf %564, %565 : vector<16x16xf32>
    %567 = arith.addf %562, %566 : vector<16x16xf32>
    %c77 = arith.constant 77 : index
    %568 = memref.load %arg2[%c77] : memref<81xf32, #tpu.memory_space<smem>>
    %c127_i32_258 = arith.constant 127 : i32
    %569 = tpu.dynamic_rotate %556 by %c127_i32_258 dim 1 : vector<16x128xf32>, i32 -> vector<16x128xf32>
    %570 = vector.extract_strided_slice %569 {offsets = [0, 0], sizes = [16, 16], strides = [1, 1]} : vector<16x128xf32> to vector<16x16xf32>
    %571 = vector.broadcast %568 : f32 to vector<16x16xf32>
    %572 = arith.mulf %570, %571 : vector<16x16xf32>
    %573 = arith.addf %567, %572 : vector<16x16xf32>
    %c0_259 = arith.constant 0 : index
    %c2_260 = arith.constant 2 : index
    %c9_261 = arith.constant 9 : index
    %c0_262 = arith.constant 0 : index
    %574 = vector.load %arg13[%c0_259, %c2_260, %c9_261, %c0_262] : memref<2x3x26x128xf32, #tpu.memory_space<vmem>>, vector<1x1x16x128xf32>
    %575 = vector.shape_cast %574 : vector<1x1x16x128xf32> to vector<16x128xf32>
    %c78 = arith.constant 78 : index
    %576 = memref.load %arg2[%c78] : memref<81xf32, #tpu.memory_space<smem>>
    %c1_i32_263 = arith.constant 1 : i32
    %577 = tpu.dynamic_rotate %575 by %c1_i32_263 dim 1 : vector<16x128xf32>, i32 -> vector<16x128xf32>
    %578 = vector.extract_strided_slice %577 {offsets = [0, 0], sizes = [16, 16], strides = [1, 1]} : vector<16x128xf32> to vector<16x16xf32>
    %579 = vector.broadcast %576 : f32 to vector<16x16xf32>
    %580 = arith.mulf %578, %579 : vector<16x16xf32>
    %581 = arith.addf %573, %580 : vector<16x16xf32>
    %c79 = arith.constant 79 : index
    %582 = memref.load %arg2[%c79] : memref<81xf32, #tpu.memory_space<smem>>
    %583 = vector.extract_strided_slice %575 {offsets = [0, 0], sizes = [16, 16], strides = [1, 1]} : vector<16x128xf32> to vector<16x16xf32>
    %584 = vector.broadcast %582 : f32 to vector<16x16xf32>
    %585 = arith.mulf %583, %584 : vector<16x16xf32>
    %586 = arith.addf %581, %585 : vector<16x16xf32>
    %c80 = arith.constant 80 : index
    %587 = memref.load %arg2[%c80] : memref<81xf32, #tpu.memory_space<smem>>
    %c127_i32_264 = arith.constant 127 : i32
    %588 = tpu.dynamic_rotate %575 by %c127_i32_264 dim 1 : vector<16x128xf32>, i32 -> vector<16x128xf32>
    %589 = vector.extract_strided_slice %588 {offsets = [0, 0], sizes = [16, 16], strides = [1, 1]} : vector<16x128xf32> to vector<16x16xf32>
    %590 = vector.broadcast %587 : f32 to vector<16x16xf32>
    %591 = arith.mulf %589, %590 : vector<16x16xf32>
    %592 = arith.addf %586, %591 : vector<16x16xf32>
    %c2_265 = arith.constant 2 : index
    %593 = memref.load %arg3[%c2_265] : memref<3xf32, #tpu.memory_space<smem>>
    %594 = vector.broadcast %593 : f32 to vector<16x16xf32>
    %595 = arith.addf %592, %594 : vector<16x16xf32>
    %c2_266 = arith.constant 2 : index
    %c0_267 = arith.constant 0 : index
    %c0_268 = arith.constant 0 : index
    %596 = vector.load %arg14[%c2_266, %c0_267, %c0_268] : memref<3x16x128xf32, #tpu.memory_space<vmem>>, vector<1x16x16xf32>
    %597 = vector.shape_cast %596 : vector<1x16x16xf32> to vector<16x16xf32>
    %598 = vector.shape_cast %595 : vector<16x16xf32> to vector<1x16x16xf32>
    tpu.vector_store %arg14[%c2_266, %c0_267, %c0_268], %598 {strides = array<i32>} : memref<3x16x128xf32, #tpu.memory_space<vmem>>, vector<1x16x16xf32>,
    %c0_269 = arith.constant 0 : index
    %c0_270 = arith.constant 0 : index
    %c0_271 = arith.constant 0 : index
    %599 = vector.load %arg14[%c0_269, %c0_270, %c0_271] : memref<3x16x128xf32, #tpu.memory_space<vmem>>, vector<1x16x16xf32>
    %600 = vector.shape_cast %599 : vector<1x16x16xf32> to vector<16x16xf32>
    %c1_272 = arith.constant 1 : index
    %c0_273 = arith.constant 0 : index
    %c0_274 = arith.constant 0 : index
    %601 = vector.load %arg14[%c1_272, %c0_273, %c0_274] : memref<3x16x128xf32, #tpu.memory_space<vmem>>, vector<1x16x16xf32>
    %602 = vector.shape_cast %601 : vector<1x16x16xf32> to vector<16x16xf32>
    %603 = arith.addf %600, %602 : vector<16x16xf32>
    %c2_275 = arith.constant 2 : index
    %c0_276 = arith.constant 0 : index
    %c0_277 = arith.constant 0 : index
    %604 = vector.load %arg14[%c2_275, %c0_276, %c0_277] : memref<3x16x128xf32, #tpu.memory_space<vmem>>, vector<1x16x16xf32>
    %605 = vector.shape_cast %604 : vector<1x16x16xf32> to vector<16x16xf32>
    %606 = arith.addf %603, %605 : vector<16x16xf32>
    %cst_278 = arith.constant 0.333333343 : f32
    %607 = vector.broadcast %cst_278 : f32 to vector<16x16xf32>
    %608 = arith.mulf %606, %607 : vector<16x16xf32>
    %c0_279 = arith.constant 0 : index
    %c0_280 = arith.constant 0 : index
    %c0_281 = arith.constant 0 : index
    %609 = vector.load %arg14[%c0_279, %c0_280, %c0_281] : memref<3x16x128xf32, #tpu.memory_space<vmem>>, vector<1x16x16xf32>
    %610 = vector.shape_cast %609 : vector<1x16x16xf32> to vector<16x16xf32>
    %611 = arith.subf %610, %608 : vector<16x16xf32>
    %612 = arith.mulf %611, %611 : vector<16x16xf32>
    %c1_282 = arith.constant 1 : index
    %c0_283 = arith.constant 0 : index
    %c0_284 = arith.constant 0 : index
    %613 = vector.load %arg14[%c1_282, %c0_283, %c0_284] : memref<3x16x128xf32, #tpu.memory_space<vmem>>, vector<1x16x16xf32>
    %614 = vector.shape_cast %613 : vector<1x16x16xf32> to vector<16x16xf32>
    %615 = arith.subf %614, %608 : vector<16x16xf32>
    %616 = arith.mulf %615, %615 : vector<16x16xf32>
    %617 = arith.addf %612, %616 : vector<16x16xf32>
    %c2_285 = arith.constant 2 : index
    %c0_286 = arith.constant 0 : index
    %c0_287 = arith.constant 0 : index
    %618 = vector.load %arg14[%c2_285, %c0_286, %c0_287] : memref<3x16x128xf32, #tpu.memory_space<vmem>>, vector<1x16x16xf32>
    %619 = vector.shape_cast %618 : vector<1x16x16xf32> to vector<16x16xf32>
    %620 = arith.subf %619, %608 : vector<16x16xf32>
    %621 = arith.mulf %620, %620 : vector<16x16xf32>
    %622 = arith.addf %617, %621 : vector<16x16xf32>
    %cst_288 = arith.constant 0.333333343 : f32
    %623 = vector.broadcast %cst_288 : f32 to vector<16x16xf32>
    %624 = arith.mulf %622, %623 : vector<16x16xf32>
    %cst_289 = arith.constant 9.99999974E-6 : f32
    %625 = vector.broadcast %cst_289 : f32 to vector<16x16xf32>
    %626 = arith.addf %624, %625 : vector<16x16xf32>
    %627 = math.rsqrt %626 : vector<16x16xf32>
    %c0_290 = arith.constant 0 : index
    %c0_291 = arith.constant 0 : index
    %c0_292 = arith.constant 0 : index
    %628 = vector.load %arg14[%c0_290, %c0_291, %c0_292] : memref<3x16x128xf32, #tpu.memory_space<vmem>>, vector<1x16x16xf32>
    %629 = vector.shape_cast %628 : vector<1x16x16xf32> to vector<16x16xf32>
    %630 = arith.subf %629, %608 : vector<16x16xf32>
    %631 = arith.mulf %630, %627 : vector<16x16xf32>
    %c0_293 = arith.constant 0 : index
    %632 = memref.load %arg4[%c0_293] : memref<3xf32, #tpu.memory_space<smem>>
    %633 = vector.broadcast %632 : f32 to vector<16x16xf32>
    %634 = arith.mulf %631, %633 : vector<16x16xf32>
    %c0_294 = arith.constant 0 : index
    %635 = memref.load %arg5[%c0_294] : memref<3xf32, #tpu.memory_space<smem>>
    %636 = vector.broadcast %635 : f32 to vector<16x16xf32>
    %637 = arith.addf %634, %636 : vector<16x16xf32>
    %c1_295 = arith.constant 1 : index
    %c0_296 = arith.constant 0 : index
    %c8_297 = arith.constant 8 : index
    %c0_298 = arith.constant 0 : index
    %638 = vector.load %arg13[%c1_295, %c0_296, %c8_297, %c0_298] : memref<2x3x26x128xf32, #tpu.memory_space<vmem>>, vector<1x1x16x16xf32>
    %639 = vector.shape_cast %638 : vector<1x1x16x16xf32> to vector<16x16xf32>
    %640 = vector.shape_cast %637 : vector<16x16xf32> to vector<1x1x16x16xf32>
    tpu.vector_store %arg13[%c1_295, %c0_296, %c8_297, %c0_298], %640 {strides = array<i32>} : memref<2x3x26x128xf32, #tpu.memory_space<vmem>>, vector<1x1x16x16xf32>,
    %c1_299 = arith.constant 1 : index
    %c0_300 = arith.constant 0 : index
    %c0_301 = arith.constant 0 : index
    %641 = vector.load %arg14[%c1_299, %c0_300, %c0_301] : memref<3x16x128xf32, #tpu.memory_space<vmem>>, vector<1x16x16xf32>
    %642 = vector.shape_cast %641 : vector<1x16x16xf32> to vector<16x16xf32>
    %643 = arith.subf %642, %608 : vector<16x16xf32>
    %644 = arith.mulf %643, %627 : vector<16x16xf32>
    %c1_302 = arith.constant 1 : index
    %645 = memref.load %arg4[%c1_302] : memref<3xf32, #tpu.memory_space<smem>>
    %646 = vector.broadcast %645 : f32 to vector<16x16xf32>
    %647 = arith.mulf %644, %646 : vector<16x16xf32>
    %c1_303 = arith.constant 1 : index
    %648 = memref.load %arg5[%c1_303] : memref<3xf32, #tpu.memory_space<smem>>
    %649 = vector.broadcast %648 : f32 to vector<16x16xf32>
    %650 = arith.addf %647, %649 : vector<16x16xf32>
    %c1_304 = arith.constant 1 : index
    %c1_305 = arith.constant 1 : index
    %c8_306 = arith.constant 8 : index
    %c0_307 = arith.constant 0 : index
    %651 = vector.load %arg13[%c1_304, %c1_305, %c8_306, %c0_307] : memref<2x3x26x128xf32, #tpu.memory_space<vmem>>, vector<1x1x16x16xf32>
    %652 = vector.shape_cast %651 : vector<1x1x16x16xf32> to vector<16x16xf32>
    %653 = vector.shape_cast %650 : vector<16x16xf32> to vector<1x1x16x16xf32>
    tpu.vector_store %arg13[%c1_304, %c1_305, %c8_306, %c0_307], %653 {strides = array<i32>} : memref<2x3x26x128xf32, #tpu.memory_space<vmem>>, vector<1x1x16x16xf32>,
    %c2_308 = arith.constant 2 : index
    %c0_309 = arith.constant 0 : index
    %c0_310 = arith.constant 0 : index
    %654 = vector.load %arg14[%c2_308, %c0_309, %c0_310] : memref<3x16x128xf32, #tpu.memory_space<vmem>>, vector<1x16x16xf32>
    %655 = vector.shape_cast %654 : vector<1x16x16xf32> to vector<16x16xf32>
    %656 = arith.subf %655, %608 : vector<16x16xf32>
    %657 = arith.mulf %656, %627 : vector<16x16xf32>
    %c2_311 = arith.constant 2 : index
    %658 = memref.load %arg4[%c2_311] : memref<3xf32, #tpu.memory_space<smem>>
    %659 = vector.broadcast %658 : f32 to vector<16x16xf32>
    %660 = arith.mulf %657, %659 : vector<16x16xf32>
    %c2_312 = arith.constant 2 : index
    %661 = memref.load %arg5[%c2_312] : memref<3xf32, #tpu.memory_space<smem>>
    %662 = vector.broadcast %661 : f32 to vector<16x16xf32>
    %663 = arith.addf %660, %662 : vector<16x16xf32>
    %c1_313 = arith.constant 1 : index
    %c2_314 = arith.constant 2 : index
    %c8_315 = arith.constant 8 : index
    %c0_316 = arith.constant 0 : index
    %664 = vector.load %arg13[%c1_313, %c2_314, %c8_315, %c0_316] : memref<2x3x26x128xf32, #tpu.memory_space<vmem>>, vector<1x1x16x16xf32>
    %665 = vector.shape_cast %664 : vector<1x1x16x16xf32> to vector<16x16xf32>
    %666 = vector.shape_cast %663 : vector<16x16xf32> to vector<1x1x16x16xf32>
    tpu.vector_store %arg13[%c1_313, %c2_314, %c8_315, %c0_316], %666 {strides = array<i32>} : memref<2x3x26x128xf32, #tpu.memory_space<vmem>>, vector<1x1x16x16xf32>,
    %c1_317 = arith.constant 1 : index
    %c0_318 = arith.constant 0 : index
    %c10_319 = arith.constant 10 : index
    %c0_320 = arith.constant 0 : index
    %667 = vector.load %arg13[%c1_317, %c0_318, %c10_319, %c0_320] : memref<2x3x26x128xf32, #tpu.memory_space<vmem>>, vector<1x1x16x16xf32>
    %668 = vector.shape_cast %667 : vector<1x1x16x16xf32> to vector<16x16xf32>
    %c0_321 = arith.constant 0 : index
    %669 = memref.load %arg6[%c0_321] : memref<9xf32, #tpu.memory_space<smem>>
    %670 = vector.broadcast %669 : f32 to vector<16x16xf32>
    %671 = arith.mulf %668, %670 : vector<16x16xf32>
    %c1_322 = arith.constant 1 : index
    %c1_323 = arith.constant 1 : index
    %c9_324 = arith.constant 9 : index
    %c0_325 = arith.constant 0 : index
    %672 = vector.load %arg13[%c1_322, %c1_323, %c9_324, %c0_325] : memref<2x3x26x128xf32, #tpu.memory_space<vmem>>, vector<1x1x16x16xf32>
    %673 = vector.shape_cast %672 : vector<1x1x16x16xf32> to vector<16x16xf32>
    %c1_326 = arith.constant 1 : index
    %674 = memref.load %arg6[%c1_326] : memref<9xf32, #tpu.memory_space<smem>>
    %675 = vector.broadcast %674 : f32 to vector<16x16xf32>
    %676 = arith.mulf %673, %675 : vector<16x16xf32>
    %677 = arith.addf %671, %676 : vector<16x16xf32>
    %c1_327 = arith.constant 1 : index
    %c2_328 = arith.constant 2 : index
    %c8_329 = arith.constant 8 : index
    %c0_330 = arith.constant 0 : index
    %678 = vector.load %arg13[%c1_327, %c2_328, %c8_329, %c0_330] : memref<2x3x26x128xf32, #tpu.memory_space<vmem>>, vector<1x1x16x16xf32>
    %679 = vector.shape_cast %678 : vector<1x1x16x16xf32> to vector<16x16xf32>
    %c2_331 = arith.constant 2 : index
    %680 = memref.load %arg6[%c2_331] : memref<9xf32, #tpu.memory_space<smem>>
    %681 = vector.broadcast %680 : f32 to vector<16x16xf32>
    %682 = arith.mulf %679, %681 : vector<16x16xf32>
    %683 = arith.addf %677, %682 : vector<16x16xf32>
    %c0_332 = arith.constant 0 : index
    %684 = memref.load %arg7[%c0_332] : memref<3xf32, #tpu.memory_space<smem>>
    %685 = vector.broadcast %684 : f32 to vector<16x16xf32>
    %686 = arith.addf %683, %685 : vector<16x16xf32>
    %c0_333 = arith.constant 0 : index
    %c0_334 = arith.constant 0 : index
    %c8_335 = arith.constant 8 : index
    %c0_336 = arith.constant 0 : index
    %687 = vector.load %arg13[%c0_333, %c0_334, %c8_335, %c0_336] : memref<2x3x26x128xf32, #tpu.memory_space<vmem>>, vector<1x1x16x16xf32>
    %688 = vector.shape_cast %687 : vector<1x1x16x16xf32> to vector<16x16xf32>
    %689 = vector.shape_cast %686 : vector<16x16xf32> to vector<1x1x16x16xf32>
    tpu.vector_store %arg13[%c0_333, %c0_334, %c8_335, %c0_336], %689 {strides = array<i32>} : memref<2x3x26x128xf32, #tpu.memory_space<vmem>>, vector<1x1x16x16xf32>,
    %c1_337 = arith.constant 1 : index
    %c0_338 = arith.constant 0 : index
    %c10_339 = arith.constant 10 : index
    %c0_340 = arith.constant 0 : index
    %690 = vector.load %arg13[%c1_337, %c0_338, %c10_339, %c0_340] : memref<2x3x26x128xf32, #tpu.memory_space<vmem>>, vector<1x1x16x16xf32>
    %691 = vector.shape_cast %690 : vector<1x1x16x16xf32> to vector<16x16xf32>
    %c3_341 = arith.constant 3 : index
    %692 = memref.load %arg6[%c3_341] : memref<9xf32, #tpu.memory_space<smem>>
    %693 = vector.broadcast %692 : f32 to vector<16x16xf32>
    %694 = arith.mulf %691, %693 : vector<16x16xf32>
    %c1_342 = arith.constant 1 : index
    %c1_343 = arith.constant 1 : index
    %c9_344 = arith.constant 9 : index
    %c0_345 = arith.constant 0 : index
    %695 = vector.load %arg13[%c1_342, %c1_343, %c9_344, %c0_345] : memref<2x3x26x128xf32, #tpu.memory_space<vmem>>, vector<1x1x16x16xf32>
    %696 = vector.shape_cast %695 : vector<1x1x16x16xf32> to vector<16x16xf32>
    %c4_346 = arith.constant 4 : index
    %697 = memref.load %arg6[%c4_346] : memref<9xf32, #tpu.memory_space<smem>>
    %698 = vector.broadcast %697 : f32 to vector<16x16xf32>
    %699 = arith.mulf %696, %698 : vector<16x16xf32>
    %700 = arith.addf %694, %699 : vector<16x16xf32>
    %c1_347 = arith.constant 1 : index
    %c2_348 = arith.constant 2 : index
    %c8_349 = arith.constant 8 : index
    %c0_350 = arith.constant 0 : index
    %701 = vector.load %arg13[%c1_347, %c2_348, %c8_349, %c0_350] : memref<2x3x26x128xf32, #tpu.memory_space<vmem>>, vector<1x1x16x16xf32>
    %702 = vector.shape_cast %701 : vector<1x1x16x16xf32> to vector<16x16xf32>
    %c5_351 = arith.constant 5 : index
    %703 = memref.load %arg6[%c5_351] : memref<9xf32, #tpu.memory_space<smem>>
    %704 = vector.broadcast %703 : f32 to vector<16x16xf32>
    %705 = arith.mulf %702, %704 : vector<16x16xf32>
    %706 = arith.addf %700, %705 : vector<16x16xf32>
    %c1_352 = arith.constant 1 : index
    %707 = memref.load %arg7[%c1_352] : memref<3xf32, #tpu.memory_space<smem>>
    %708 = vector.broadcast %707 : f32 to vector<16x16xf32>
    %709 = arith.addf %706, %708 : vector<16x16xf32>
    %c0_353 = arith.constant 0 : index
    %c1_354 = arith.constant 1 : index
    %c8_355 = arith.constant 8 : index
    %c0_356 = arith.constant 0 : index
    %710 = vector.load %arg13[%c0_353, %c1_354, %c8_355, %c0_356] : memref<2x3x26x128xf32, #tpu.memory_space<vmem>>, vector<1x1x16x16xf32>
    %711 = vector.shape_cast %710 : vector<1x1x16x16xf32> to vector<16x16xf32>
    %712 = vector.shape_cast %709 : vector<16x16xf32> to vector<1x1x16x16xf32>
    tpu.vector_store %arg13[%c0_353, %c1_354, %c8_355, %c0_356], %712 {strides = array<i32>} : memref<2x3x26x128xf32, #tpu.memory_space<vmem>>, vector<1x1x16x16xf32>,
    %c1_357 = arith.constant 1 : index
    %c0_358 = arith.constant 0 : index
    %c10_359 = arith.constant 10 : index
    %c0_360 = arith.constant 0 : index
    %713 = vector.load %arg13[%c1_357, %c0_358, %c10_359, %c0_360] : memref<2x3x26x128xf32, #tpu.memory_space<vmem>>, vector<1x1x16x16xf32>
    %714 = vector.shape_cast %713 : vector<1x1x16x16xf32> to vector<16x16xf32>
    %c6_361 = arith.constant 6 : index
    %715 = memref.load %arg6[%c6_361] : memref<9xf32, #tpu.memory_space<smem>>
    %716 = vector.broadcast %715 : f32 to vector<16x16xf32>
    %717 = arith.mulf %714, %716 : vector<16x16xf32>
    %c1_362 = arith.constant 1 : index
    %c1_363 = arith.constant 1 : index
    %c9_364 = arith.constant 9 : index
    %c0_365 = arith.constant 0 : index
    %718 = vector.load %arg13[%c1_362, %c1_363, %c9_364, %c0_365] : memref<2x3x26x128xf32, #tpu.memory_space<vmem>>, vector<1x1x16x16xf32>
    %719 = vector.shape_cast %718 : vector<1x1x16x16xf32> to vector<16x16xf32>
    %c7_366 = arith.constant 7 : index
    %720 = memref.load %arg6[%c7_366] : memref<9xf32, #tpu.memory_space<smem>>
    %721 = vector.broadcast %720 : f32 to vector<16x16xf32>
    %722 = arith.mulf %719, %721 : vector<16x16xf32>
    %723 = arith.addf %717, %722 : vector<16x16xf32>
    %c1_367 = arith.constant 1 : index
    %c2_368 = arith.constant 2 : index
    %c8_369 = arith.constant 8 : index
    %c0_370 = arith.constant 0 : index
    %724 = vector.load %arg13[%c1_367, %c2_368, %c8_369, %c0_370] : memref<2x3x26x128xf32, #tpu.memory_space<vmem>>, vector<1x1x16x16xf32>
    %725 = vector.shape_cast %724 : vector<1x1x16x16xf32> to vector<16x16xf32>
    %c8_371 = arith.constant 8 : index
    %726 = memref.load %arg6[%c8_371] : memref<9xf32, #tpu.memory_space<smem>>
    %727 = vector.broadcast %726 : f32 to vector<16x16xf32>
    %728 = arith.mulf %725, %727 : vector<16x16xf32>
    %729 = arith.addf %723, %728 : vector<16x16xf32>
    %c2_372 = arith.constant 2 : index
    %730 = memref.load %arg7[%c2_372] : memref<3xf32, #tpu.memory_space<smem>>
    %731 = vector.broadcast %730 : f32 to vector<16x16xf32>
    %732 = arith.addf %729, %731 : vector<16x16xf32>
    %c0_373 = arith.constant 0 : index
    %c2_374 = arith.constant 2 : index
    %c8_375 = arith.constant 8 : index
    %c0_376 = arith.constant 0 : index
    %733 = vector.load %arg13[%c0_373, %c2_374, %c8_375, %c0_376] : memref<2x3x26x128xf32, #tpu.memory_space<vmem>>, vector<1x1x16x16xf32>
    %734 = vector.shape_cast %733 : vector<1x1x16x16xf32> to vector<16x16xf32>
    %735 = vector.shape_cast %732 : vector<16x16xf32> to vector<1x1x16x16xf32>
    tpu.vector_store %arg13[%c0_373, %c2_374, %c8_375, %c0_376], %735 {strides = array<i32>} : memref<2x3x26x128xf32, #tpu.memory_space<vmem>>, vector<1x1x16x16xf32>,
    %c0_377 = arith.constant 0 : index
    %c0_378 = arith.constant 0 : index
    %c7_379 = arith.constant 7 : index
    %c0_380 = arith.constant 0 : index
    %736 = vector.load %arg13[%c0_377, %c0_378, %c7_379, %c0_380] : memref<2x3x26x128xf32, #tpu.memory_space<vmem>>, vector<1x1x16x128xf32>
    %737 = vector.shape_cast %736 : vector<1x1x16x128xf32> to vector<16x128xf32>
    %c1_i32_381 = arith.constant 1 : i32
    %738 = tpu.dynamic_rotate %737 by %c1_i32_381 dim 1 : vector<16x128xf32>, i32 -> vector<16x128xf32>
    %739 = vector.extract_strided_slice %738 {offsets = [0, 0], sizes = [16, 16], strides = [1, 1]} : vector<16x128xf32> to vector<16x16xf32>
    %c0_382 = arith.constant 0 : index
    %740 = memref.load %arg8[%c0_382] : memref<27xf32, #tpu.memory_space<smem>>
    %741 = vector.broadcast %740 : f32 to vector<16x16xf32>
    %742 = arith.mulf %739, %741 : vector<16x16xf32>
    %743 = vector.extract_strided_slice %737 {offsets = [0, 0], sizes = [16, 16], strides = [1, 1]} : vector<16x128xf32> to vector<16x16xf32>
    %c1_383 = arith.constant 1 : index
    %744 = memref.load %arg8[%c1_383] : memref<27xf32, #tpu.memory_space<smem>>
    %745 = vector.broadcast %744 : f32 to vector<16x16xf32>
    %746 = arith.mulf %743, %745 : vector<16x16xf32>
    %747 = arith.addf %742, %746 : vector<16x16xf32>
    %c127_i32_384 = arith.constant 127 : i32
    %748 = tpu.dynamic_rotate %737 by %c127_i32_384 dim 1 : vector<16x128xf32>, i32 -> vector<16x128xf32>
    %749 = vector.extract_strided_slice %748 {offsets = [0, 0], sizes = [16, 16], strides = [1, 1]} : vector<16x128xf32> to vector<16x16xf32>
    %c2_385 = arith.constant 2 : index
    %750 = memref.load %arg8[%c2_385] : memref<27xf32, #tpu.memory_space<smem>>
    %751 = vector.broadcast %750 : f32 to vector<16x16xf32>
    %752 = arith.mulf %749, %751 : vector<16x16xf32>
    %753 = arith.addf %747, %752 : vector<16x16xf32>
    %c0_386 = arith.constant 0 : index
    %c0_387 = arith.constant 0 : index
    %c8_388 = arith.constant 8 : index
    %c0_389 = arith.constant 0 : index
    %754 = vector.load %arg13[%c0_386, %c0_387, %c8_388, %c0_389] : memref<2x3x26x128xf32, #tpu.memory_space<vmem>>, vector<1x1x16x128xf32>
    %755 = vector.shape_cast %754 : vector<1x1x16x128xf32> to vector<16x128xf32>
    %c1_i32_390 = arith.constant 1 : i32
    %756 = tpu.dynamic_rotate %755 by %c1_i32_390 dim 1 : vector<16x128xf32>, i32 -> vector<16x128xf32>
    %757 = vector.extract_strided_slice %756 {offsets = [0, 0], sizes = [16, 16], strides = [1, 1]} : vector<16x128xf32> to vector<16x16xf32>
    %c3_391 = arith.constant 3 : index
    %758 = memref.load %arg8[%c3_391] : memref<27xf32, #tpu.memory_space<smem>>
    %759 = vector.broadcast %758 : f32 to vector<16x16xf32>
    %760 = arith.mulf %757, %759 : vector<16x16xf32>
    %761 = arith.addf %753, %760 : vector<16x16xf32>
    %762 = vector.extract_strided_slice %755 {offsets = [0, 0], sizes = [16, 16], strides = [1, 1]} : vector<16x128xf32> to vector<16x16xf32>
    %c4_392 = arith.constant 4 : index
    %763 = memref.load %arg8[%c4_392] : memref<27xf32, #tpu.memory_space<smem>>
    %764 = vector.broadcast %763 : f32 to vector<16x16xf32>
    %765 = arith.mulf %762, %764 : vector<16x16xf32>
    %766 = arith.addf %761, %765 : vector<16x16xf32>
    %c127_i32_393 = arith.constant 127 : i32
    %767 = tpu.dynamic_rotate %755 by %c127_i32_393 dim 1 : vector<16x128xf32>, i32 -> vector<16x128xf32>
    %768 = vector.extract_strided_slice %767 {offsets = [0, 0], sizes = [16, 16], strides = [1, 1]} : vector<16x128xf32> to vector<16x16xf32>
    %c5_394 = arith.constant 5 : index
    %769 = memref.load %arg8[%c5_394] : memref<27xf32, #tpu.memory_space<smem>>
    %770 = vector.broadcast %769 : f32 to vector<16x16xf32>
    %771 = arith.mulf %768, %770 : vector<16x16xf32>
    %772 = arith.addf %766, %771 : vector<16x16xf32>
    %c0_395 = arith.constant 0 : index
    %c0_396 = arith.constant 0 : index
    %c9_397 = arith.constant 9 : index
    %c0_398 = arith.constant 0 : index
    %773 = vector.load %arg13[%c0_395, %c0_396, %c9_397, %c0_398] : memref<2x3x26x128xf32, #tpu.memory_space<vmem>>, vector<1x1x16x128xf32>
    %774 = vector.shape_cast %773 : vector<1x1x16x128xf32> to vector<16x128xf32>
    %c1_i32_399 = arith.constant 1 : i32
    %775 = tpu.dynamic_rotate %774 by %c1_i32_399 dim 1 : vector<16x128xf32>, i32 -> vector<16x128xf32>
    %776 = vector.extract_strided_slice %775 {offsets = [0, 0], sizes = [16, 16], strides = [1, 1]} : vector<16x128xf32> to vector<16x16xf32>
    %c6_400 = arith.constant 6 : index
    %777 = memref.load %arg8[%c6_400] : memref<27xf32, #tpu.memory_space<smem>>
    %778 = vector.broadcast %777 : f32 to vector<16x16xf32>
    %779 = arith.mulf %776, %778 : vector<16x16xf32>
    %780 = arith.addf %772, %779 : vector<16x16xf32>
    %781 = vector.extract_strided_slice %774 {offsets = [0, 0], sizes = [16, 16], strides = [1, 1]} : vector<16x128xf32> to vector<16x16xf32>
    %c7_401 = arith.constant 7 : index
    %782 = memref.load %arg8[%c7_401] : memref<27xf32, #tpu.memory_space<smem>>
    %783 = vector.broadcast %782 : f32 to vector<16x16xf32>
    %784 = arith.mulf %781, %783 : vector<16x16xf32>
    %785 = arith.addf %780, %784 : vector<16x16xf32>
    %c127_i32_402 = arith.constant 127 : i32
    %786 = tpu.dynamic_rotate %774 by %c127_i32_402 dim 1 : vector<16x128xf32>, i32 -> vector<16x128xf32>
    %787 = vector.extract_strided_slice %786 {offsets = [0, 0], sizes = [16, 16], strides = [1, 1]} : vector<16x128xf32> to vector<16x16xf32>
    %c8_403 = arith.constant 8 : index
    %788 = memref.load %arg8[%c8_403] : memref<27xf32, #tpu.memory_space<smem>>
    %789 = vector.broadcast %788 : f32 to vector<16x16xf32>
    %790 = arith.mulf %787, %789 : vector<16x16xf32>
    %791 = arith.addf %785, %790 : vector<16x16xf32>
    %c0_404 = arith.constant 0 : index
    %792 = memref.load %arg9[%c0_404] : memref<3xf32, #tpu.memory_space<smem>>
    %793 = vector.broadcast %792 : f32 to vector<16x16xf32>
    %794 = arith.addf %791, %793 : vector<16x16xf32>
    %795 = math.absf %794 : vector<16x16xf32>
    %cst_405 = arith.constant 0.707106769 : f32
    %796 = vector.broadcast %cst_405 : f32 to vector<16x16xf32>
    %797 = arith.mulf %795, %796 : vector<16x16xf32>
    %cst_406 = arith.constant 0.327591091 : f32
    %798 = vector.broadcast %cst_406 : f32 to vector<16x16xf32>
    %799 = arith.mulf %798, %797 : vector<16x16xf32>
    %cst_407 = arith.constant 1.000000e+00 : f32
    %800 = vector.broadcast %cst_407 : f32 to vector<16x16xf32>
    %801 = arith.addf %800, %799 : vector<16x16xf32>
    %802 = tpu.reciprocal %801 {approx = true} : vector<16x16xf32> -> vector<16x16xf32>
    %803 = arith.mulf %801, %802 : vector<16x16xf32>
    %cst_408 = arith.constant 2.000000e+00 : f32
    %804 = vector.broadcast %cst_408 : f32 to vector<16x16xf32>
    %805 = arith.subf %804, %803 : vector<16x16xf32>
    %806 = arith.mulf %802, %805 : vector<16x16xf32>
    %cst_409 = arith.constant 1.06140542 : f32
    %807 = vector.broadcast %cst_409 : f32 to vector<16x16xf32>
    %808 = arith.mulf %807, %806 : vector<16x16xf32>
    %cst_410 = arith.constant 1.45315206 : f32
    %809 = vector.broadcast %cst_410 : f32 to vector<16x16xf32>
    %810 = arith.subf %808, %809 : vector<16x16xf32>
    %811 = arith.mulf %810, %806 : vector<16x16xf32>
    %cst_411 = arith.constant 1.42141378 : f32
    %812 = vector.broadcast %cst_411 : f32 to vector<16x16xf32>
    %813 = arith.addf %811, %812 : vector<16x16xf32>
    %814 = arith.mulf %813, %806 : vector<16x16xf32>
    %cst_412 = arith.constant 0.284496725 : f32
    %815 = vector.broadcast %cst_412 : f32 to vector<16x16xf32>
    %816 = arith.subf %814, %815 : vector<16x16xf32>
    %817 = arith.mulf %816, %806 : vector<16x16xf32>
    %cst_413 = arith.constant 0.254829586 : f32
    %818 = vector.broadcast %cst_413 : f32 to vector<16x16xf32>
    %819 = arith.addf %817, %818 : vector<16x16xf32>
    %820 = arith.mulf %819, %806 : vector<16x16xf32>
    %cst_414 = arith.constant 0.000000e+00 : f32
    %821 = vector.broadcast %cst_414 : f32 to vector<16x16xf32>
    %822 = arith.subf %821, %797 : vector<16x16xf32>
    %823 = arith.mulf %822, %797 : vector<16x16xf32>
    %824 = math.exp %823 : vector<16x16xf32>
    %825 = arith.mulf %820, %824 : vector<16x16xf32>
    %cst_415 = arith.constant 1.000000e+00 : f32
    %826 = vector.broadcast %cst_415 : f32 to vector<16x16xf32>
    %827 = arith.subf %826, %825 : vector<16x16xf32>
    %828 = math.absf %794 : vector<16x16xf32>
    %829 = arith.mulf %828, %827 : vector<16x16xf32>
    %830 = arith.addf %794, %829 : vector<16x16xf32>
    %cst_416 = arith.constant 5.000000e-01 : f32
    %831 = vector.broadcast %cst_416 : f32 to vector<16x16xf32>
    %832 = arith.mulf %831, %830 : vector<16x16xf32>
    %c1_417 = arith.constant 1 : index
    %c0_418 = arith.constant 0 : index
    %c8_419 = arith.constant 8 : index
    %c0_420 = arith.constant 0 : index
    %833 = vector.load %arg13[%c1_417, %c0_418, %c8_419, %c0_420] : memref<2x3x26x128xf32, #tpu.memory_space<vmem>>, vector<1x1x16x16xf32>
    %834 = vector.shape_cast %833 : vector<1x1x16x16xf32> to vector<16x16xf32>
    %835 = vector.shape_cast %832 : vector<16x16xf32> to vector<1x1x16x16xf32>
    tpu.vector_store %arg13[%c1_417, %c0_418, %c8_419, %c0_420], %835 {strides = array<i32>} : memref<2x3x26x128xf32, #tpu.memory_space<vmem>>, vector<1x1x16x16xf32>,
    %c0_421 = arith.constant 0 : index
    %c1_422 = arith.constant 1 : index
    %c7_423 = arith.constant 7 : index
    %c0_424 = arith.constant 0 : index
    %836 = vector.load %arg13[%c0_421, %c1_422, %c7_423, %c0_424] : memref<2x3x26x128xf32, #tpu.memory_space<vmem>>, vector<1x1x16x128xf32>
    %837 = vector.shape_cast %836 : vector<1x1x16x128xf32> to vector<16x128xf32>
    %c1_i32_425 = arith.constant 1 : i32
    %838 = tpu.dynamic_rotate %837 by %c1_i32_425 dim 1 : vector<16x128xf32>, i32 -> vector<16x128xf32>
    %839 = vector.extract_strided_slice %838 {offsets = [0, 0], sizes = [16, 16], strides = [1, 1]} : vector<16x128xf32> to vector<16x16xf32>
    %c9_426 = arith.constant 9 : index
    %840 = memref.load %arg8[%c9_426] : memref<27xf32, #tpu.memory_space<smem>>
    %841 = vector.broadcast %840 : f32 to vector<16x16xf32>
    %842 = arith.mulf %839, %841 : vector<16x16xf32>
    %843 = vector.extract_strided_slice %837 {offsets = [0, 0], sizes = [16, 16], strides = [1, 1]} : vector<16x128xf32> to vector<16x16xf32>
    %c10_427 = arith.constant 10 : index
    %844 = memref.load %arg8[%c10_427] : memref<27xf32, #tpu.memory_space<smem>>
    %845 = vector.broadcast %844 : f32 to vector<16x16xf32>
    %846 = arith.mulf %843, %845 : vector<16x16xf32>
    %847 = arith.addf %842, %846 : vector<16x16xf32>
    %c127_i32_428 = arith.constant 127 : i32
    %848 = tpu.dynamic_rotate %837 by %c127_i32_428 dim 1 : vector<16x128xf32>, i32 -> vector<16x128xf32>
    %849 = vector.extract_strided_slice %848 {offsets = [0, 0], sizes = [16, 16], strides = [1, 1]} : vector<16x128xf32> to vector<16x16xf32>
    %c11_429 = arith.constant 11 : index
    %850 = memref.load %arg8[%c11_429] : memref<27xf32, #tpu.memory_space<smem>>
    %851 = vector.broadcast %850 : f32 to vector<16x16xf32>
    %852 = arith.mulf %849, %851 : vector<16x16xf32>
    %853 = arith.addf %847, %852 : vector<16x16xf32>
    %c0_430 = arith.constant 0 : index
    %c1_431 = arith.constant 1 : index
    %c8_432 = arith.constant 8 : index
    %c0_433 = arith.constant 0 : index
    %854 = vector.load %arg13[%c0_430, %c1_431, %c8_432, %c0_433] : memref<2x3x26x128xf32, #tpu.memory_space<vmem>>, vector<1x1x16x128xf32>
    %855 = vector.shape_cast %854 : vector<1x1x16x128xf32> to vector<16x128xf32>
    %c1_i32_434 = arith.constant 1 : i32
    %856 = tpu.dynamic_rotate %855 by %c1_i32_434 dim 1 : vector<16x128xf32>, i32 -> vector<16x128xf32>
    %857 = vector.extract_strided_slice %856 {offsets = [0, 0], sizes = [16, 16], strides = [1, 1]} : vector<16x128xf32> to vector<16x16xf32>
    %c12_435 = arith.constant 12 : index
    %858 = memref.load %arg8[%c12_435] : memref<27xf32, #tpu.memory_space<smem>>
    %859 = vector.broadcast %858 : f32 to vector<16x16xf32>
    %860 = arith.mulf %857, %859 : vector<16x16xf32>
    %861 = arith.addf %853, %860 : vector<16x16xf32>
    %862 = vector.extract_strided_slice %855 {offsets = [0, 0], sizes = [16, 16], strides = [1, 1]} : vector<16x128xf32> to vector<16x16xf32>
    %c13_436 = arith.constant 13 : index
    %863 = memref.load %arg8[%c13_436] : memref<27xf32, #tpu.memory_space<smem>>
    %864 = vector.broadcast %863 : f32 to vector<16x16xf32>
    %865 = arith.mulf %862, %864 : vector<16x16xf32>
    %866 = arith.addf %861, %865 : vector<16x16xf32>
    %c127_i32_437 = arith.constant 127 : i32
    %867 = tpu.dynamic_rotate %855 by %c127_i32_437 dim 1 : vector<16x128xf32>, i32 -> vector<16x128xf32>
    %868 = vector.extract_strided_slice %867 {offsets = [0, 0], sizes = [16, 16], strides = [1, 1]} : vector<16x128xf32> to vector<16x16xf32>
    %c14_438 = arith.constant 14 : index
    %869 = memref.load %arg8[%c14_438] : memref<27xf32, #tpu.memory_space<smem>>
    %870 = vector.broadcast %869 : f32 to vector<16x16xf32>
    %871 = arith.mulf %868, %870 : vector<16x16xf32>
    %872 = arith.addf %866, %871 : vector<16x16xf32>
    %c0_439 = arith.constant 0 : index
    %c1_440 = arith.constant 1 : index
    %c9_441 = arith.constant 9 : index
    %c0_442 = arith.constant 0 : index
    %873 = vector.load %arg13[%c0_439, %c1_440, %c9_441, %c0_442] : memref<2x3x26x128xf32, #tpu.memory_space<vmem>>, vector<1x1x16x128xf32>
    %874 = vector.shape_cast %873 : vector<1x1x16x128xf32> to vector<16x128xf32>
    %c1_i32_443 = arith.constant 1 : i32
    %875 = tpu.dynamic_rotate %874 by %c1_i32_443 dim 1 : vector<16x128xf32>, i32 -> vector<16x128xf32>
    %876 = vector.extract_strided_slice %875 {offsets = [0, 0], sizes = [16, 16], strides = [1, 1]} : vector<16x128xf32> to vector<16x16xf32>
    %c15_444 = arith.constant 15 : index
    %877 = memref.load %arg8[%c15_444] : memref<27xf32, #tpu.memory_space<smem>>
    %878 = vector.broadcast %877 : f32 to vector<16x16xf32>
    %879 = arith.mulf %876, %878 : vector<16x16xf32>
    %880 = arith.addf %872, %879 : vector<16x16xf32>
    %881 = vector.extract_strided_slice %874 {offsets = [0, 0], sizes = [16, 16], strides = [1, 1]} : vector<16x128xf32> to vector<16x16xf32>
    %c16_445 = arith.constant 16 : index
    %882 = memref.load %arg8[%c16_445] : memref<27xf32, #tpu.memory_space<smem>>
    %883 = vector.broadcast %882 : f32 to vector<16x16xf32>
    %884 = arith.mulf %881, %883 : vector<16x16xf32>
    %885 = arith.addf %880, %884 : vector<16x16xf32>
    %c127_i32_446 = arith.constant 127 : i32
    %886 = tpu.dynamic_rotate %874 by %c127_i32_446 dim 1 : vector<16x128xf32>, i32 -> vector<16x128xf32>
    %887 = vector.extract_strided_slice %886 {offsets = [0, 0], sizes = [16, 16], strides = [1, 1]} : vector<16x128xf32> to vector<16x16xf32>
    %c17_447 = arith.constant 17 : index
    %888 = memref.load %arg8[%c17_447] : memref<27xf32, #tpu.memory_space<smem>>
    %889 = vector.broadcast %888 : f32 to vector<16x16xf32>
    %890 = arith.mulf %887, %889 : vector<16x16xf32>
    %891 = arith.addf %885, %890 : vector<16x16xf32>
    %c1_448 = arith.constant 1 : index
    %892 = memref.load %arg9[%c1_448] : memref<3xf32, #tpu.memory_space<smem>>
    %893 = vector.broadcast %892 : f32 to vector<16x16xf32>
    %894 = arith.addf %891, %893 : vector<16x16xf32>
    %895 = math.absf %894 : vector<16x16xf32>
    %cst_449 = arith.constant 0.707106769 : f32
    %896 = vector.broadcast %cst_449 : f32 to vector<16x16xf32>
    %897 = arith.mulf %895, %896 : vector<16x16xf32>
    %cst_450 = arith.constant 0.327591091 : f32
    %898 = vector.broadcast %cst_450 : f32 to vector<16x16xf32>
    %899 = arith.mulf %898, %897 : vector<16x16xf32>
    %cst_451 = arith.constant 1.000000e+00 : f32
    %900 = vector.broadcast %cst_451 : f32 to vector<16x16xf32>
    %901 = arith.addf %900, %899 : vector<16x16xf32>
    %902 = tpu.reciprocal %901 {approx = true} : vector<16x16xf32> -> vector<16x16xf32>
    %903 = arith.mulf %901, %902 : vector<16x16xf32>
    %cst_452 = arith.constant 2.000000e+00 : f32
    %904 = vector.broadcast %cst_452 : f32 to vector<16x16xf32>
    %905 = arith.subf %904, %903 : vector<16x16xf32>
    %906 = arith.mulf %902, %905 : vector<16x16xf32>
    %cst_453 = arith.constant 1.06140542 : f32
    %907 = vector.broadcast %cst_453 : f32 to vector<16x16xf32>
    %908 = arith.mulf %907, %906 : vector<16x16xf32>
    %cst_454 = arith.constant 1.45315206 : f32
    %909 = vector.broadcast %cst_454 : f32 to vector<16x16xf32>
    %910 = arith.subf %908, %909 : vector<16x16xf32>
    %911 = arith.mulf %910, %906 : vector<16x16xf32>
    %cst_455 = arith.constant 1.42141378 : f32
    %912 = vector.broadcast %cst_455 : f32 to vector<16x16xf32>
    %913 = arith.addf %911, %912 : vector<16x16xf32>
    %914 = arith.mulf %913, %906 : vector<16x16xf32>
    %cst_456 = arith.constant 0.284496725 : f32
    %915 = vector.broadcast %cst_456 : f32 to vector<16x16xf32>
    %916 = arith.subf %914, %915 : vector<16x16xf32>
    %917 = arith.mulf %916, %906 : vector<16x16xf32>
    %cst_457 = arith.constant 0.254829586 : f32
    %918 = vector.broadcast %cst_457 : f32 to vector<16x16xf32>
    %919 = arith.addf %917, %918 : vector<16x16xf32>
    %920 = arith.mulf %919, %906 : vector<16x16xf32>
    %cst_458 = arith.constant 0.000000e+00 : f32
    %921 = vector.broadcast %cst_458 : f32 to vector<16x16xf32>
    %922 = arith.subf %921, %897 : vector<16x16xf32>
    %923 = arith.mulf %922, %897 : vector<16x16xf32>
    %924 = math.exp %923 : vector<16x16xf32>
    %925 = arith.mulf %920, %924 : vector<16x16xf32>
    %cst_459 = arith.constant 1.000000e+00 : f32
    %926 = vector.broadcast %cst_459 : f32 to vector<16x16xf32>
    %927 = arith.subf %926, %925 : vector<16x16xf32>
    %928 = math.absf %894 : vector<16x16xf32>
    %929 = arith.mulf %928, %927 : vector<16x16xf32>
    %930 = arith.addf %894, %929 : vector<16x16xf32>
    %cst_460 = arith.constant 5.000000e-01 : f32
    %931 = vector.broadcast %cst_460 : f32 to vector<16x16xf32>
    %932 = arith.mulf %931, %930 : vector<16x16xf32>
    %c1_461 = arith.constant 1 : index
    %c1_462 = arith.constant 1 : index
    %c8_463 = arith.constant 8 : index
    %c0_464 = arith.constant 0 : index
    %933 = vector.load %arg13[%c1_461, %c1_462, %c8_463, %c0_464] : memref<2x3x26x128xf32, #tpu.memory_space<vmem>>, vector<1x1x16x16xf32>
    %934 = vector.shape_cast %933 : vector<1x1x16x16xf32> to vector<16x16xf32>
    %935 = vector.shape_cast %932 : vector<16x16xf32> to vector<1x1x16x16xf32>
    tpu.vector_store %arg13[%c1_461, %c1_462, %c8_463, %c0_464], %935 {strides = array<i32>} : memref<2x3x26x128xf32, #tpu.memory_space<vmem>>, vector<1x1x16x16xf32>,
    %c0_465 = arith.constant 0 : index
    %c2_466 = arith.constant 2 : index
    %c7_467 = arith.constant 7 : index
    %c0_468 = arith.constant 0 : index
    %936 = vector.load %arg13[%c0_465, %c2_466, %c7_467, %c0_468] : memref<2x3x26x128xf32, #tpu.memory_space<vmem>>, vector<1x1x16x128xf32>
    %937 = vector.shape_cast %936 : vector<1x1x16x128xf32> to vector<16x128xf32>
    %c1_i32_469 = arith.constant 1 : i32
    %938 = tpu.dynamic_rotate %937 by %c1_i32_469 dim 1 : vector<16x128xf32>, i32 -> vector<16x128xf32>
    %939 = vector.extract_strided_slice %938 {offsets = [0, 0], sizes = [16, 16], strides = [1, 1]} : vector<16x128xf32> to vector<16x16xf32>
    %c18_470 = arith.constant 18 : index
    %940 = memref.load %arg8[%c18_470] : memref<27xf32, #tpu.memory_space<smem>>
    %941 = vector.broadcast %940 : f32 to vector<16x16xf32>
    %942 = arith.mulf %939, %941 : vector<16x16xf32>
    %943 = vector.extract_strided_slice %937 {offsets = [0, 0], sizes = [16, 16], strides = [1, 1]} : vector<16x128xf32> to vector<16x16xf32>
    %c19_471 = arith.constant 19 : index
    %944 = memref.load %arg8[%c19_471] : memref<27xf32, #tpu.memory_space<smem>>
    %945 = vector.broadcast %944 : f32 to vector<16x16xf32>
    %946 = arith.mulf %943, %945 : vector<16x16xf32>
    %947 = arith.addf %942, %946 : vector<16x16xf32>
    %c127_i32_472 = arith.constant 127 : i32
    %948 = tpu.dynamic_rotate %937 by %c127_i32_472 dim 1 : vector<16x128xf32>, i32 -> vector<16x128xf32>
    %949 = vector.extract_strided_slice %948 {offsets = [0, 0], sizes = [16, 16], strides = [1, 1]} : vector<16x128xf32> to vector<16x16xf32>
    %c20_473 = arith.constant 20 : index
    %950 = memref.load %arg8[%c20_473] : memref<27xf32, #tpu.memory_space<smem>>
    %951 = vector.broadcast %950 : f32 to vector<16x16xf32>
    %952 = arith.mulf %949, %951 : vector<16x16xf32>
    %953 = arith.addf %947, %952 : vector<16x16xf32>
    %c0_474 = arith.constant 0 : index
    %c2_475 = arith.constant 2 : index
    %c8_476 = arith.constant 8 : index
    %c0_477 = arith.constant 0 : index
    %954 = vector.load %arg13[%c0_474, %c2_475, %c8_476, %c0_477] : memref<2x3x26x128xf32, #tpu.memory_space<vmem>>, vector<1x1x16x128xf32>
    %955 = vector.shape_cast %954 : vector<1x1x16x128xf32> to vector<16x128xf32>
    %c1_i32_478 = arith.constant 1 : i32
    %956 = tpu.dynamic_rotate %955 by %c1_i32_478 dim 1 : vector<16x128xf32>, i32 -> vector<16x128xf32>
    %957 = vector.extract_strided_slice %956 {offsets = [0, 0], sizes = [16, 16], strides = [1, 1]} : vector<16x128xf32> to vector<16x16xf32>
    %c21_479 = arith.constant 21 : index
    %958 = memref.load %arg8[%c21_479] : memref<27xf32, #tpu.memory_space<smem>>
    %959 = vector.broadcast %958 : f32 to vector<16x16xf32>
    %960 = arith.mulf %957, %959 : vector<16x16xf32>
    %961 = arith.addf %953, %960 : vector<16x16xf32>
    %962 = vector.extract_strided_slice %955 {offsets = [0, 0], sizes = [16, 16], strides = [1, 1]} : vector<16x128xf32> to vector<16x16xf32>
    %c22_480 = arith.constant 22 : index
    %963 = memref.load %arg8[%c22_480] : memref<27xf32, #tpu.memory_space<smem>>
    %964 = vector.broadcast %963 : f32 to vector<16x16xf32>
    %965 = arith.mulf %962, %964 : vector<16x16xf32>
    %966 = arith.addf %961, %965 : vector<16x16xf32>
    %c127_i32_481 = arith.constant 127 : i32
    %967 = tpu.dynamic_rotate %955 by %c127_i32_481 dim 1 : vector<16x128xf32>, i32 -> vector<16x128xf32>
    %968 = vector.extract_strided_slice %967 {offsets = [0, 0], sizes = [16, 16], strides = [1, 1]} : vector<16x128xf32> to vector<16x16xf32>
    %c23_482 = arith.constant 23 : index
    %969 = memref.load %arg8[%c23_482] : memref<27xf32, #tpu.memory_space<smem>>
    %970 = vector.broadcast %969 : f32 to vector<16x16xf32>
    %971 = arith.mulf %968, %970 : vector<16x16xf32>
    %972 = arith.addf %966, %971 : vector<16x16xf32>
    %c0_483 = arith.constant 0 : index
    %c2_484 = arith.constant 2 : index
    %c9_485 = arith.constant 9 : index
    %c0_486 = arith.constant 0 : index
    %973 = vector.load %arg13[%c0_483, %c2_484, %c9_485, %c0_486] : memref<2x3x26x128xf32, #tpu.memory_space<vmem>>, vector<1x1x16x128xf32>
    %974 = vector.shape_cast %973 : vector<1x1x16x128xf32> to vector<16x128xf32>
    %c1_i32_487 = arith.constant 1 : i32
    %975 = tpu.dynamic_rotate %974 by %c1_i32_487 dim 1 : vector<16x128xf32>, i32 -> vector<16x128xf32>
    %976 = vector.extract_strided_slice %975 {offsets = [0, 0], sizes = [16, 16], strides = [1, 1]} : vector<16x128xf32> to vector<16x16xf32>
    %c24_488 = arith.constant 24 : index
    %977 = memref.load %arg8[%c24_488] : memref<27xf32, #tpu.memory_space<smem>>
    %978 = vector.broadcast %977 : f32 to vector<16x16xf32>
    %979 = arith.mulf %976, %978 : vector<16x16xf32>
    %980 = arith.addf %972, %979 : vector<16x16xf32>
    %981 = vector.extract_strided_slice %974 {offsets = [0, 0], sizes = [16, 16], strides = [1, 1]} : vector<16x128xf32> to vector<16x16xf32>
    %c25_489 = arith.constant 25 : index
    %982 = memref.load %arg8[%c25_489] : memref<27xf32, #tpu.memory_space<smem>>
    %983 = vector.broadcast %982 : f32 to vector<16x16xf32>
    %984 = arith.mulf %981, %983 : vector<16x16xf32>
    %985 = arith.addf %980, %984 : vector<16x16xf32>
    %c127_i32_490 = arith.constant 127 : i32
    %986 = tpu.dynamic_rotate %974 by %c127_i32_490 dim 1 : vector<16x128xf32>, i32 -> vector<16x128xf32>
    %987 = vector.extract_strided_slice %986 {offsets = [0, 0], sizes = [16, 16], strides = [1, 1]} : vector<16x128xf32> to vector<16x16xf32>
    %c26_491 = arith.constant 26 : index
    %988 = memref.load %arg8[%c26_491] : memref<27xf32, #tpu.memory_space<smem>>
    %989 = vector.broadcast %988 : f32 to vector<16x16xf32>
    %990 = arith.mulf %987, %989 : vector<16x16xf32>
    %991 = arith.addf %985, %990 : vector<16x16xf32>
    %c2_492 = arith.constant 2 : index
    %992 = memref.load %arg9[%c2_492] : memref<3xf32, #tpu.memory_space<smem>>
    %993 = vector.broadcast %992 : f32 to vector<16x16xf32>
    %994 = arith.addf %991, %993 : vector<16x16xf32>
    %995 = math.absf %994 : vector<16x16xf32>
    %cst_493 = arith.constant 0.707106769 : f32
    %996 = vector.broadcast %cst_493 : f32 to vector<16x16xf32>
    %997 = arith.mulf %995, %996 : vector<16x16xf32>
    %cst_494 = arith.constant 0.327591091 : f32
    %998 = vector.broadcast %cst_494 : f32 to vector<16x16xf32>
    %999 = arith.mulf %998, %997 : vector<16x16xf32>
    %cst_495 = arith.constant 1.000000e+00 : f32
    %1000 = vector.broadcast %cst_495 : f32 to vector<16x16xf32>
    %1001 = arith.addf %1000, %999 : vector<16x16xf32>
    %1002 = tpu.reciprocal %1001 {approx = true} : vector<16x16xf32> -> vector<16x16xf32>
    %1003 = arith.mulf %1001, %1002 : vector<16x16xf32>
    %cst_496 = arith.constant 2.000000e+00 : f32
    %1004 = vector.broadcast %cst_496 : f32 to vector<16x16xf32>
    %1005 = arith.subf %1004, %1003 : vector<16x16xf32>
    %1006 = arith.mulf %1002, %1005 : vector<16x16xf32>
    %cst_497 = arith.constant 1.06140542 : f32
    %1007 = vector.broadcast %cst_497 : f32 to vector<16x16xf32>
    %1008 = arith.mulf %1007, %1006 : vector<16x16xf32>
    %cst_498 = arith.constant 1.45315206 : f32
    %1009 = vector.broadcast %cst_498 : f32 to vector<16x16xf32>
    %1010 = arith.subf %1008, %1009 : vector<16x16xf32>
    %1011 = arith.mulf %1010, %1006 : vector<16x16xf32>
    %cst_499 = arith.constant 1.42141378 : f32
    %1012 = vector.broadcast %cst_499 : f32 to vector<16x16xf32>
    %1013 = arith.addf %1011, %1012 : vector<16x16xf32>
    %1014 = arith.mulf %1013, %1006 : vector<16x16xf32>
    %cst_500 = arith.constant 0.284496725 : f32
    %1015 = vector.broadcast %cst_500 : f32 to vector<16x16xf32>
    %1016 = arith.subf %1014, %1015 : vector<16x16xf32>
    %1017 = arith.mulf %1016, %1006 : vector<16x16xf32>
    %cst_501 = arith.constant 0.254829586 : f32
    %1018 = vector.broadcast %cst_501 : f32 to vector<16x16xf32>
    %1019 = arith.addf %1017, %1018 : vector<16x16xf32>
    %1020 = arith.mulf %1019, %1006 : vector<16x16xf32>
    %cst_502 = arith.constant 0.000000e+00 : f32
    %1021 = vector.broadcast %cst_502 : f32 to vector<16x16xf32>
    %1022 = arith.subf %1021, %997 : vector<16x16xf32>
    %1023 = arith.mulf %1022, %997 : vector<16x16xf32>
    %1024 = math.exp %1023 : vector<16x16xf32>
    %1025 = arith.mulf %1020, %1024 : vector<16x16xf32>
    %cst_503 = arith.constant 1.000000e+00 : f32
    %1026 = vector.broadcast %cst_503 : f32 to vector<16x16xf32>
    %1027 = arith.subf %1026, %1025 : vector<16x16xf32>
    %1028 = math.absf %994 : vector<16x16xf32>
    %1029 = arith.mulf %1028, %1027 : vector<16x16xf32>
    %1030 = arith.addf %994, %1029 : vector<16x16xf32>
    %cst_504 = arith.constant 5.000000e-01 : f32
    %1031 = vector.broadcast %cst_504 : f32 to vector<16x16xf32>
    %1032 = arith.mulf %1031, %1030 : vector<16x16xf32>
    %c1_505 = arith.constant 1 : index
    %c2_506 = arith.constant 2 : index
    %c8_507 = arith.constant 8 : index
    %c0_508 = arith.constant 0 : index
    %1033 = vector.load %arg13[%c1_505, %c2_506, %c8_507, %c0_508] : memref<2x3x26x128xf32, #tpu.memory_space<vmem>>, vector<1x1x16x16xf32>
    %1034 = vector.shape_cast %1033 : vector<1x1x16x16xf32> to vector<16x16xf32>
    %1035 = vector.shape_cast %1032 : vector<16x16xf32> to vector<1x1x16x16xf32>
    tpu.vector_store %arg13[%c1_505, %c2_506, %c8_507, %c0_508], %1035 {strides = array<i32>} : memref<2x3x26x128xf32, #tpu.memory_space<vmem>>, vector<1x1x16x16xf32>,
    %c1_509 = arith.constant 1 : index
    %c0_510 = arith.constant 0 : index
    %c8_511 = arith.constant 8 : index
    %c0_512 = arith.constant 0 : index
    %1036 = vector.load %arg13[%c1_509, %c0_510, %c8_511, %c0_512] : memref<2x3x26x128xf32, #tpu.memory_space<vmem>>, vector<1x1x16x128xf32>
    %1037 = vector.shape_cast %1036 : vector<1x1x16x128xf32> to vector<16x128xf32>
    %c126_i32 = arith.constant 126 : i32
    %1038 = tpu.dynamic_rotate %1037 by %c126_i32 dim 1 : vector<16x128xf32>, i32 -> vector<16x128xf32>
    %1039 = vector.extract_strided_slice %1038 {offsets = [0, 0], sizes = [16, 16], strides = [1, 1]} : vector<16x128xf32> to vector<16x16xf32>
    %c0_513 = arith.constant 0 : index
    %1040 = memref.load %arg10[%c0_513] : memref<9xf32, #tpu.memory_space<smem>>
    %1041 = vector.broadcast %1040 : f32 to vector<16x16xf32>
    %1042 = arith.mulf %1039, %1041 : vector<16x16xf32>
    %c1_514 = arith.constant 1 : index
    %c1_515 = arith.constant 1 : index
    %c8_516 = arith.constant 8 : index
    %c0_517 = arith.constant 0 : index
    %1043 = vector.load %arg13[%c1_514, %c1_515, %c8_516, %c0_517] : memref<2x3x26x128xf32, #tpu.memory_space<vmem>>, vector<1x1x16x128xf32>
    %1044 = vector.shape_cast %1043 : vector<1x1x16x128xf32> to vector<16x128xf32>
    %c127_i32_518 = arith.constant 127 : i32
    %1045 = tpu.dynamic_rotate %1044 by %c127_i32_518 dim 1 : vector<16x128xf32>, i32 -> vector<16x128xf32>
    %1046 = vector.extract_strided_slice %1045 {offsets = [0, 0], sizes = [16, 16], strides = [1, 1]} : vector<16x128xf32> to vector<16x16xf32>
    %c1_519 = arith.constant 1 : index
    %1047 = memref.load %arg10[%c1_519] : memref<9xf32, #tpu.memory_space<smem>>
    %1048 = vector.broadcast %1047 : f32 to vector<16x16xf32>
    %1049 = arith.mulf %1046, %1048 : vector<16x16xf32>
    %1050 = arith.addf %1042, %1049 : vector<16x16xf32>
    %c1_520 = arith.constant 1 : index
    %c2_521 = arith.constant 2 : index
    %c8_522 = arith.constant 8 : index
    %c0_523 = arith.constant 0 : index
    %1051 = vector.load %arg13[%c1_520, %c2_521, %c8_522, %c0_523] : memref<2x3x26x128xf32, #tpu.memory_space<vmem>>, vector<1x1x16x128xf32>
    %1052 = vector.shape_cast %1051 : vector<1x1x16x128xf32> to vector<16x128xf32>
    %1053 = vector.extract_strided_slice %1052 {offsets = [0, 0], sizes = [16, 16], strides = [1, 1]} : vector<16x128xf32> to vector<16x16xf32>
    %c2_524 = arith.constant 2 : index
    %1054 = memref.load %arg10[%c2_524] : memref<9xf32, #tpu.memory_space<smem>>
    %1055 = vector.broadcast %1054 : f32 to vector<16x16xf32>
    %1056 = arith.mulf %1053, %1055 : vector<16x16xf32>
    %1057 = arith.addf %1050, %1056 : vector<16x16xf32>
    %c0_525 = arith.constant 0 : index
    %c0_526 = arith.constant 0 : index
    %c0_527 = arith.constant 0 : index
    %1058 = vector.load %arg14[%c0_525, %c0_526, %c0_527] : memref<3x16x128xf32, #tpu.memory_space<vmem>>, vector<1x16x16xf32>
    %1059 = vector.shape_cast %1058 : vector<1x16x16xf32> to vector<16x16xf32>
    %1060 = arith.addf %1059, %1057 : vector<16x16xf32>
    %c0_528 = arith.constant 0 : index
    %1061 = memref.load %arg11[%c0_528] : memref<3xf32, #tpu.memory_space<smem>>
    %1062 = vector.broadcast %1061 : f32 to vector<16x16xf32>
    %1063 = arith.addf %1060, %1062 : vector<16x16xf32>
    %cst_529 = arith.constant dense<0.000000e+00> : vector<16xf32>
    %1064 = vector.multi_reduction <add>, %1063, %cst_529 [1] : vector<16x16xf32> to vector<16xf32>
    %1065 = vector.shape_cast %1064 : vector<16xf32> to vector<16x1xf32>
    %cst_530 = arith.constant dense<0.000000e+00> : vector<1xf32>
    %1066 = vector.multi_reduction <add>, %1065, %cst_530 [0] : vector<16x1xf32> to vector<1xf32>
    %1067 = vector.shape_cast %1066 : vector<1xf32> to vector<1x1xf32>
    %1068 = arith.mulf %1063, %1063 : vector<16x16xf32>
    %cst_531 = arith.constant dense<0.000000e+00> : vector<16xf32>
    %1069 = vector.multi_reduction <add>, %1068, %cst_531 [1] : vector<16x16xf32> to vector<16xf32>
    %1070 = vector.shape_cast %1069 : vector<16xf32> to vector<16x1xf32>
    %cst_532 = arith.constant dense<0.000000e+00> : vector<1xf32>
    %1071 = vector.multi_reduction <add>, %1070, %cst_532 [0] : vector<16x1xf32> to vector<1xf32>
    %1072 = vector.shape_cast %1071 : vector<1xf32> to vector<1x1xf32>
    %cst_533 = arith.constant 3.906250e-03 : f32
    %1073 = vector.broadcast %cst_533 : f32 to vector<1x1xf32>
    %1074 = arith.mulf %1067, %1073 : vector<1x1xf32>
    %cst_534 = arith.constant 3.906250e-03 : f32
    %1075 = vector.broadcast %cst_534 : f32 to vector<1x1xf32>
    %1076 = arith.mulf %1072, %1075 : vector<1x1xf32>
    %1077 = arith.mulf %1074, %1074 : vector<1x1xf32>
    %1078 = arith.subf %1076, %1077 : vector<1x1xf32>
    %1079 = vector.broadcast %1074 : vector<1x1xf32> to vector<16x16xf32>
    %1080 = arith.subf %1063, %1079 : vector<16x16xf32>
    %cst_535 = arith.constant 9.99999974E-6 : f32
    %1081 = vector.broadcast %cst_535 : f32 to vector<1x1xf32>
    %1082 = arith.addf %1078, %1081 : vector<1x1xf32>
    %1083 = math.rsqrt %1082 : vector<1x1xf32>
    %1084 = vector.broadcast %1083 : vector<1x1xf32> to vector<16x16xf32>
    %1085 = arith.mulf %1080, %1084 : vector<16x16xf32>
    %c0_536 = arith.constant 0 : index
    %c0_537 = arith.constant 0 : index
    %c0_538 = arith.constant 0 : index
    %c0_539 = arith.constant 0 : index
    %1086 = vector.load %arg12[%c0_536, %c0_537, %c0_538, %c0_539] : memref<1x3x16x16xf32, #tpu.memory_space<vmem>>, vector<1x1x16x16xf32>
    %1087 = vector.shape_cast %1086 : vector<1x1x16x16xf32> to vector<16x16xf32>
    %1088 = vector.shape_cast %1085 : vector<16x16xf32> to vector<1x1x16x16xf32>
    tpu.vector_store %arg12[%c0_536, %c0_537, %c0_538, %c0_539], %1088 {strides = array<i32>} : memref<1x3x16x16xf32, #tpu.memory_space<vmem>>, vector<1x1x16x16xf32>,
    %c1_540 = arith.constant 1 : index
    %c0_541 = arith.constant 0 : index
    %c8_542 = arith.constant 8 : index
    %c0_543 = arith.constant 0 : index
    %1089 = vector.load %arg13[%c1_540, %c0_541, %c8_542, %c0_543] : memref<2x3x26x128xf32, #tpu.memory_space<vmem>>, vector<1x1x16x128xf32>
    %1090 = vector.shape_cast %1089 : vector<1x1x16x128xf32> to vector<16x128xf32>
    %c126_i32_544 = arith.constant 126 : i32
    %1091 = tpu.dynamic_rotate %1090 by %c126_i32_544 dim 1 : vector<16x128xf32>, i32 -> vector<16x128xf32>
    %1092 = vector.extract_strided_slice %1091 {offsets = [0, 0], sizes = [16, 16], strides = [1, 1]} : vector<16x128xf32> to vector<16x16xf32>
    %c3_545 = arith.constant 3 : index
    %1093 = memref.load %arg10[%c3_545] : memref<9xf32, #tpu.memory_space<smem>>
    %1094 = vector.broadcast %1093 : f32 to vector<16x16xf32>
    %1095 = arith.mulf %1092, %1094 : vector<16x16xf32>
    %c1_546 = arith.constant 1 : index
    %c1_547 = arith.constant 1 : index
    %c8_548 = arith.constant 8 : index
    %c0_549 = arith.constant 0 : index
    %1096 = vector.load %arg13[%c1_546, %c1_547, %c8_548, %c0_549] : memref<2x3x26x128xf32, #tpu.memory_space<vmem>>, vector<1x1x16x128xf32>
    %1097 = vector.shape_cast %1096 : vector<1x1x16x128xf32> to vector<16x128xf32>
    %c127_i32_550 = arith.constant 127 : i32
    %1098 = tpu.dynamic_rotate %1097 by %c127_i32_550 dim 1 : vector<16x128xf32>, i32 -> vector<16x128xf32>
    %1099 = vector.extract_strided_slice %1098 {offsets = [0, 0], sizes = [16, 16], strides = [1, 1]} : vector<16x128xf32> to vector<16x16xf32>
    %c4_551 = arith.constant 4 : index
    %1100 = memref.load %arg10[%c4_551] : memref<9xf32, #tpu.memory_space<smem>>
    %1101 = vector.broadcast %1100 : f32 to vector<16x16xf32>
    %1102 = arith.mulf %1099, %1101 : vector<16x16xf32>
    %1103 = arith.addf %1095, %1102 : vector<16x16xf32>
    %c1_552 = arith.constant 1 : index
    %c2_553 = arith.constant 2 : index
    %c8_554 = arith.constant 8 : index
    %c0_555 = arith.constant 0 : index
    %1104 = vector.load %arg13[%c1_552, %c2_553, %c8_554, %c0_555] : memref<2x3x26x128xf32, #tpu.memory_space<vmem>>, vector<1x1x16x128xf32>
    %1105 = vector.shape_cast %1104 : vector<1x1x16x128xf32> to vector<16x128xf32>
    %1106 = vector.extract_strided_slice %1105 {offsets = [0, 0], sizes = [16, 16], strides = [1, 1]} : vector<16x128xf32> to vector<16x16xf32>
    %c5_556 = arith.constant 5 : index
    %1107 = memref.load %arg10[%c5_556] : memref<9xf32, #tpu.memory_space<smem>>
    %1108 = vector.broadcast %1107 : f32 to vector<16x16xf32>
    %1109 = arith.mulf %1106, %1108 : vector<16x16xf32>
    %1110 = arith.addf %1103, %1109 : vector<16x16xf32>
    %c1_557 = arith.constant 1 : index
    %c0_558 = arith.constant 0 : index
    %c0_559 = arith.constant 0 : index
    %1111 = vector.load %arg14[%c1_557, %c0_558, %c0_559] : memref<3x16x128xf32, #tpu.memory_space<vmem>>, vector<1x16x16xf32>
    %1112 = vector.shape_cast %1111 : vector<1x16x16xf32> to vector<16x16xf32>
    %1113 = arith.addf %1112, %1110 : vector<16x16xf32>
    %c1_560 = arith.constant 1 : index
    %1114 = memref.load %arg11[%c1_560] : memref<3xf32, #tpu.memory_space<smem>>
    %1115 = vector.broadcast %1114 : f32 to vector<16x16xf32>
    %1116 = arith.addf %1113, %1115 : vector<16x16xf32>
    %cst_561 = arith.constant dense<0.000000e+00> : vector<16xf32>
    %1117 = vector.multi_reduction <add>, %1116, %cst_561 [1] : vector<16x16xf32> to vector<16xf32>
    %1118 = vector.shape_cast %1117 : vector<16xf32> to vector<16x1xf32>
    %cst_562 = arith.constant dense<0.000000e+00> : vector<1xf32>
    %1119 = vector.multi_reduction <add>, %1118, %cst_562 [0] : vector<16x1xf32> to vector<1xf32>
    %1120 = vector.shape_cast %1119 : vector<1xf32> to vector<1x1xf32>
    %1121 = arith.mulf %1116, %1116 : vector<16x16xf32>
    %cst_563 = arith.constant dense<0.000000e+00> : vector<16xf32>
    %1122 = vector.multi_reduction <add>, %1121, %cst_563 [1] : vector<16x16xf32> to vector<16xf32>
    %1123 = vector.shape_cast %1122 : vector<16xf32> to vector<16x1xf32>
    %cst_564 = arith.constant dense<0.000000e+00> : vector<1xf32>
    %1124 = vector.multi_reduction <add>, %1123, %cst_564 [0] : vector<16x1xf32> to vector<1xf32>
    %1125 = vector.shape_cast %1124 : vector<1xf32> to vector<1x1xf32>
    %cst_565 = arith.constant 3.906250e-03 : f32
    %1126 = vector.broadcast %cst_565 : f32 to vector<1x1xf32>
    %1127 = arith.mulf %1120, %1126 : vector<1x1xf32>
    %cst_566 = arith.constant 3.906250e-03 : f32
    %1128 = vector.broadcast %cst_566 : f32 to vector<1x1xf32>
    %1129 = arith.mulf %1125, %1128 : vector<1x1xf32>
    %1130 = arith.mulf %1127, %1127 : vector<1x1xf32>
    %1131 = arith.subf %1129, %1130 : vector<1x1xf32>
    %1132 = vector.broadcast %1127 : vector<1x1xf32> to vector<16x16xf32>
    %1133 = arith.subf %1116, %1132 : vector<16x16xf32>
    %cst_567 = arith.constant 9.99999974E-6 : f32
    %1134 = vector.broadcast %cst_567 : f32 to vector<1x1xf32>
    %1135 = arith.addf %1131, %1134 : vector<1x1xf32>
    %1136 = math.rsqrt %1135 : vector<1x1xf32>
    %1137 = vector.broadcast %1136 : vector<1x1xf32> to vector<16x16xf32>
    %1138 = arith.mulf %1133, %1137 : vector<16x16xf32>
    %c0_568 = arith.constant 0 : index
    %c1_569 = arith.constant 1 : index
    %c0_570 = arith.constant 0 : index
    %c0_571 = arith.constant 0 : index
    %1139 = vector.load %arg12[%c0_568, %c1_569, %c0_570, %c0_571] : memref<1x3x16x16xf32, #tpu.memory_space<vmem>>, vector<1x1x16x16xf32>
    %1140 = vector.shape_cast %1139 : vector<1x1x16x16xf32> to vector<16x16xf32>
    %1141 = vector.shape_cast %1138 : vector<16x16xf32> to vector<1x1x16x16xf32>
    tpu.vector_store %arg12[%c0_568, %c1_569, %c0_570, %c0_571], %1141 {strides = array<i32>} : memref<1x3x16x16xf32, #tpu.memory_space<vmem>>, vector<1x1x16x16xf32>,
    %c1_572 = arith.constant 1 : index
    %c0_573 = arith.constant 0 : index
    %c8_574 = arith.constant 8 : index
    %c0_575 = arith.constant 0 : index
    %1142 = vector.load %arg13[%c1_572, %c0_573, %c8_574, %c0_575] : memref<2x3x26x128xf32, #tpu.memory_space<vmem>>, vector<1x1x16x128xf32>
    %1143 = vector.shape_cast %1142 : vector<1x1x16x128xf32> to vector<16x128xf32>
    %c126_i32_576 = arith.constant 126 : i32
    %1144 = tpu.dynamic_rotate %1143 by %c126_i32_576 dim 1 : vector<16x128xf32>, i32 -> vector<16x128xf32>
    %1145 = vector.extract_strided_slice %1144 {offsets = [0, 0], sizes = [16, 16], strides = [1, 1]} : vector<16x128xf32> to vector<16x16xf32>
    %c6_577 = arith.constant 6 : index
    %1146 = memref.load %arg10[%c6_577] : memref<9xf32, #tpu.memory_space<smem>>
    %1147 = vector.broadcast %1146 : f32 to vector<16x16xf32>
    %1148 = arith.mulf %1145, %1147 : vector<16x16xf32>
    %c1_578 = arith.constant 1 : index
    %c1_579 = arith.constant 1 : index
    %c8_580 = arith.constant 8 : index
    %c0_581 = arith.constant 0 : index
    %1149 = vector.load %arg13[%c1_578, %c1_579, %c8_580, %c0_581] : memref<2x3x26x128xf32, #tpu.memory_space<vmem>>, vector<1x1x16x128xf32>
    %1150 = vector.shape_cast %1149 : vector<1x1x16x128xf32> to vector<16x128xf32>
    %c127_i32_582 = arith.constant 127 : i32
    %1151 = tpu.dynamic_rotate %1150 by %c127_i32_582 dim 1 : vector<16x128xf32>, i32 -> vector<16x128xf32>
    %1152 = vector.extract_strided_slice %1151 {offsets = [0, 0], sizes = [16, 16], strides = [1, 1]} : vector<16x128xf32> to vector<16x16xf32>
    %c7_583 = arith.constant 7 : index
    %1153 = memref.load %arg10[%c7_583] : memref<9xf32, #tpu.memory_space<smem>>
    %1154 = vector.broadcast %1153 : f32 to vector<16x16xf32>
    %1155 = arith.mulf %1152, %1154 : vector<16x16xf32>
    %1156 = arith.addf %1148, %1155 : vector<16x16xf32>
    %c1_584 = arith.constant 1 : index
    %c2_585 = arith.constant 2 : index
    %c8_586 = arith.constant 8 : index
    %c0_587 = arith.constant 0 : index
    %1157 = vector.load %arg13[%c1_584, %c2_585, %c8_586, %c0_587] : memref<2x3x26x128xf32, #tpu.memory_space<vmem>>, vector<1x1x16x128xf32>
    %1158 = vector.shape_cast %1157 : vector<1x1x16x128xf32> to vector<16x128xf32>
    %1159 = vector.extract_strided_slice %1158 {offsets = [0, 0], sizes = [16, 16], strides = [1, 1]} : vector<16x128xf32> to vector<16x16xf32>
    %c8_588 = arith.constant 8 : index
    %1160 = memref.load %arg10[%c8_588] : memref<9xf32, #tpu.memory_space<smem>>
    %1161 = vector.broadcast %1160 : f32 to vector<16x16xf32>
    %1162 = arith.mulf %1159, %1161 : vector<16x16xf32>
    %1163 = arith.addf %1156, %1162 : vector<16x16xf32>
    %c2_589 = arith.constant 2 : index
    %c0_590 = arith.constant 0 : index
    %c0_591 = arith.constant 0 : index
    %1164 = vector.load %arg14[%c2_589, %c0_590, %c0_591] : memref<3x16x128xf32, #tpu.memory_space<vmem>>, vector<1x16x16xf32>
    %1165 = vector.shape_cast %1164 : vector<1x16x16xf32> to vector<16x16xf32>
    %1166 = arith.addf %1165, %1163 : vector<16x16xf32>
    %c2_592 = arith.constant 2 : index
    %1167 = memref.load %arg11[%c2_592] : memref<3xf32, #tpu.memory_space<smem>>
    %1168 = vector.broadcast %1167 : f32 to vector<16x16xf32>
    %1169 = arith.addf %1166, %1168 : vector<16x16xf32>
    %cst_593 = arith.constant dense<0.000000e+00> : vector<16xf32>
    %1170 = vector.multi_reduction <add>, %1169, %cst_593 [1] : vector<16x16xf32> to vector<16xf32>
    %1171 = vector.shape_cast %1170 : vector<16xf32> to vector<16x1xf32>
    %cst_594 = arith.constant dense<0.000000e+00> : vector<1xf32>
    %1172 = vector.multi_reduction <add>, %1171, %cst_594 [0] : vector<16x1xf32> to vector<1xf32>
    %1173 = vector.shape_cast %1172 : vector<1xf32> to vector<1x1xf32>
    %1174 = arith.mulf %1169, %1169 : vector<16x16xf32>
    %cst_595 = arith.constant dense<0.000000e+00> : vector<16xf32>
    %1175 = vector.multi_reduction <add>, %1174, %cst_595 [1] : vector<16x16xf32> to vector<16xf32>
    %1176 = vector.shape_cast %1175 : vector<16xf32> to vector<16x1xf32>
    %cst_596 = arith.constant dense<0.000000e+00> : vector<1xf32>
    %1177 = vector.multi_reduction <add>, %1176, %cst_596 [0] : vector<16x1xf32> to vector<1xf32>
    %1178 = vector.shape_cast %1177 : vector<1xf32> to vector<1x1xf32>
    %cst_597 = arith.constant 3.906250e-03 : f32
    %1179 = vector.broadcast %cst_597 : f32 to vector<1x1xf32>
    %1180 = arith.mulf %1173, %1179 : vector<1x1xf32>
    %cst_598 = arith.constant 3.906250e-03 : f32
    %1181 = vector.broadcast %cst_598 : f32 to vector<1x1xf32>
    %1182 = arith.mulf %1178, %1181 : vector<1x1xf32>
    %1183 = arith.mulf %1180, %1180 : vector<1x1xf32>
    %1184 = arith.subf %1182, %1183 : vector<1x1xf32>
    %1185 = vector.broadcast %1180 : vector<1x1xf32> to vector<16x16xf32>
    %1186 = arith.subf %1169, %1185 : vector<16x16xf32>
    %cst_599 = arith.constant 9.99999974E-6 : f32
    %1187 = vector.broadcast %cst_599 : f32 to vector<1x1xf32>
    %1188 = arith.addf %1184, %1187 : vector<1x1xf32>
    %1189 = math.rsqrt %1188 : vector<1x1xf32>
    %1190 = vector.broadcast %1189 : vector<1x1xf32> to vector<16x16xf32>
    %1191 = arith.mulf %1186, %1190 : vector<16x16xf32>
    %c0_600 = arith.constant 0 : index
    %c2_601 = arith.constant 2 : index
    %c0_602 = arith.constant 0 : index
    %c0_603 = arith.constant 0 : index
    %1192 = vector.load %arg12[%c0_600, %c2_601, %c0_602, %c0_603] : memref<1x3x16x16xf32, #tpu.memory_space<vmem>>, vector<1x1x16x16xf32>
    %1193 = vector.shape_cast %1192 : vector<1x1x16x16xf32> to vector<16x16xf32>
    %1194 = vector.shape_cast %1191 : vector<16x16xf32> to vector<1x1x16x16xf32>
    tpu.vector_store %arg12[%c0_600, %c2_601, %c0_602, %c0_603], %1194 {strides = array<i32>} : memref<1x3x16x16xf32, #tpu.memory_space<vmem>>, vector<1x1x16x16xf32>,
    return
  }
  func.func @transform_0(%arg0: i32) -> (i32, i32, i32, i32) {
    %c0_i32 = arith.constant 0 : i32
    %c0_i32_0 = arith.constant 0 : i32
    %c0_i32_1 = arith.constant 0 : i32
    %c0_i32_2 = arith.constant 0 : i32
    return %arg0, %c0_i32, %c0_i32_0, %c0_i32_1 : i32, i32, i32, i32
  }
  func.func @transform_1(%arg0: i32) -> i32 {
    %c0_i32 = arith.constant 0 : i32
    %c0_i32_0 = arith.constant 0 : i32
    return %c0_i32 : i32
  }
  func.func @transform_2(%arg0: i32) -> i32 {
    %c0_i32 = arith.constant 0 : i32
    %c0_i32_0 = arith.constant 0 : i32
    return %c0_i32 : i32
  }
  func.func @transform_3(%arg0: i32) -> i32 {
    %c0_i32 = arith.constant 0 : i32
    %c0_i32_0 = arith.constant 0 : i32
    return %c0_i32 : i32
  }
  func.func @transform_4(%arg0: i32) -> i32 {
    %c0_i32 = arith.constant 0 : i32
    %c0_i32_0 = arith.constant 0 : i32
    return %c0_i32 : i32
  }
  func.func @transform_5(%arg0: i32) -> i32 {
    %c0_i32 = arith.constant 0 : i32
    %c0_i32_0 = arith.constant 0 : i32
    return %c0_i32 : i32
  }
  func.func @transform_6(%arg0: i32) -> i32 {
    %c0_i32 = arith.constant 0 : i32
    %c0_i32_0 = arith.constant 0 : i32
    return %c0_i32 : i32
  }
  func.func @transform_7(%arg0: i32) -> i32 {
    %c0_i32 = arith.constant 0 : i32
    %c0_i32_0 = arith.constant 0 : i32
    return %c0_i32 : i32
  }
  func.func @transform_8(%arg0: i32) -> i32 {
    %c0_i32 = arith.constant 0 : i32
    %c0_i32_0 = arith.constant 0 : i32
    return %c0_i32 : i32
  }
  func.func @transform_9(%arg0: i32) -> i32 {
    %c0_i32 = arith.constant 0 : i32
    %c0_i32_0 = arith.constant 0 : i32
    return %c0_i32 : i32
  }
  func.func @transform_10(%arg0: i32) -> i32 {
    %c0_i32 = arith.constant 0 : i32
    %c0_i32_0 = arith.constant 0 : i32
    return %c0_i32 : i32
  }
  func.func @transform_11(%arg0: i32) -> (i32, i32, i32, i32) {
    %c0_i32 = arith.constant 0 : i32
    %c0_i32_0 = arith.constant 0 : i32
    %c0_i32_1 = arith.constant 0 : i32
    %c0_i32_2 = arith.constant 0 : i32
    return %arg0, %c0_i32, %c0_i32_0, %c0_i32_1 : i32, i32, i32, i32
  }
}

</mosaic_0001>

<bundles_post_ra>
// kernel: tokenized_mlp_block_l_forward.1
= control target key start
LH: loop header
LB: loop body
LE: loop exit
PB: predicated region body
PF: predicated region fallthrough
CT: control target
= control target key end

     0   :  { %s4899_s0 = inlined_call_operand.vmem [shape: f32[2,3,16,16], index: 0, kind: input, shape index: {}]   ;;  %s4900_s1 = inlined_call_operand.vmem [shape: f32[81], index: 1, kind: input, shape index: {}]   ;;  %s4901_s2 = inlined_call_operand.vmem [shape: f32[3], index: 2, kind: input, shape index: {}]   ;;  %s4902_s3 = inlined_call_operand.vmem [shape: f32[3], index: 3, kind: input, shape index: {}]   ;;  %s4903_s4 = inlined_call_operand.vmem [shape: f32[3], index: 4, kind: input, shape index: {}]   ;;  %s4904_s5 = inlined_call_operand.vmem [shape: f32[9], index: 5, kind: input, shape index: {}]   ;;  %s4905_s6 = inlined_call_operand.vmem [shape: f32[3], index: 6, kind: input, shape index: {}]   ;;  %s4906_s7 = inlined_call_operand.vmem [shape: f32[27], index: 7, kind: input, shape index: {}]   ;;  %s4907_s8 = inlined_call_operand.vmem [shape: f32[3], index: 8, kind: input, shape index: {}]   ;;  %s4908_s9 = inlined_call_operand.vmem [shape: f32[9], index: 9, kind: input, shape index: {}]   ;;  %s4909_s10 = inlined_call_operand.vmem [shape: f32[3], index: 10, kind: input, shape index: {}]   ;;  %s4910_s11 = inlined_call_operand.hbm [shape: f32[2,3,16,16], index: 11, kind: output, shape index: {}]  }
   0x1   :  { %4958 = sst [smem:[#allocation109_spill]] %s4899_s0 }
   0x2   :  { %4959 = sst [smem:[#allocation110_spill]] %s4900_s1 }
   0x3   :  { %4960 = sst [smem:[#allocation111_spill]] %s4901_s2 }
   0x4   :  { %4961 = sst [smem:[#allocation112_spill]] %s4902_s3 }
   0x5   :  { %4962 = sst [smem:[#allocation113_spill]] %s4903_s4 }
   0x6   :  { %4963 = sst [smem:[#allocation114_spill]] %s4904_s5 }
   0x7   :  { %4964 = sst [smem:[#allocation115_spill]] %s4905_s6 }
   0x8   :  { %4965 = sst [smem:[#allocation116_spill]] %s4906_s7 }
   0x9   :  { %4966 = sst [smem:[#allocation117_spill]] %s4907_s8 }
   0xa   :  { %4967 = sst [smem:[#allocation118_spill]] %s4908_s9 }
   0xb   :  { %4968 = sst [smem:[#allocation119_spill]] %s4909_s10 }
   0xc   :  { %4969 = sst [smem:[#allocation120_spill]] %s4910_s11 }
   0xd   :  { %16 = vsyncpa [#allocation6], 0 }
   0xe   :  { %17 = vsyncpa [#allocation8], 0 }
   0xf   :  { %18 = vsyncpa [#allocation11], 0 }
  0x10   :  { %19 = vsyncpa [#allocation14], 0 }
  0x11   :  { %20 = vsyncpa [#allocation17], 0 }
  0x12   :  { %21 = vsyncpa [#allocation20], 0 }
  0x13   :  { %22 = vsyncpa [#allocation5], 0 }
  0x14   :  { %24 = vsyncpa [#allocation5 + $0x1], 0  ;;  %s3001_s17 = smov 0   ;;  %s3003_s18 = smov 0  }
  0x15   :  { %s3005_s19 = smov 0   ;;  %s3007_s20 = smov 0  }
  0x16 LB: > { %4970 = sst [smem:[#allocation29_spill]] %s2910_s17  ;;  %s3022_s21 = sadd.s32 4294967295, %s2922_s20   ;;  %s2922_s20 = sphi %s3007_s20, %s5260_s20   ;;  %s2918_s19 = sphi %s3005_s19, %s5263_s19   ;;  %s2914_s18 = sphi %s3003_s18, %s5262_s18   ;;  %s2910_s17 = sphi %s3001_s17, %s5261_s17  }
  0x17   : > { %4971 = sst [smem:[#allocation30_spill]] %s2914_s18  ;;  %s2319_s22 = sadd.s32 4294967294, %s2922_s20  }
  0x18   : > { %4972 = sst [smem:[#allocation31_spill]] %s2918_s19  ;;  %s3026_s23 = sadd.s32 1, %s2922_s20  }
  0x19   : > { %4973 = sst [smem:[#allocation32_spill]] %s2922_s20  ;;  %s273_s24 = sadd.s32 1, %s2918_s19 }
  0x1a   : > { %4974 = sst [smem:[#allocation33_spill]] %s3022_s21  ;;  %s270_s25 = ssub.s32 %s2922_s20, %s3026_s23 }
  0x1b   : > { %4975 = sst [smem:[#allocation34_spill]] %s3026_s23  ;;  %p283_p0 = scmp.ne.s32.totalorder %s2918_s19, %s2914_s18 }
  0x1c   : > { %p271_p1 = scmp.eq.s32.totalorder %s270_s25, 0  ;;  %p284_p2 = scmp.eq.s32.totalorder %s3022_s21, 1 }
  0x1d   : > { %p289_p3 = scmp.ne.s32.totalorder %s2914_s18, %s2910_s17  ;;  %p290_p4 = scmp.eq.s32.totalorder %s2319_s22, 1 }
  0x1e   : > { %s3037_s26 = scalar_select %p271_p1, %s2918_s19, %s273_s24  }
  0x1f   : > { %p3039_p5 = por %p284_p2, %p283_p0  ;;  %p3043_p6 = por %p290_p4, %p289_p3 }
  0x20   : > { %4976 = sst [smem:[#allocation35_spill]] %s3037_s26  ;;  %p2320_p7 = scmp.ge.s32.totalorder %s2922_s20, 1 }
  0x21   : > { %s4977_s27 = scalar_select %p3039_p5, 1, 0 }
  0x22   : > { %s4979_s28 = scalar_select %p3043_p6, 1, 0 }
  0x23   : > { %4978 = sst [smem:[#allocation36_spill]] %s4977_s27  ;;  %p297_p8 = scmp.lt.s32.totalorder %s2922_s20, 3 }
  0x24   : > { %4980 = sst [smem:[#allocation37_spill]] %s4979_s28  ;;  %p4912_p9 = scmp.eq.s32.totalorder %s3022_s21, 0 }
  0x25   : > { %p3050_p10 = pnand %p2320_p7, %p297_p8  ;;  %s4982_s2 = sld [smem:[#allocation111_spill]] }
  0x26   : > { %s4983_s4 = sld [smem:[#allocation113_spill]]  ;;  %s4985_s6 = sld [smem:[#allocation115_spill]] }
  0x27   : > { %s4981_s29 = scalar_select %p3050_p10, 1, 0 }
  0x28   : > { %p2546_p11 = pneg %p3050_p10  ;;  %s4986_s8 = sld [smem:[#allocation117_spill]] }
  0x2a   : > { %p3064_p12 = pnand %p4912_p9, %p2546_p11 }
  0x2b   : > { %s321_s13 = sshll.u32 %s4982_s2, 4  ;;  %s322_s13 = int_to_ptr.vmem [resolvable:$true] %s321_s13 }
  0x2c   : > { %s343_s16 = sshll.u32 %s4983_s4, 4  ;;  %s365_s30 = sshll.u32 %s4985_s6, 4  ;;  %s344_s16 = int_to_ptr.vmem [resolvable:$true] %s343_s16  ;;  %s3071_s30 = int_to_ptr.vmem [resolvable:$true] %s365_s30 }
  0x2d   : > { %s2686_s19 = scalar_lea.vmem %s322_s13, 16  ;;  %p3078_p0 = pneg %p3064_p12 }
  0x2e   : > { %s387_s26 = sshll.u32 %s4986_s8, 4  ;;  %p2687_p13 = scmp.ne.s32.totalorder %s322_s13, %s2686_s19  ;;  %s388_s26 = int_to_ptr.vmem [resolvable:$true] %s387_s26 }
  0x2f   : > { %p2694_p3 = scmp.lt.s32.totalorder %s322_s13, %s322_s13  ;;  %p2695_p4 = scmp.lt.s32.totalorder %s2686_s19, %s2686_s19 }
  0x30   : > { %p2689_p1 = pnand %p3078_p0, %p2687_p13 }
  0x31   : > { %p2696_p7 = por %p2695_p4, %p2694_p3 }
  0x32   : > { %p2690_p2 = pneg %p2689_p1 }
  0x34   : > { %p2697_p8 = pnand %p2696_p7, %p2690_p2 }
  0x36   : > { %2700 = shalt.err (!%p2697_p8)
}
  0x37   : > { %s2924_s15 = smov [#allocation7]   ;;  %s2701_s2 = scalar_lea.vmem %s344_s16, 16 }
  0x38   : > { %2552 = dma.vmem_to_smem (!%p3064_p12), %s322_s13, 16, %s2924_s15, [#allocation8]  }
  0x39   : > { %p2702_p11 = scmp.ne.s32.totalorder %s344_s16, %s2701_s2  ;;  %p2709_p5 = scmp.lt.s32.totalorder %s344_s16, %s344_s16 }
  0x3a   : > { %p2710_p10 = scmp.lt.s32.totalorder %s2701_s2, %s2701_s2 }
  0x3b   : > { %p2704_p9 = pnand %p2702_p11, %p3078_p0 }
  0x3c   : > { %p2711_p13 = por %p2710_p10, %p2709_p5 }
  0x3d   : > { %p2705_p6 = pneg %p2704_p9 }
  0x3f   : > { %p2712_p1 = pnand %p2711_p13, %p2705_p6 }
  0x41   : > { %2715 = shalt.err (!%p2712_p1)
}
  0x42   : > { %s2925_s24 = smov [#allocation10]   ;;  %s2716_s19 = scalar_lea.vmem %s3071_s30, 16 }
  0x43   : > { %2558 = dma.vmem_to_smem (!%p3064_p12), %s344_s16, 16, %s2925_s24, [#allocation11]  }
  0x44   : > { %p2717_p2 = scmp.ne.s32.totalorder %s3071_s30, %s2716_s19  ;;  %p2724_p9 = scmp.lt.s32.totalorder %s3071_s30, %s3071_s30 }
  0x45   : > { %p2725_p7 = scmp.lt.s32.totalorder %s2716_s19, %s2716_s19 }
  0x46   : > { %p2719_p3 = pnand %p2717_p2, %p3078_p0 }
  0x47   : > { %p2726_p8 = por %p2725_p7, %p2724_p9 }
  0x48   : > { %p2720_p4 = pneg %p2719_p3 }
  0x4a   : > { %p2727_p5 = pnand %p2726_p8, %p2720_p4 }
  0x4c   : > { %2730 = shalt.err (!%p2727_p5)
}
  0x4d   : > { %s2926_s13 = smov [#allocation13]   ;;  %s2731_s16 = scalar_lea.vmem %s388_s26, 16 }
  0x4e   : > { %2564 = dma.vmem_to_smem (!%p3064_p12), %s3071_s30, 16, %s2926_s13, [#allocation14]  }
  0x4f   : > { %p2732_p6 = scmp.ne.s32.totalorder %s388_s26, %s2731_s16  ;;  %p2739_p13 = scmp.lt.s32.totalorder %s388_s26, %s388_s26 }
  0x50   : > { %p2740_p1 = scmp.lt.s32.totalorder %s2731_s16, %s2731_s16 }
  0x51   : > { %p2734_p10 = pnand %p2732_p6, %p3078_p0 }
  0x52   : > { %p2741_p2 = por %p2740_p1, %p2739_p13 }
  0x53   : > { %p2735_p11 = pneg %p2734_p10 }
  0x55   : > { %p2742_p3 = pnand %p2741_p2, %p2735_p11 }
  0x57   : > { %2745 = shalt.err (!%p2742_p3)
}
  0x58   : > { %s2927_s15 = smov [#allocation16]   ;;  %s4988_s1 = sld [smem:[#allocation110_spill]] }
  0x59   : > { %2570 = dma.vmem_to_smem (!%p3064_p12), %s388_s26, 16, %s2927_s15, [#allocation17]  }
  0x5a   : > { %s4989_s3 = sld [smem:[#allocation112_spill]] }
  0x5e   : > { %s310_s24 = sshll.u32 %s4988_s1, 4  ;;  %s311_s24 = int_to_ptr.vmem [resolvable:$true] %s310_s24 }
  0x5f   : > { %s2746_s12 = scalar_lea.vmem %s311_s24, 16  ;;  %p2754_p8 = scmp.lt.s32.totalorder %s311_s24, %s311_s24 }
  0x60   : > { %s332_s25 = sshll.u32 %s4989_s3, 4  ;;  %p2747_p4 = scmp.ne.s32.totalorder %s311_s24, %s2746_s12  ;;  %s333_s25 = int_to_ptr.vmem [resolvable:$true] %s332_s25 }
  0x61   : > { %p2755_p5 = scmp.lt.s32.totalorder %s2746_s12, %s2746_s12 }
  0x62   : > { %p2749_p9 = pnand %p2747_p4, %p3078_p0 }
  0x63   : > { %p2756_p6 = por %p2755_p5, %p2754_p8 }
  0x64   : > { %p2750_p7 = pneg %p2749_p9 }
  0x66   : > { %p2757_p10 = pnand %p2756_p6, %p2750_p7 }
  0x68   : > { %2760 = shalt.err (!%p2757_p10)
}
  0x69   : > { %s2928_s26 = smov [#allocation4]   ;;  %s2761_s16 = scalar_lea.vmem %s333_s25, 16 }
  0x6a   : > { %2549 = dma.vmem_to_smem (!%p3064_p12), %s311_s24, 16, %s2928_s26, [#allocation6]  }
  0x6b   : > { %p2762_p11 = scmp.ne.s32.totalorder %s333_s25, %s2761_s16  ;;  %p2769_p2 = scmp.lt.s32.totalorder %s333_s25, %s333_s25 }
  0x6c   : > { %p2770_p3 = scmp.lt.s32.totalorder %s2761_s16, %s2761_s16 }
  0x6d   : > { %p2764_p13 = pnand %p2762_p11, %p3078_p0 }
  0x6e   : > { %p2771_p4 = por %p2770_p3, %p2769_p2 }
  0x6f   : > { %p2765_p1 = pneg %p2764_p13 }
  0x71   : > { %p2772_p9 = pnand %p2771_p4, %p2765_p1 }
  0x73   : > { %2775 = shalt.err (!%p2772_p9)
}
  0x74   : > { %s2929_s15 = smov [#allocation9]   ;;  %s4990_s5 = sld [smem:[#allocation114_spill]] }
  0x75   : > { %2555 = dma.vmem_to_smem (!%p3064_p12), %s333_s25, 16, %s2929_s15, [#allocation8]  }
  0x76   : > { %s4991_s7 = sld [smem:[#allocation116_spill]] }
  0x7a   : > { %s354_s24 = sshll.u32 %s4990_s5, 4  ;;  %s355_s24 = int_to_ptr.vmem [resolvable:$true] %s354_s24 }
  0x7b   : > { %s2776_s26 = scalar_lea.vmem %s355_s24, 16  ;;  %p2784_p6 = scmp.lt.s32.totalorder %s355_s24, %s355_s24 }
  0x7c   : > { %s376_s12 = sshll.u32 %s4991_s7, 4  ;;  %p2777_p7 = scmp.ne.s32.totalorder %s355_s24, %s2776_s26  ;;  %s377_s12 = int_to_ptr.vmem [resolvable:$true] %s376_s12 }
  0x7d   : > { %p2785_p10 = scmp.lt.s32.totalorder %s2776_s26, %s2776_s26 }
  0x7e   : > { %p2779_p8 = pnand %p2777_p7, %p3078_p0 }
  0x7f   : > { %p2786_p11 = por %p2785_p10, %p2784_p6 }
  0x80   : > { %p2780_p5 = pneg %p2779_p8 }
  0x82   : > { %p2787_p13 = pnand %p2786_p11, %p2780_p5 }
  0x84   : > { %2790 = shalt.err (!%p2787_p13)
}
  0x85   : > { %s2930_s25 = smov [#allocation12]   ;;  %s2791_s16 = scalar_lea.vmem %s377_s12, 16 }
  0x86   : > { %2561 = dma.vmem_to_smem (!%p3064_p12), %s355_s24, 16, %s2930_s25, [#allocation11]  }
  0x87   : > { %p2792_p1 = scmp.ne.s32.totalorder %s377_s12, %s2791_s16  ;;  %p2799_p4 = scmp.lt.s32.totalorder %s377_s12, %s377_s12 }
  0x88   : > { %p2800_p9 = scmp.lt.s32.totalorder %s2791_s16, %s2791_s16 }
  0x89   : > { %p2794_p2 = pnand %p2792_p1, %p3078_p0 }
  0x8a   : > { %p2801_p7 = por %p2800_p9, %p2799_p4 }
  0x8b   : > { %p2795_p3 = pneg %p2794_p2 }
  0x8d   : > { %p2802_p8 = pnand %p2801_p7, %p2795_p3 }
  0x8f   : > { %2805 = shalt.err (!%p2802_p8)
}
  0x90   : > { %s2931_s15 = smov [#allocation15]   ;;  %s4992_s9 = sld [smem:[#allocation118_spill]] }
  0x91   : > { %2567 = dma.vmem_to_smem (!%p3064_p12), %s377_s12, 16, %s2931_s15, [#allocation14]  }
  0x92   : > { %s4993_s10 = sld [smem:[#allocation119_spill]] }
  0x96   : > { %s398_s24 = sshll.u32 %s4992_s9, 4  ;;  %s399_s24 = int_to_ptr.vmem [resolvable:$true] %s398_s24 }
  0x97   : > { %s2806_s25 = scalar_lea.vmem %s399_s24, 16  ;;  %p2814_p11 = scmp.lt.s32.totalorder %s399_s24, %s399_s24 }
  0x98   : > { %s409_s26 = sshll.u32 %s4993_s10, 4  ;;  %p2807_p5 = scmp.ne.s32.totalorder %s399_s24, %s2806_s25  ;;  %s410_s26 = int_to_ptr.vmem [resolvable:$true] %s409_s26 }
  0x99   : > { %p2815_p13 = scmp.lt.s32.totalorder %s2806_s25, %s2806_s25 }
  0x9a   : > { %p2809_p6 = pnand %p2807_p5, %p3078_p0 }
  0x9b   : > { %p2816_p1 = por %p2815_p13, %p2814_p11 }
  0x9c   : > { %p2810_p10 = pneg %p2809_p6 }
  0x9e   : > { %p2817_p2 = pnand %p2816_p1, %p2810_p10 }
  0xa0   : > { %2820 = shalt.err (!%p2817_p2)
}
  0xa1   : > { %s2932_s12 = smov [#allocation18]   ;;  %s2821_s16 = scalar_lea.vmem %s410_s26, 16 }
  0xa2   : > { %2573 = dma.vmem_to_smem (!%p3064_p12), %s399_s24, 16, %s2932_s12, [#allocation17]  }
  0xa3   : > { %p2822_p3 = scmp.ne.s32.totalorder %s410_s26, %s2821_s16  ;;  %p2829_p7 = scmp.lt.s32.totalorder %s410_s26, %s410_s26 }
  0xa4   : > { %p2830_p8 = scmp.lt.s32.totalorder %s2821_s16, %s2821_s16 }
  0xa5   : > { %p2824_p4 = pnand %p2822_p3, %p3078_p0 }
  0xa6   : > { %p2831_p5 = por %p2830_p8, %p2829_p7 }
  0xa7   : > { %p2825_p9 = pneg %p2824_p4 }
  0xa9   : > { %p2832_p6 = pnand %p2831_p5, %p2825_p9 }
  0xab   : > { %2835 = shalt.err (!%p2832_p6)
}
  0xac   : > { %s2933_s15 = smov [#allocation19]   ;;  %p4994_p10 = scmp.ne.s32.totalorder %s4981_s29, 0 }
  0xad   : > { %2576 = dma.vmem_to_smem (!%p3064_p12), %s410_s26, 16, %s2933_s15, [#allocation20]  }
  0xae   : > { %430 = sbr.rel (%p4994_p10) target bundleno = 1208 (0x4b8), region = 64 }
  0xb5   : > { %p4995_p11 = scmp.eq.s32.totalorder %s3022_s21, 0 }
  0xb7   : > { %2881 = dma.done.wait (%p4995_p11), [#allocation6], 16   ;;  %p4996_p13 = pmov %p4995_p11 }
  0xb8   : > { %p4997_p0 = pmov %p4995_p11 }
  0xb9   : > { %2883 = vsyncadd (%p4996_p13), [#allocation6], 4294967280 }
  0xba   : > { %2885 = dma.done.wait (%p4997_p0), [#allocation8], 32   ;;  %p4998_p1 = pmov %p4997_p0 }
  0xbb   : > { %p4999_p2 = pmov %p4997_p0 }
  0xbc   : > { %2887 = vsyncadd (%p4998_p1), [#allocation8], 4294967264 }
  0xbd   : > { %2889 = dma.done.wait (%p4999_p2), [#allocation11], 32   ;;  %p5000_p12 = pmov %p4997_p0 }
  0xbe   : > { %p5001_p3 = pmov %p4997_p0 }
  0xbf   : > { %2891 = vsyncadd (%p5000_p12), [#allocation11], 4294967264 }
  0xc0   : > { %2893 = dma.done.wait (%p5001_p3), [#allocation14], 32   ;;  %p5002_p4 = pmov %p4997_p0 }
  0xc1   : > { %p5003_p9 = pmov %p4997_p0 }
  0xc2   : > { %2895 = vsyncadd (%p5002_p4), [#allocation14], 4294967264 }
  0xc3   : > { %2897 = dma.done.wait (%p5003_p9), [#allocation17], 32   ;;  %p5004_p7 = pmov %p4997_p0 }
  0xc4   : > { %p5005_p8 = pmov %p4997_p0 }
  0xc5   : > { %2899 = vsyncadd (%p5004_p7), [#allocation17], 4294967264 }
  0xc6   : > { %2901 = dma.done.wait (%p5005_p8), [#allocation20], 16   ;;  %p5006_p5 = pmov %p4997_p0 }
  0xc8   : > { %2903 = vsyncadd (%p5006_p5), [#allocation20], 4294967280 }
  0xc9   : > { %472 = sfence }
  0xca   : > { %p507_p6 = scmp.lt.s32.totalorder %s3022_s21, 1  ;;  %vm514_vm0 = vcmask 1047680   ;;  %v2934_v0 = vmov 0.0   ;;  %vm544_vm1 = vcmask 130048   ;;  %s5007_s0 = sld [smem:[#allocation109_spill]] }
  0xcb   : > { %512 = vst [vmem:[#allocation2 + $0x6] sm:$0x3] %v2934_v0  ;;  %515 = vst.msk [vmem:[#allocation2 + $0x8] sm:$0xff] %vm514_vm0, %v2934_v0  ;;  %s4924_s24 = smov 1   ;;  %s4922_s19 = smov 127  }
  0xcc   : > { %513 = vst [vmem:[#allocation2 + $0x18] sm:$0x3] %v2934_v0  ;;  %516 = vst.msk [vmem:[#allocation2 + $0x10] sm:$0xff] %vm514_vm0, %v2934_v0  ;;  %s508_s29 = scalar_select %p507_p6, %s3022_s21, 1 }
  0xcd   : > { %518 = vst [vmem:[#allocation2 + $0x26] sm:$0x3] %v2934_v0  ;;  %519 = vst [vmem:[#allocation2 + $0x38] sm:$0x3] %v2934_v0  ;;  %s3552_s13 = sld [smem:[#allocation4 + $0x4]]  ;;  %s3558_s26 = sld [smem:[#allocation4 + $0x1f]] }
  0xce   : > { %520 = vst.msk [vmem:[#allocation2 + $0x28] sm:$0xff] %vm514_vm0, %v2934_v0  ;;  %521 = vst.msk [vmem:[#allocation2 + $0x30] sm:$0xff] %vm514_vm0, %v2934_v0  ;;  %s2502_s22 = smul.u32 48, %s508_s29  ;;  %s3560_s25 = sld [smem:[#allocation4 + $0x3a]] }
  0xcf   : > { %523 = vst [vmem:[#allocation2 + $0x46] sm:$0x3] %v2934_v0  ;;  %524 = vst [vmem:[#allocation2 + $0x58] sm:$0x3] %v2934_v0  ;;  %s3562_s12 = sld [smem:[#allocation4 + $0x7]]  ;;  %s3564_s16 = sld [smem:[#allocation4 + $0x22]] }
  0xd0   : > { %525 = vst.msk [vmem:[#allocation2 + $0x48] sm:$0xff] %vm514_vm0, %v2934_v0  ;;  %526 = vst.msk [vmem:[#allocation2 + $0x50] sm:$0xff] %vm514_vm0, %v2934_v0  ;;  %s511_s2 = scalar_lea.vmem %s5007_s0, %s2502_s22  ;;  %s3566_s15 = sld [smem:[#allocation4 + $0x3d]] }
  0xd1   : > { %529 = vst [vmem:[#allocation2 + $0x78] sm:$0x3] %v2934_v0  ;;  %530 = vst.msk [vmem:[#allocation2 + $0x68] sm:$0xff] %vm514_vm0, %v2934_v0  ;;  %v542_v1 = vld [vmem:[%s511_s2] sm:$0xff]  ;;  %v543_v2 = vld [vmem:[%s511_s2 + $0x8] sm:$0xff]  ;;  %s3568_s29 = sld [smem:[#allocation4 + $0xa]] }
  0xd2   : > { %531 = vst.msk [vmem:[#allocation2 + $0x70] sm:$0xff] %vm514_vm0, %v2934_v0  ;;  %534 = vst [vmem:[#allocation2 + $0x98] sm:$0x3] %v2934_v0  ;;  %v2344_v3 = vld [vmem:[%s511_s2 + $0x10] sm:$0xff]  ;;  %v2345_v4 = vld [vmem:[%s511_s2 + $0x18] sm:$0xff]  ;;  %s3570_s22 = sld [smem:[#allocation4 + $0x25]] }
  0xd3   : > { %535 = vst.msk [vmem:[#allocation2 + $0x88] sm:$0xff] %vm514_vm0, %v2934_v0  ;;  %536 = vst.msk [vmem:[#allocation2 + $0x90] sm:$0xff] %vm514_vm0, %v2934_v0  ;;  %v2346_v7 = vld [vmem:[%s511_s2 + $0x20] sm:$0xff]  ;;  %v2347_v8 = vld [vmem:[%s511_s2 + $0x28] sm:$0xff]  ;;  %s3572_s14 = sld [smem:[#allocation4 + $0x40]]  ;;  %s3578_s30 = sld [smem:[#allocation4 + $0xd]] }
  0xd4   : > { %540 = vst.msk [vmem:[#allocation2 + $0xa8] sm:$0xff] %vm514_vm0, %v2934_v0  ;;  %541 = vst.msk [vmem:[#allocation2 + $0xb0] sm:$0xff] %vm514_vm0, %v2934_v0  ;;  %s3580_s2 = sld [smem:[#allocation4 + $0x28]]  ;;  %s3586_s0 = sld [smem:[#allocation4 + $0x1c]] }
  0xd5   : > { %545 = vst.msk [vmem:[#allocation2 + $0x8] sm:$0xff] %vm544_vm1, %v542_v1  ;;  %546 = vst.msk [vmem:[#allocation2 + $0x10] sm:$0xff] %vm544_vm1, %v543_v2  ;;  %s3588_s1 = sld [smem:[#allocation4]]  ;;  %s3590_s3 = sld [smem:[#allocation4 + $0x1]] }
  0xd6   : > { %550 = vst.msk [vmem:[#allocation2 + $0x28] sm:$0xff] %vm544_vm1, %v2344_v3  ;;  %551 = vst.msk [vmem:[#allocation2 + $0x30] sm:$0xff] %vm544_vm1, %v2345_v4  ;;  %s3592_s4 = sld [smem:[#allocation4 + $0x10]]  ;;  %s3598_s5 = sld [smem:[#allocation4 + $0x2]] }
  0xd7   : > { %555 = vst.msk [vmem:[#allocation2 + $0x48] sm:$0xff] %vm544_vm1, %v2346_v7  ;;  %556 = vst.msk [vmem:[#allocation2 + $0x50] sm:$0xff] %vm544_vm1, %v2347_v8  ;;  %s3600_s6 = sld [smem:[#allocation4 + $0x1d]]  ;;  %s3602_s7 = sld [smem:[#allocation4 + $0x36]] }
  0xd8   : > { %s3604_s8 = sld [smem:[#allocation4 + $0x37]]  ;;  %s3607_s9 = sld [smem:[#allocation4 + $0x3]] }
  0xd9   : > { %s3609_s10 = sld [smem:[#allocation4 + $0x1e]]  ;;  %s3615_s23 = sld [smem:[#allocation4 + $0x38]] }
  0xda   : > { %s3617_s28 = sld [smem:[#allocation4 + $0x39]]  ;;  %s3673_s20 = sld [smem:[#allocation4 + $0x23]] }
  0xdb   : > { %s3639_s17 = sld [smem:[#allocation4 + $0x21]]  ;;  %s3697_s27 = sld [smem:[#allocation4 + $0x24]] }
  0xdc   : > { %v3198_v5 = vld [vmem:[#allocation2 + $0x7] sm:$0xff]  ;;  %v3204_v6 = vld [vmem:[#allocation2 + $0xf] sm:$0xff]  ;;  %5035 = sst [smem:[#allocation65_spill]] %s3592_s4  ;;  %s3695_s11 = sld [smem:[#allocation4 + $0x9]] }
  0xdd   : > { %816 = vrot.lane.b32.xlu1 %v3198_v5, %s4924_s24  ;;  %560 = vrot.lane.b32.xlu0 %v3198_v5, %s4924_s24  ;;  %v3224_v9 = vld [vmem:[#allocation2 + $0x10] sm:$0xff]  ;;  %v3226_v10 = vld [vmem:[#allocation2 + $0x8] sm:$0xff]  ;;  %5038 = sst [smem:[#allocation68_spill]] %s3598_s5  ;;  %s3709_s21 = sld [smem:[#allocation4 + $0x3e]] }
  0xde   : > { %v3252_v11 = vld [vmem:[#allocation2 + $0x11] sm:$0xff]  ;;  %v3254_v12 = vld [vmem:[#allocation2 + $0x9] sm:$0xff]  ;;  %5039 = sst [smem:[#allocation69_spill]] %s3600_s6  ;;  %s3711_s18 = sld [smem:[#allocation4 + $0x3f]] }
  0xdf   : > { %v3280_v13 = vld [vmem:[#allocation2 + $0x2f] sm:$0xff]  ;;  %v3282_v14 = vld [vmem:[#allocation2 + $0x27] sm:$0xff]  ;;  %5040 = sst [smem:[#allocation70_spill]] %s3602_s7  ;;  %s3779_s6 = sld [smem:[#allocation4 + $0x29]] }
  0xe0   : > { %v3308_v15 = vld [vmem:[#allocation2 + $0x30] sm:$0xff]  ;;  %v3310_v16 = vld [vmem:[#allocation2 + $0x28] sm:$0xff]  ;;  %5041 = sst [smem:[#allocation71_spill]] %s3615_s23  ;;  %s3781_s7 = sld [smem:[#allocation4 + $0xf]] }
  0xe1   : > { %818 = vrot.lane.b32.xlu1 %v3204_v6, %s4924_s24  ;;  %562 = vrot.lane.b32.xlu0 %v3204_v6, %s4924_s24  ;;  %v3336_v17 = vld [vmem:[#allocation2 + $0x31] sm:$0xff]  ;;  %v3338_v18 = vld [vmem:[#allocation2 + $0x29] sm:$0xff]  ;;  %5046 = sst [smem:[#allocation76_spill]] %s3639_s17  ;;  %s3787_s5 = sld [smem:[#allocation4 + $0x2a]] }
  0xe2   : > { %v3388_v31 = vld [vmem:[#allocation2 + $0x4f] sm:$0xff]  ;;  %v3390_v32 = vld [vmem:[#allocation2 + $0x47] sm:$0xff]  ;;  %s3793_s23 = sld [smem:[#allocation4 + $0x46]]  ;;  %s5094_s17 = sld [smem:[#allocation69_spill]] }
  0xe3   : > { %v3440_v45 = vld [vmem:[#allocation2 + $0x50] sm:$0xff]  ;;  %v3442_v46 = vld [vmem:[#allocation2 + $0x48] sm:$0xff] }
  0xe4   : > { %5008 = vst [vmem:[#allocation38_spill] sm:$0xff] %v3440_v45  ;;  %5009 = vst [vmem:[#allocation39_spill] sm:$0xff] %v3442_v46  ;;  %v3492_v59 = vld [vmem:[#allocation2 + $0x51] sm:$0xff]  ;;  %v3494_v60 = vld [vmem:[#allocation2 + $0x49] sm:$0xff] }
  0xe5   : > { %576 = vrot.lane.b32.xlu1 %v3204_v6, %s4922_s19  ;;  %574 = vrot.lane.b32.xlu0 %v3198_v5, %s4922_s19  ;;  %5014 = vst [vmem:[#allocation44_spill] sm:$0xff] %v3492_v59  ;;  %5015 = vst [vmem:[#allocation45_spill] sm:$0xff] %v3494_v60 }
  0xe9   : > { %832 = vrot.lane.b32.xlu1 %v3204_v6, %s4922_s19  ;;  %830 = vrot.lane.b32.xlu0 %v3198_v5, %s4922_s19 }
  0xed   : > { %1075 = vrot.lane.b32.xlu1 %v3204_v6, %s4924_s24  ;;  %1073 = vrot.lane.b32.xlu0 %v3198_v5, %s4924_s24 }
  0xf1   : > { %588 = vrot.lane.b32.xlu1 %v3224_v9, %s4924_s24  ;;  %586 = vrot.lane.b32.xlu0 %v3226_v10, %s4924_s24 }
  0xf5   : > { %844 = vrot.lane.b32.xlu1 %v3224_v9, %s4924_s24  ;;  %842 = vrot.lane.b32.xlu0 %v3226_v10, %s4924_s24 }
  0xf9   : > { %1089 = vrot.lane.b32.xlu1 %v3204_v6, %s4922_s19  ;;  %1087 = vrot.lane.b32.xlu0 %v3198_v5, %s4922_s19 }
  0xfd   : > { %1101 = vrot.lane.b32.xlu1 %v3224_v9, %s4924_s24  ;;  %1099 = vrot.lane.b32.xlu0 %v3226_v10, %s4924_s24 }
 0x101   : > { %604 = vrot.lane.b32.xlu1 %v3224_v9, %s4922_s19  ;;  %602 = vrot.lane.b32.xlu0 %v3226_v10, %s4922_s19 }
 0x105   : > { %860 = vrot.lane.b32.xlu1 %v3224_v9, %s4922_s19  ;;  %858 = vrot.lane.b32.xlu0 %v3226_v10, %s4922_s19 }
 0x109   : > { %616 = vrot.lane.b32.xlu1 %v3252_v11, %s4924_s24  ;;  %614 = vrot.lane.b32.xlu0 %v3254_v12, %s4924_s24 }
 0x10d   : > { %872 = vrot.lane.b32.xlu1 %v3252_v11, %s4924_s24  ;;  %870 = vrot.lane.b32.xlu0 %v3254_v12, %s4924_s24 }
 0x111   : > { %1117 = vrot.lane.b32.xlu1 %v3224_v9, %s4922_s19  ;;  %1115 = vrot.lane.b32.xlu0 %v3226_v10, %s4922_s19 }
 0x115   : > { %1129 = vrot.lane.b32.xlu1 %v3252_v11, %s4924_s24  ;;  %1127 = vrot.lane.b32.xlu0 %v3254_v12, %s4924_s24 }
 0x119   : > { %632 = vrot.lane.b32.xlu1 %v3252_v11, %s4922_s19  ;;  %630 = vrot.lane.b32.xlu0 %v3254_v12, %s4922_s19 }
 0x11d   : > { %888 = vrot.lane.b32.xlu1 %v3252_v11, %s4922_s19  ;;  %886 = vrot.lane.b32.xlu0 %v3254_v12, %s4922_s19 }
 0x121   : > { %644 = vrot.lane.b32.xlu1 %v3280_v13, %s4924_s24  ;;  %642 = vrot.lane.b32.xlu0 %v3282_v14, %s4924_s24 }
 0x125   : > { %900 = vrot.lane.b32.xlu1 %v3280_v13, %s4924_s24  ;;  %898 = vrot.lane.b32.xlu0 %v3282_v14, %s4924_s24 }
 0x129   : > { %1145 = vrot.lane.b32.xlu1 %v3252_v11, %s4922_s19  ;;  %1143 = vrot.lane.b32.xlu0 %v3254_v12, %s4922_s19 }
 0x12d   : > { %1157 = vrot.lane.b32.xlu1 %v3280_v13, %s4924_s24  ;;  %1155 = vrot.lane.b32.xlu0 %v3282_v14, %s4924_s24 }
 0x131   : > { %660 = vrot.lane.b32.xlu1 %v3280_v13, %s4922_s19  ;;  %658 = vrot.lane.b32.xlu0 %v3282_v14, %s4922_s19 }
 0x135   : > { %916 = vrot.lane.b32.xlu1 %v3280_v13, %s4922_s19  ;;  %914 = vrot.lane.b32.xlu0 %v3282_v14, %s4922_s19 }
 0x139   : > { %672 = vrot.lane.b32.xlu1 %v3308_v15, %s4924_s24  ;;  %670 = vrot.lane.b32.xlu0 %v3310_v16, %s4924_s24 }
 0x13d   : > { %928 = vrot.lane.b32.xlu1 %v3308_v15, %s4924_s24  ;;  %926 = vrot.lane.b32.xlu0 %v3310_v16, %s4924_s24 }
 0x141   : > { %1173 = vrot.lane.b32.xlu1 %v3280_v13, %s4922_s19  ;;  %1171 = vrot.lane.b32.xlu0 %v3282_v14, %s4922_s19 }
 0x145   : > { %1185 = vrot.lane.b32.xlu1 %v3308_v15, %s4924_s24  ;;  %1183 = vrot.lane.b32.xlu0 %v3310_v16, %s4924_s24 }
 0x149   : > { %688 = vrot.lane.b32.xlu1 %v3308_v15, %s4922_s19  ;;  %686 = vrot.lane.b32.xlu0 %v3310_v16, %s4922_s19 }
 0x14d   : > { %944 = vrot.lane.b32.xlu1 %v3308_v15, %s4922_s19  ;;  %942 = vrot.lane.b32.xlu0 %v3310_v16, %s4922_s19 }
 0x14f   : > { %v3340_v19 = vpop.permute.xlu1 %816  ;;  %v3342_v20 = vpop.permute.xlu0 %560 }
 0x151   : > { %700 = vrot.lane.b32.xlu1 %v3336_v17, %s4924_s24  ;;  %698 = vrot.lane.b32.xlu0 %v3338_v18, %s4924_s24 }
 0x153   : > { %v3348_v21 = vpop.permute.xlu1 %818  ;;  %v3350_v22 = vpop.permute.xlu0 %562 }
 0x155   : > { %956 = vrot.lane.b32.xlu1 %v3336_v17, %s4924_s24  ;;  %954 = vrot.lane.b32.xlu0 %v3338_v18, %s4924_s24 }
 0x157   : > { %v3356_v23 = vpop.permute.xlu1 %576  ;;  %v3358_v24 = vpop.permute.xlu0 %574 }
 0x159   : > { %1201 = vrot.lane.b32.xlu1 %v3308_v15, %s4922_s19  ;;  %1199 = vrot.lane.b32.xlu0 %v3310_v16, %s4922_s19 }
 0x15b   : > { %v3364_v25 = vpop.permute.xlu1 %832  ;;  %v3366_v26 = vpop.permute.xlu0 %830 }
 0x15d   : > { %1213 = vrot.lane.b32.xlu1 %v3336_v17, %s4924_s24  ;;  %1211 = vrot.lane.b32.xlu0 %v3338_v18, %s4924_s24 }
 0x15f   : > { %v3372_v27 = vpop.permute.xlu1 %1075  ;;  %v3374_v28 = vpop.permute.xlu0 %1073 }
 0x161   : > { %716 = vrot.lane.b32.xlu1 %v3336_v17, %s4922_s19  ;;  %714 = vrot.lane.b32.xlu0 %v3338_v18, %s4922_s19 }
 0x163   : > { %v3380_v29 = vpop.permute.xlu1 %588  ;;  %v3382_v30 = vpop.permute.xlu0 %586 }
 0x165   : > { %972 = vrot.lane.b32.xlu1 %v3336_v17, %s4922_s19  ;;  %970 = vrot.lane.b32.xlu0 %v3338_v18, %s4922_s19 }
 0x167   : > { %v3392_v33 = vpop.permute.xlu1 %844  ;;  %v3394_v34 = vpop.permute.xlu0 %842 }
 0x169   : > { %728 = vrot.lane.b32.xlu1 %v3388_v31, %s4924_s24  ;;  %726 = vrot.lane.b32.xlu0 %v3390_v32, %s4924_s24 }
 0x16b   : > { %v3400_v35 = vpop.permute.xlu1 %1089  ;;  %v3402_v36 = vpop.permute.xlu0 %1087 }
 0x16d   : > { %984 = vrot.lane.b32.xlu1 %v3388_v31, %s4924_s24  ;;  %982 = vrot.lane.b32.xlu0 %v3390_v32, %s4924_s24 }
 0x16f   : > { %v3408_v37 = vpop.permute.xlu1 %1101  ;;  %v3410_v38 = vpop.permute.xlu0 %1099 }
 0x171   : > { %1229 = vrot.lane.b32.xlu1 %v3336_v17, %s4922_s19  ;;  %1227 = vrot.lane.b32.xlu0 %v3338_v18, %s4922_s19 }
 0x173   : > { %v3416_v39 = vpop.permute.xlu1 %604  ;;  %v3418_v40 = vpop.permute.xlu0 %602 }
 0x175   : > { %1241 = vrot.lane.b32.xlu1 %v3388_v31, %s4924_s24  ;;  %1239 = vrot.lane.b32.xlu0 %v3390_v32, %s4924_s24 }
 0x177   : > { %v3424_v41 = vpop.permute.xlu1 %860  ;;  %v3426_v42 = vpop.permute.xlu0 %858 }
 0x179   : > { %744 = vrot.lane.b32.xlu1 %v3388_v31, %s4922_s19  ;;  %742 = vrot.lane.b32.xlu0 %v3390_v32, %s4922_s19 }
 0x17b   : > { %v3432_v43 = vpop.permute.xlu1 %616  ;;  %v3434_v44 = vpop.permute.xlu0 %614 }
 0x17d   : > { %1000 = vrot.lane.b32.xlu1 %v3388_v31, %s4922_s19  ;;  %998 = vrot.lane.b32.xlu0 %v3390_v32, %s4922_s19 }
 0x17f   : > { %v3444_v47 = vpop.permute.xlu1 %872  ;;  %v3446_v48 = vpop.permute.xlu0 %870 }
 0x181   : > { %756 = vrot.lane.b32.xlu1 %v3440_v45, %s4924_s24  ;;  %754 = vrot.lane.b32.xlu0 %v3442_v46, %s4924_s24 }
 0x183   : > { %v3452_v49 = vpop.permute.xlu1 %1117  ;;  %v3454_v50 = vpop.permute.xlu0 %1115 }
 0x185   : > { %1012 = vrot.lane.b32.xlu1 %v3440_v45, %s4924_s24  ;;  %1010 = vrot.lane.b32.xlu0 %v3442_v46, %s4924_s24 }
 0x187   : > { %v3460_v51 = vpop.permute.xlu1 %1129  ;;  %v3462_v52 = vpop.permute.xlu0 %1127 }
 0x189   : > { %1257 = vrot.lane.b32.xlu1 %v3388_v31, %s4922_s19  ;;  %1255 = vrot.lane.b32.xlu0 %v3390_v32, %s4922_s19 }
 0x18b   : > { %v3468_v53 = vpop.permute.xlu1 %632  ;;  %v3470_v54 = vpop.permute.xlu0 %630 }
 0x18d   : > { %1269 = vrot.lane.b32.xlu1 %v3440_v45, %s4924_s24  ;;  %1267 = vrot.lane.b32.xlu0 %v3442_v46, %s4924_s24 }
 0x18f   : > { %v3476_v55 = vpop.permute.xlu1 %888  ;;  %v3478_v56 = vpop.permute.xlu0 %886 }
 0x190   : > { %5010 = vst [vmem:[#allocation40_spill] sm:$0xff] %v3476_v55  ;;  %5011 = vst [vmem:[#allocation41_spill] sm:$0xff] %v3478_v56  ;;  %v824_v56 = vstv %s3586_s0  ;;  %s3723_s0 = sld [smem:[#allocation4 + $0xb]] }
 0x191   : > { %772 = vrot.lane.b32.xlu1 %v3440_v45, %s4922_s19  ;;  %770 = vrot.lane.b32.xlu0 %v3442_v46, %s4922_s19 }
 0x193   : > { %v3484_v57 = vpop.permute.xlu1 %644  ;;  %v3486_v58 = vpop.permute.xlu0 %642 }
 0x194   : > { %5012 = vst [vmem:[#allocation42_spill] sm:$0xff] %v3484_v57  ;;  %5013 = vst [vmem:[#allocation43_spill] sm:$0xff] %v3486_v58 }
 0x195   : > { %1028 = vrot.lane.b32.xlu1 %v3440_v45, %s4922_s19  ;;  %1026 = vrot.lane.b32.xlu0 %v3442_v46, %s4922_s19 }
 0x197   : > { %v3496_v61 = vpop.permute.xlu1 %900  ;;  %v3498_v62 = vpop.permute.xlu0 %898 }
 0x198   : > { %5016 = vst [vmem:[#allocation46_spill] sm:$0xff] %v3496_v61  ;;  %5017 = vst [vmem:[#allocation47_spill] sm:$0xff] %v3498_v62 }
 0x199   : > { %784 = vrot.lane.b32.xlu1 %v3492_v59, %s4924_s24  ;;  %782 = vrot.lane.b32.xlu0 %v3494_v60, %s4924_s24 }
 0x19b   : > { %v3504_v63 = vpop.permute.xlu1 %1145  ;;  %v3506_v0 = vpop.permute.xlu0 %1143 }
 0x19c   : > { %5018 = vst [vmem:[#allocation48_spill] sm:$0xff] %v3504_v63  ;;  %5019 = vst [vmem:[#allocation49_spill] sm:$0xff] %v3506_v0  ;;  %v936_v63 = vstv %s3580_s2  ;;  %s3671_s2 = sld [smem:[#allocation4 + $0x8]] }
 0x19d   : > { %1040 = vrot.lane.b32.xlu1 %v3492_v59, %s4924_s24  ;;  %1038 = vrot.lane.b32.xlu0 %v3494_v60, %s4924_s24 }
 0x19f   : > { %v3512_v1 = vpop.permute.xlu1 %1157  ;;  %v3514_v2 = vpop.permute.xlu0 %1155 }
 0x1a0   : > { %5020 = vst [vmem:[#allocation50_spill] sm:$0xff] %v3512_v1  ;;  %5021 = vst [vmem:[#allocation51_spill] sm:$0xff] %v3514_v2 }
 0x1a1   : > { %1285 = vrot.lane.b32.xlu1 %v3440_v45, %s4922_s19  ;;  %1283 = vrot.lane.b32.xlu0 %v3442_v46, %s4922_s19 }
 0x1a3   : > { %v3520_v3 = vpop.permute.xlu1 %660  ;;  %v3522_v4 = vpop.permute.xlu0 %658 }
 0x1a4   : > { %5022 = vst [vmem:[#allocation52_spill] sm:$0xff] %v3520_v3  ;;  %5023 = vst [vmem:[#allocation53_spill] sm:$0xff] %v3522_v4 }
 0x1a5   : > { %1297 = vrot.lane.b32.xlu1 %v3492_v59, %s4924_s24  ;;  %1295 = vrot.lane.b32.xlu0 %v3494_v60, %s4924_s24  ;;  %s3584_s24 = sld [smem:[#allocation4 + $0x1b]] }
 0x1a7   : > { %v3528_v7 = vpop.permute.xlu1 %916  ;;  %v3530_v8 = vpop.permute.xlu0 %914 }
 0x1a8   : > { %5024 = vst [vmem:[#allocation54_spill] sm:$0xff] %v3528_v7  ;;  %5025 = vst [vmem:[#allocation55_spill] sm:$0xff] %v3530_v8 }
 0x1a9   : > { %800 = vrot.lane.b32.xlu1 %v3492_v59, %s4922_s19  ;;  %798 = vrot.lane.b32.xlu0 %v3494_v60, %s4922_s19 }
 0x1ab   : > { %v3536_v46 = vpop.permute.xlu1 %672  ;;  %v3538_v45 = vpop.permute.xlu0 %670  ;;  %5034 = sst [smem:[#allocation64_spill]] %s3584_s24  ;;  %s3737_s24 = sld [smem:[#allocation4 + $0xc]] }
 0x1ac   : > { %5026 = vst [vmem:[#allocation56_spill] sm:$0xff] %v3536_v46  ;;  %5027 = vst [vmem:[#allocation57_spill] sm:$0xff] %v3538_v45 }
 0x1ad   : > { %1056 = vrot.lane.b32.xlu1 %v3492_v59, %s4922_s19  ;;  %1054 = vrot.lane.b32.xlu0 %v3494_v60, %s4922_s19 }
 0x1af   : > { %v3544_v4 = vpop.permute.xlu1 %928  ;;  %v3546_v7 = vpop.permute.xlu0 %926 }
 0x1b0   : > { %5028 = vst [vmem:[#allocation58_spill] sm:$0xff] %v3544_v4  ;;  %5029 = vst [vmem:[#allocation59_spill] sm:$0xff] %v3546_v7 }
 0x1b1   : > { %1313 = vrot.lane.b32.xlu1 %v3492_v59, %s4922_s19  ;;  %1311 = vrot.lane.b32.xlu0 %v3494_v60, %s4922_s19  ;;  %s3582_s19 = sld [smem:[#allocation4 + $0x43]] }
 0x1b2   : > { %5067 = sst [smem:[#allocation91_spill]] %s3737_s24  ;;  %s3771_s24 = sld [smem:[#allocation4 + $0xe]] }
 0x1b3   : > { %v3554_v46 = vpop.permute.xlu1 %1173  ;;  %v3556_v45 = vpop.permute.xlu0 %1171 }
 0x1b4   : > { %5030 = vst [vmem:[#allocation60_spill] sm:$0xff] %v3554_v46  ;;  %5031 = vst [vmem:[#allocation61_spill] sm:$0xff] %v3556_v45  ;;  %v596_v45 = vstv %s3552_s13  ;;  %s3627_s13 = sld [smem:[#allocation4 + $0x5]]  ;;  %v680_v46 = vstv %s3578_s30  ;;  %s3651_s30 = sld [smem:[#allocation4 + $0x3b]] }
 0x1b5   : > { %v3632_v7 = vmul.f32 %v596_v45, %v3224_v9  ;;  %v3642_v0 = vmul.f32 %v596_v45, %v3226_v10 }
 0x1b7   : > { %v3574_v60 = vpop.permute.xlu1 %1185  ;;  %v3576_v59 = vpop.permute.xlu0 %1183  ;;  %v1193_v62 = vstv %s3582_s19  ;;  %s3653_s19 = sld [smem:[#allocation4 + $0x3c]] }
 0x1b8   : > { %5032 = vst [vmem:[#allocation62_spill] sm:$0xff] %v3574_v60  ;;  %5033 = vst [vmem:[#allocation63_spill] sm:$0xff] %v3576_v59 }
 0x1ba   : > { %5047 = sst [smem:[#allocation77_spill]] %s3651_s30  ;;  %s5082_s30 = sld [smem:[#allocation64_spill]] }
 0x1bb   : > { %v3594_v59 = vpop.permute.xlu1 %688  ;;  %v3596_v60 = vpop.permute.xlu0 %686 }
 0x1bc   : > { %5036 = vst [vmem:[#allocation66_spill] sm:$0xff] %v3594_v59  ;;  %5037 = vst [vmem:[#allocation67_spill] sm:$0xff] %v3596_v60  ;;  %v852_v59 = vstv %s3558_s26  ;;  %v1109_v60 = vstv %s3560_s25  ;;  %s3629_s26 = sld [smem:[#allocation4 + $0x20]]  ;;  %s3637_s25 = sld [smem:[#allocation4 + $0x6]] }
 0x1bd   : > { %v3645_v1 = vmul.f32 %v852_v59, %v3224_v9  ;;  %v3648_v2 = vmul.f32 %v1109_v60, %v3224_v9  ;;  %v3659_v45 = vmul.f32 %v1109_v60, %v3226_v10  ;;  %v5049_v9 = vstv %s3564_s16 }
 0x1be   : > { %v3669_v3 = vmul.f32 %v5049_v9, %v3252_v11  ;;  %v5057_v9 = vstv %s3570_s22 }
 0x1bf   : > { %v3619_v4 = vpop.permute.xlu1 %944  ;;  %v3621_v8 = vpop.permute.xlu0 %942 }
 0x1c0   : > { %5042 = vst [vmem:[#allocation72_spill] sm:$0xff] %v3619_v4  ;;  %5043 = vst [vmem:[#allocation73_spill] sm:$0xff] %v3621_v8  ;;  %v3656_v8 = vmul.f32 %v852_v59, %v3226_v10  ;;  %v5048_v4 = vstv %s3562_s12  ;;  %v5053_v10 = vstv %s3566_s15 }
 0x1c1   : > { %v3664_v61 = vmul.f32 %v5048_v4, %v3252_v11  ;;  %5050 = vst [vmem:[#allocation78_spill] sm:$0xff] %v3669_v3  ;;  %v3682_v60 = vmul.f32 %v5053_v10, %v3252_v11  ;;  %v5055_v4 = vstv %s3568_s29  ;;  %v3692_v3 = vmul.f32 %v5057_v9, %v3282_v14 }
 0x1c2   : > { %5044 = sst [smem:[#allocation74_spill]] %s3629_s26  ;;  %v3687_v57 = vmul.f32 %v5055_v4, %v3282_v14  ;;  %v3705_v11 = vmul.f32 %v680_v46, %v3308_v15  ;;  %v568_v10 = vstv %s3590_s3  ;;  %v3714_v9 = vmul.f32 %v680_v46, %v3310_v16  ;;  %s3725_s3 = sld [smem:[#allocation4 + $0x26]] }
 0x1c3   : > { %5045 = sst [smem:[#allocation75_spill]] %s3637_s25  ;;  %v3675_v58 = vpop.permute.xlu1 %700  ;;  %v3677_v59 = vpop.permute.xlu0 %698  ;;  %5054 = vst [vmem:[#allocation81_spill] sm:$0xff] %v3682_v60  ;;  %5058 = vst [vmem:[#allocation83_spill] sm:$0xff] %v3692_v3  ;;  %v3717_v3 = vmul.f32 %v936_v63, %v3308_v15  ;;  %v3731_v46 = vmul.f32 %v1193_v62, %v3310_v16  ;;  %v3734_v4 = vmul.f32 %v824_v56, %v3198_v5  ;;  %s3807_s25 = sld [smem:[#allocation4 + $0x44]] }
 0x1c4   : > { %5051 = vst [vmem:[#allocation79_spill] sm:$0xff] %v3675_v58  ;;  %5052 = vst [vmem:[#allocation80_spill] sm:$0xff] %v3677_v59  ;;  %v5059_v59 = vstv %s3572_s14  ;;  %s5078_s26 = sld [smem:[#allocation91_spill]] }
 0x1c5   : > { %5056 = vst [vmem:[#allocation82_spill] sm:$0xff] %v3687_v57  ;;  %v3702_v58 = vmul.f32 %v5059_v59, %v3282_v14  ;;  %5061 = vst [vmem:[#allocation85_spill] sm:$0xff] %v3705_v11  ;;  %v3720_v57 = vmul.f32 %v936_v63, %v3310_v16  ;;  %v1081_v14 = vstv %s3604_s8  ;;  %v3728_v59 = vmul.f32 %v1193_v62, %v3308_v15  ;;  %s3739_s8 = sld [smem:[#allocation4 + $0x27]] }
 0x1c6   : > { %5062 = vst [vmem:[#allocation86_spill] sm:$0xff] %v3714_v9  ;;  %5063 = vst [vmem:[#allocation87_spill] sm:$0xff] %v3717_v3  ;;  %v564_v3 = vstv %s3588_s1  ;;  %v3746_v15 = vmul.f32 %v3198_v5, %v568_v10  ;;  %v5071_v16 = vstv %s3592_s4  ;;  %s3759_s1 = sld [smem:[#allocation4 + $0x41]]  ;;  %s3769_s4 = sld [smem:[#allocation4 + $0x42]]  ;;  %v5076_v9 = vstv %s3564_s16 }
 0x1c7   : > { %5060 = vst [vmem:[#allocation84_spill] sm:$0xff] %v3702_v58  ;;  %5064 = vst [vmem:[#allocation88_spill] sm:$0xff] %v3720_v57  ;;  %v3741_v63 = vpop.permute.xlu1 %956  ;;  %v3743_v57 = vpop.permute.xlu0 %954  ;;  %v3751_v62 = vmul.f32 %v5071_v16, %v3336_v17  ;;  %v3767_v16 = vmul.f32 %v1081_v14, %v3204_v6  ;;  %v5079_v11 = vstv %s3566_s15  ;;  %s3843_s16 = sld [smem:[#allocation4 + $0x11]]  ;;  %s5091_s15 = sld [smem:[#allocation65_spill]] }
 0x1c8   : > { %5065 = vst [vmem:[#allocation89_spill] sm:$0xff] %v3728_v59  ;;  %5066 = vst [vmem:[#allocation90_spill] sm:$0xff] %v3731_v46  ;;  %v3754_v46 = vmul.f32 %v824_v56, %v3204_v6  ;;  %v3757_v59 = vmul.f32 %v3204_v6, %v568_v10  ;;  %v3774_v56 = vmul.f32 %v1081_v14, %v3198_v5  ;;  %v5100_v10 = vstv %s5082_s30 }
 0x1c9   : > { %5069 = vst [vmem:[#allocation93_spill] sm:$0xff] %v3741_v63  ;;  %5070 = vst [vmem:[#allocation94_spill] sm:$0xff] %v3743_v57  ;;  %v5075_v63 = vstv %s3562_s12  ;;  %v3815_v6 = vmul.f32 %v5079_v11, %v3254_v12  ;;  %s3817_s12 = sld [smem:[#allocation4 + $0x45]]  ;;  %v5087_v11 = vstv %s3572_s14  ;;  %s3861_s14 = sld [smem:[#allocation4 + $0x2c]] }
 0x1ca   : > { %5072 = vst [vmem:[#allocation95_spill] sm:$0xff] %v3751_v62  ;;  %v3800_v57 = vmul.f32 %v5075_v63, %v3254_v12  ;;  %v3805_v62 = vmul.f32 %v5076_v9, %v3254_v12  ;;  %v5083_v9 = vstv %s3568_s29  ;;  %v5092_v12 = vstv %s5082_s30  ;;  %s5093_s29 = sld [smem:[#allocation68_spill]]  ;;  %s3902_s30 = sld [smem:[#allocation4 + $0x2d]] }
 0x1cb   : > { %5068 = sst [smem:[#allocation92_spill]] %s3739_s8  ;;  %s3761_s8 = sld [smem:[#allocation4 + $0x2b]]  ;;  %v3789_v5 = vpop.permute.xlu1 %1201  ;;  %v3791_v14 = vpop.permute.xlu0 %1199  ;;  %5081 = vst [vmem:[#allocation99_spill] sm:$0xff] %v3815_v6  ;;  %v3824_v60 = vmul.f32 %v5083_v9, %v3280_v13  ;;  %v3837_v6 = vmul.f32 %v5087_v11, %v3280_v13 }
 0x1cc   : > { %5073 = vst [vmem:[#allocation96_spill] sm:$0xff] %v3789_v5  ;;  %5074 = vst [vmem:[#allocation97_spill] sm:$0xff] %v3791_v14  ;;  %v5085_v14 = vstv %s3570_s22  ;;  %s3855_s22 = sld [smem:[#allocation4 + $0x13]] }
 0x1cd   : > { %5077 = vst [vmem:[#allocation98_spill] sm:$0xff] %v3805_v62  ;;  %5084 = vst [vmem:[#allocation100_spill] sm:$0xff] %v3824_v60  ;;  %v3829_v5 = vmul.f32 %v5085_v14, %v3280_v13  ;;  %v565_v13 = vmul.f32 %v564_v3, %v3342_v20  ;;  %v822_v14 = vmul.f32 %v5100_v10, %v3348_v21  ;;  %v5104_v10 = vstv %s5094_s17  ;;  %s5108_s17 = sld [smem:[#allocation71_spill]] }
 0x1ce   : > { %5088 = vst [vmem:[#allocation102_spill] sm:$0xff] %v3837_v6  ;;  %v836_v55 = vmul.f32 %v5104_v10, %v3364_v25 }
 0x1cf   : > { %5086 = vst [vmem:[#allocation101_spill] sm:$0xff] %v3829_v5  ;;  %v3839_v58 = vpop.permute.xlu1 %1213  ;;  %v3841_v63 = vpop.permute.xlu0 %1211  ;;  %v821_v5 = vmul.f32 %v5092_v12, %v3340_v19  ;;  %v5096_v12 = vstv %s5091_s15  ;;  %s3907_s15 = sld [smem:[#allocation4 + $0x2e]] }
 0x1d0   : > { %5089 = vst [vmem:[#allocation103_spill] sm:$0xff] %v3839_v58  ;;  %5090 = vst [vmem:[#allocation104_spill] sm:$0xff] %v3841_v63  ;;  %v566_v63 = vmul.f32 %v564_v3, %v3350_v22  ;;  %v3871_v58 = vmul.f32 %v5096_v12, %v3338_v18  ;;  %v1221_v3 = vstv %s3793_s23  ;;  %v5101_v19 = vstv %s5093_s29  ;;  %s5103_s23 = sld [smem:[#allocation70_spill]]  ;;  %s3970_s29 = sld [smem:[#allocation4 + $0x47]] }
 0x1d1   : > { %v964_v62 = vstv %s3761_s8  ;;  %s3863_s8 = sld [smem:[#allocation4 + $0x12]]  ;;  %v580_v9 = vmul.f32 %v5101_v19, %v3356_v23  ;;  %v827_v12 = vadd.f32 %v3734_v4, %v821_v5  ;;  %v5105_v23 = vmov %v5104_v10 }
 0x1d2   : > { %5097 = vst [vmem:[#allocation106_spill] sm:$0xff] %v3871_v58  ;;  %v3876_v22 = vmul.f32 %v964_v62, %v3336_v17  ;;  %v3887_v6 = vmul.f32 %v964_v62, %v3338_v18  ;;  %v571_v58 = vadd.f32 %v3746_v15, %v565_v13  ;;  %v572_v21 = vadd.f32 %v3757_v59, %v566_v63 }
 0x1d3   : > { %v3866_v20 = vpop.permute.xlu1 %716  ;;  %v3873_v11 = vpop.permute.xlu0 %714  ;;  %v835_v62 = vmul.f32 %v5105_v23, %v3366_v26  ;;  %v3905_v4 = vmul.f32 %v1221_v3, %v3336_v17  ;;  %v3921_v13 = vmul.f32 %v1221_v3, %v3338_v18  ;;  %v828_v17 = vadd.f32 %v3754_v46, %v822_v14 }
 0x1d4   : > { %5095 = vst [vmem:[#allocation105_spill] sm:$0xff] %v3866_v20  ;;  %5098 = vst [vmem:[#allocation107_spill] sm:$0xff] %v3873_v11  ;;  %v736_v20 = vstv %s3855_s22  ;;  %s3973_s22 = sld [smem:[#allocation4 + $0x49]] }
 0x1d5   : > { %5099 = vst [vmem:[#allocation108_spill] sm:$0xff] %v3876_v22  ;;  %v5102_v22 = vmov %v5101_v19  ;;  %v582_v19 = vadd.f32 %v580_v9, %v572_v21  ;;  %v838_v18 = vadd.f32 %v836_v55, %v828_v17  ;;  %v837_v3 = vadd.f32 %v835_v62, %v827_v12 }
 0x1d6   : > { %v579_v11 = vmul.f32 %v5102_v22, %v3358_v24  ;;  %v5106_v24 = vstv %s3607_s9  ;;  %v3952_v62 = vmul.f32 %v736_v20, %v3388_v31  ;;  %s5115_s9 = sld [smem:[#allocation74_spill]] }
 0x1d7   : > { %v592_v15 = vmul.f32 %v5106_v24, %v3380_v29  ;;  %v5107_v59 = vmov %v5106_v24  ;;  %v3916_v63 = vpop.permute.xlu1 %972  ;;  %v3918_v26 = vpop.permute.xlu0 %970  ;;  %v5109_v29 = vstv %s5103_s23  ;;  %v5111_v24 = vstv %s3609_s10  ;;  %s5118_s10 = sld [smem:[#allocation75_spill]]  ;;  %s5121_s23 = sld [smem:[#allocation76_spill]]  ;;  %v5220_v9 = vld [vmem:[#allocation104_spill] sm:$0xff] }
 0x1d8   : > { %v591_v25 = vmul.f32 %v5107_v59, %v3382_v30  ;;  %v1079_v22 = vmul.f32 %v5109_v29, %v3372_v27  ;;  %v5110_v10 = vmov %v5109_v29  ;;  %v581_v23 = vadd.f32 %v579_v11, %v571_v58 }
 0x1d9   : > { %v1078_v30 = vmul.f32 %v5110_v10, %v3374_v28  ;;  %v848_v59 = vmul.f32 %v5111_v24, %v3392_v33  ;;  %v5112_v5 = vmov %v5111_v24  ;;  %v594_v27 = vadd.f32 %v592_v15, %v582_v19 }
 0x1da   : > { %v847_v60 = vmul.f32 %v5112_v5, %v3394_v34  ;;  %v593_v14 = vadd.f32 %v591_v25, %v581_v23  ;;  %v5113_v28 = vstv %s5108_s17  ;;  %v1085_v12 = vadd.f32 %v3767_v16, %v1079_v22  ;;  %s4377_s17 = sld [smem:[#allocation4 + $0x50]] }
 0x1db   : > { %v1093_v58 = vmul.f32 %v5113_v28, %v3400_v35  ;;  %v5114_v33 = vmov %v5113_v28  ;;  %v3945_v34 = vpop.permute.xlu1 %728  ;;  %v3947_v55 = vpop.permute.xlu0 %726  ;;  %v1084_v21 = vadd.f32 %v3774_v56, %v1078_v30  ;;  %v3955_v15 = vmul.f32 %v736_v20, %v3390_v32 }
 0x1dc   : > { %v1092_v11 = vmul.f32 %v5114_v33, %v3402_v36  ;;  %v850_v25 = vadd.f32 %v848_v59, %v838_v18  ;;  %v849_v35 = vadd.f32 %v847_v60, %v837_v3  ;;  %v5116_v5 = vstv %s3617_s28  ;;  %s5122_s28 = sld [smem:[#allocation77_spill]] }
 0x1dd   : > { %v1105_v36 = vmul.f32 %v5116_v5, %v3408_v37  ;;  %v5117_v17 = vmov %v5116_v5  ;;  %v5119_v16 = vstv %s3627_s13  ;;  %v992_v10 = vstv %s3907_s15  ;;  %s4011_s13 = sld [smem:[#allocation4 + $0x48]]  ;;  %s4375_s15 = sld [smem:[#allocation7 + $0x1]] }
 0x1de   : > { %v1104_v19 = vmul.f32 %v5117_v17, %v3410_v38  ;;  %v608_v56 = vmul.f32 %v5119_v16, %v3416_v39  ;;  %v5120_v29 = vmov %v5119_v16  ;;  %v1095_v60 = vadd.f32 %v1093_v58, %v1085_v12 }
 0x1df   : > { %v607_v22 = vmul.f32 %v5120_v29, %v3418_v40  ;;  %v1094_v37 = vadd.f32 %v1092_v11, %v1084_v21  ;;  %v600_v30 = vadd.f32 %v3632_v7, %v594_v27  ;;  %v599_v38 = vadd.f32 %v3642_v0, %v593_v14  ;;  %v3977_v39 = vpop.permute.xlu1 %984  ;;  %v3979_v23 = vpop.permute.xlu0 %982 }
 0x1e0   : > { %v5123_v40 = vstv %s5115_s9  ;;  %v5125_v3 = vstv %s5118_s10  ;;  %v1107_v27 = vadd.f32 %v1105_v36, %v1095_v60  ;;  %v856_v0 = vadd.f32 %v3645_v1, %v850_v25  ;;  %s4386_s9 = sld [smem:[#allocation7 + $0x2]]  ;;  %s4397_s10 = sld [smem:[#allocation9]] }
 0x1e1   : > { %v864_v24 = vmul.f32 %v5123_v40, %v3424_v41  ;;  %v5124_v59 = vmov %v5123_v40  ;;  %v620_v28 = vmul.f32 %v5125_v3, %v3432_v43  ;;  %v5126_v58 = vmov %v5125_v3 }
 0x1e2   : > { %v863_v18 = vmul.f32 %v5124_v59, %v3426_v42  ;;  %v619_v7 = vmul.f32 %v5126_v58, %v3434_v44  ;;  %v1106_v33 = vadd.f32 %v1104_v19, %v1094_v37  ;;  %v855_v14 = vadd.f32 %v3656_v8, %v849_v35  ;;  %v5135_v58 = vld [vmem:[#allocation40_spill] sm:$0xff] }
 0x1e3   : > { %v610_v11 = vadd.f32 %v608_v56, %v600_v30  ;;  %v609_v12 = vadd.f32 %v607_v22, %v599_v38  ;;  %v5127_v21 = vstv %s5121_s23  ;;  %v5129_v43 = vstv %s5122_s28  ;;  %v4007_v1 = vpop.permute.xlu1 %1229  ;;  %v4009_v8 = vpop.permute.xlu0 %1227  ;;  %s2432_s23 = sld [smem:[#allocation9 + $0x2]]  ;;  %s4401_s28 = sld [smem:[#allocation10 + $0x1]] }
 0x1e4   : > { %v876_v41 = vmul.f32 %v5127_v21, %v3444_v47  ;;  %v5128_v42 = vmov %v5127_v21  ;;  %v1121_v17 = vmul.f32 %v5129_v43, %v3452_v49  ;;  %v5130_v44 = vmov %v5129_v43  ;;  %v5143_v43 = vld [vmem:[#allocation78_spill] sm:$0xff] }
 0x1e5   : > { %v875_v5 = vmul.f32 %v5128_v42, %v3446_v48  ;;  %v1120_v36 = vmul.f32 %v5130_v44, %v3454_v50  ;;  %v4014_v47 = vmul.f32 %v992_v10, %v3388_v31  ;;  %v4017_v48 = vmul.f32 %v992_v10, %v3390_v32  ;;  %v5145_v44 = vld [vmem:[#allocation46_spill] sm:$0xff] }
 0x1e6   : > { %v866_v49 = vadd.f32 %v864_v24, %v856_v0  ;;  %v865_v25 = vadd.f32 %v863_v18, %v855_v14  ;;  %v622_v35 = vadd.f32 %v620_v28, %v610_v11  ;;  %v621_v50 = vadd.f32 %v619_v7, %v609_v12  ;;  %v5139_v11 = vld [vmem:[#allocation42_spill] sm:$0xff] }
 0x1e7   : > { %v1113_v19 = vadd.f32 %v3648_v2, %v1107_v27  ;;  %v1112_v16 = vadd.f32 %v3659_v45, %v1106_v33  ;;  %v5131_v56 = vstv %s3653_s19  ;;  %v1249_v38 = vstv %s3973_s22  ;;  %v4035_v18 = vpop.permute.xlu1 %1241  ;;  %v4037_v3 = vpop.permute.xlu0 %1239  ;;  %s4039_s19 = sld [smem:[#allocation4 + $0x16]]  ;;  %v5137_v33 = vld [vmem:[#allocation41_spill] sm:$0xff]  ;;  %s2430_s22 = sld [smem:[#allocation9 + $0x1]] }
 0x1e8   : > { %v1133_v29 = vmul.f32 %v5131_v56, %v3460_v51  ;;  %v5132_v22 = vmov %v5131_v56  ;;  %v878_v37 = vadd.f32 %v876_v41, %v866_v49  ;;  %v877_v10 = vadd.f32 %v875_v5, %v865_v25  ;;  %v5141_v41 = vld [vmem:[#allocation43_spill] sm:$0xff]  ;;  %v5204_v56 = vld [vmem:[#allocation80_spill] sm:$0xff] }
 0x1e9   : > { %v1132_v60 = vmul.f32 %v5132_v22, %v3462_v52  ;;  %v1123_v40 = vadd.f32 %v1121_v17, %v1113_v19  ;;  %v1122_v24 = vadd.f32 %v1120_v36, %v1112_v16  ;;  %v5133_v2 = vstv %s3671_s2  ;;  %v5144_v17 = vld [vmem:[#allocation98_spill] sm:$0xff]  ;;  %v5147_v25 = vld [vmem:[#allocation47_spill] sm:$0xff]  ;;  %s4169_s2 = sld [smem:[#allocation4 + $0x4c]] }
 0x1ea   : > { %v636_v45 = vmul.f32 %v5133_v2, %v3468_v53  ;;  %v5134_v59 = vmov %v5133_v2  ;;  %v628_v52 = vadd.f32 %v3664_v61, %v622_v35  ;;  %v627_v28 = vadd.f32 %v3800_v57, %v621_v50 }
 0x1eb   : > { %v635_v51 = vmul.f32 %v5134_v59, %v3470_v54  ;;  %v5136_v7 = vstv %s3673_s20  ;;  %v1135_v14 = vadd.f32 %v1133_v29, %v1123_v40  ;;  %v1134_v54 = vadd.f32 %v1132_v60, %v1122_v24  ;;  %v4064_v29 = vpop.permute.xlu1 %744  ;;  %v4066_v22 = vpop.permute.xlu0 %742  ;;  %v5149_v40 = vld [vmem:[#allocation48_spill] sm:$0xff]  ;;  %v5151_v59 = vld [vmem:[#allocation49_spill] sm:$0xff]  ;;  %s4079_s20 = sld [smem:[#allocation4 + $0x2f]] }
 0x1ec   : > { %v892_v27 = vmul.f32 %v5136_v7, %v5135_v58  ;;  %v5138_v53 = vmov %v5136_v7  ;;  %v5140_v12 = vstv %s3695_s11  ;;  %v884_v61 = vadd.f32 %v5143_v43, %v878_v37  ;;  %s4077_s11 = sld [smem:[#allocation4 + $0x14]]  ;;  %v5153_v58 = vld [vmem:[#allocation81_spill] sm:$0xff] }
 0x1ed   : > { %v891_v0 = vmul.f32 %v5138_v53, %v5137_v33  ;;  %v648_v21 = vmul.f32 %v5140_v12, %v5139_v11  ;;  %v5142_v42 = vmov %v5140_v12  ;;  %v883_v57 = vadd.f32 %v5144_v17, %v877_v10  ;;  %v5154_v7 = vld [vmem:[#allocation99_spill] sm:$0xff]  ;;  %v5161_v17 = vld [vmem:[#allocation53_spill] sm:$0xff] }
 0x1ee   : > { %v647_v5 = vmul.f32 %v5142_v42, %v5141_v41  ;;  %v5146_v36 = vstv %s3697_s27  ;;  %v638_v19 = vadd.f32 %v636_v45, %v628_v52  ;;  %v637_v16 = vadd.f32 %v635_v51, %v627_v28  ;;  %v5157_v41 = vld [vmem:[#allocation51_spill] sm:$0xff]  ;;  %s4111_s27 = sld [smem:[#allocation4 + $0x31]] }
 0x1ef   : > { %v904_v49 = vmul.f32 %v5146_v36, %v5145_v44  ;;  %v5148_v35 = vmov %v5146_v36  ;;  %v4069_v60 = vmul.f32 %v1249_v38, %v3388_v31  ;;  %v894_v37 = vadd.f32 %v892_v27, %v884_v61  ;;  %v4097_v44 = vpop.permute.xlu1 %1000 }
 0x1f0   : > { %v903_v50 = vmul.f32 %v5148_v35, %v5147_v25  ;;  %v893_v10 = vadd.f32 %v891_v0, %v883_v57  ;;  %v5150_v24 = vstv %s3709_s21  ;;  %v650_v52 = vadd.f32 %v648_v21, %v638_v19  ;;  %v5155_v0 = vld [vmem:[#allocation50_spill] sm:$0xff]  ;;  %s4089_s21 = sld [smem:[#allocation4 + $0x15]]  ;;  %v5159_v21 = vld [vmem:[#allocation52_spill] sm:$0xff] }
 0x1f1   : > { %v1149_v2 = vmul.f32 %v5150_v24, %v5149_v40  ;;  %v5152_v45 = vmov %v5150_v24  ;;  %v649_v28 = vadd.f32 %v647_v5, %v637_v16  ;;  %v1141_v31 = vadd.f32 %v5153_v58, %v1135_v14  ;;  %v5168_v24 = vld [vmem:[#allocation100_spill] sm:$0xff] }
 0x1f2   : > { %v1148_v51 = vmul.f32 %v5152_v45, %v5151_v59  ;;  %v1140_v27 = vadd.f32 %v5154_v7, %v1134_v54  ;;  %v906_v33 = vadd.f32 %v904_v49, %v894_v37  ;;  %v905_v53 = vadd.f32 %v903_v50, %v893_v10  ;;  %v4099_v54 = vpop.permute.xlu0 %998  ;;  %v5164_v50 = vld [vmem:[#allocation54_spill] sm:$0xff]  ;;  %v5166_v37 = vld [vmem:[#allocation55_spill] sm:$0xff]  ;;  %v5169_v45 = vld [vmem:[#allocation82_spill] sm:$0xff] }
 0x1f3   : > { %v5156_v11 = vstv %s3711_s18  ;;  %v5160_v5 = vstv %s3723_s0  ;;  %v4102_v36 = vmul.f32 %v1249_v38, %v3390_v32  ;;  %v764_v49 = vstv %s4039_s19  ;;  %s5163_s18 = sld [smem:[#allocation92_spill]]  ;;  %v5170_v32 = vld [vmem:[#allocation56_spill] sm:$0xff]  ;;  %s4293_s0 = sld [smem:[#allocation4 + $0x33]] }
 0x1f4   : > { %v1161_v12 = vmul.f32 %v5156_v11, %v5155_v0  ;;  %v5158_v42 = vmov %v5156_v11  ;;  %v664_v61 = vmul.f32 %v5160_v5, %v5159_v21  ;;  %v5162_v14 = vmov %v5160_v5  ;;  %v5174_v11 = vld [vmem:[#allocation101_spill] sm:$0xff]  ;;  %s4408_s19 = sld [smem:[#allocation12]] }
 0x1f5   : > { %v1160_v43 = vmul.f32 %v5158_v42, %v5157_v41  ;;  %v663_v57 = vmul.f32 %v5162_v14, %v5161_v17  ;;  %v1151_v25 = vadd.f32 %v1149_v2, %v1141_v31  ;;  %v1150_v35 = vadd.f32 %v1148_v51, %v1140_v27  ;;  %v5172_v2 = vld [vmem:[#allocation57_spill] sm:$0xff]  ;;  %v5176_v17 = vld [vmem:[#allocation58_spill] sm:$0xff] }
 0x1f6   : > { %v5165_v19 = vstv %s3725_s3  ;;  %v656_v59 = vadd.f32 %v5168_v24, %v650_v52  ;;  %v655_v58 = vadd.f32 %v5169_v45, %v649_v28  ;;  %v5171_v38 = vstv %s5078_s26  ;;  %v5175_v42 = vld [vmem:[#allocation83_spill] sm:$0xff]  ;;  %v4131_v24 = vpop.permute.xlu0 %754  ;;  %s4141_s26 = sld [smem:[#allocation4 + $0x30]]  ;;  %s4295_s3 = sld [smem:[#allocation4 + $0x34]] }
 0x1f7   : > { %v920_v16 = vmul.f32 %v5165_v19, %v5164_v50  ;;  %v5167_v10 = vmov %v5165_v19  ;;  %v676_v7 = vmul.f32 %v5171_v38, %v5170_v32  ;;  %v5173_v31 = vmov %v5171_v38  ;;  %v5178_v50 = vld [vmem:[#allocation59_spill] sm:$0xff]  ;;  %v5182_v45 = vld [vmem:[#allocation61_spill] sm:$0xff]  ;;  %v5184_v38 = vld [vmem:[#allocation102_spill] sm:$0xff] }
 0x1f8   : > { %v919_v40 = vmul.f32 %v5167_v10, %v5166_v37  ;;  %v675_v51 = vmul.f32 %v5173_v31, %v5172_v2  ;;  %v1163_v27 = vadd.f32 %v1161_v12, %v1151_v25  ;;  %v1162_v0 = vadd.f32 %v1160_v43, %v1150_v35  ;;  %v4129_v10 = vpop.permute.xlu1 %756 }
 0x1f9   : > { %v912_v41 = vadd.f32 %v5174_v11, %v906_v33  ;;  %v911_v21 = vadd.f32 %v5175_v42, %v905_v53  ;;  %v666_v5 = vadd.f32 %v664_v61, %v656_v59  ;;  %v665_v52 = vadd.f32 %v663_v57, %v655_v58  ;;  %v5180_v57 = vld [vmem:[#allocation60_spill] sm:$0xff]  ;;  %v5186_v11 = vld [vmem:[#allocation38_spill] sm:$0xff] }
 0x1fa   : > { %v5177_v14 = vstv %s5163_s18  ;;  %v5181_v35 = vstv %s3759_s1  ;;  %v1169_v2 = vadd.f32 %v5184_v38, %v1163_v27  ;;  %v5187_v42 = vld [vmem:[#allocation62_spill] sm:$0xff]  ;;  %v4157_v27 = vpop.permute.xlu0 %1010  ;;  %v5199_v25 = vstv %s3779_s6  ;;  %s4235_s6 = sld [smem:[#allocation4 + $0x19]]  ;;  %s4321_s1 = sld [smem:[#allocation4 + $0x4d]] }
 0x1fb   : > { %v932_v28 = vmul.f32 %v5177_v14, %v5176_v17  ;;  %v5179_v19 = vmov %v5177_v14  ;;  %v922_v12 = vadd.f32 %v920_v16, %v912_v41  ;;  %v921_v43 = vadd.f32 %v919_v40, %v911_v21  ;;  %v5185_v16 = vld [vmem:[#allocation84_spill] sm:$0xff]  ;;  %s4417_s18 = sld [smem:[#allocation12 + $0x3]] }
 0x1fc   : > { %v931_v37 = vmul.f32 %v5179_v19, %v5178_v50  ;;  %v678_v53 = vadd.f32 %v676_v7, %v666_v5  ;;  %v677_v61 = vadd.f32 %v675_v51, %v665_v52  ;;  %v1177_v59 = vmul.f32 %v5181_v35, %v5180_v57  ;;  %v5189_v52 = vld [vmem:[#allocation63_spill] sm:$0xff]  ;;  %v4155_v50 = vpop.permute.xlu1 %1012 }
 0x1fd   : > { %v5183_v58 = vmov %v5181_v35  ;;  %v1168_v31 = vadd.f32 %v5185_v16, %v1162_v0  ;;  %v4147_v41 = vmul.f32 %v764_v49, %v5186_v11  ;;  %v934_v7 = vadd.f32 %v932_v28, %v922_v12  ;;  %v5191_v0 = vld [vmem:[#allocation66_spill] sm:$0xff]  ;;  %v5193_v35 = vld [vmem:[#allocation67_spill] sm:$0xff]  ;;  %v5195_v12 = vld [vmem:[#allocation39_spill] sm:$0xff] }
 0x1fe   : > { %v1176_v32 = vmul.f32 %v5183_v58, %v5182_v45  ;;  %v933_v51 = vadd.f32 %v931_v37, %v921_v43  ;;  %v5188_v21 = vstv %s3769_s4  ;;  %v5192_v19 = vstv %s3771_s24  ;;  %v5196_v16 = vld [vmem:[#allocation85_spill] sm:$0xff]  ;;  %s4185_s4 = sld [smem:[#allocation4 + $0x4a]]  ;;  %s4187_s24 = sld [smem:[#allocation4 + $0x4b]] }
 0x1ff   : > { %v1189_v5 = vmul.f32 %v5188_v21, %v5187_v42  ;;  %v5190_v17 = vmov %v5188_v21  ;;  %v692_v57 = vmul.f32 %v5192_v19, %v5191_v0  ;;  %v5194_v45 = vmov %v5192_v19  ;;  %v5197_v21 = vld [vmem:[#allocation86_spill] sm:$0xff]  ;;  %v5200_v19 = vld [vmem:[#allocation73_spill] sm:$0xff] }
 0x200   : > { %v1188_v14 = vmul.f32 %v5190_v17, %v5189_v52  ;;  %v691_v28 = vmul.f32 %v5194_v45, %v5193_v35  ;;  %v4166_v37 = vmul.f32 %v764_v49, %v5195_v12  ;;  %v1020_v43 = vstv %s4111_s27  ;;  %v5198_v17 = vld [vmem:[#allocation72_spill] sm:$0xff]  ;;  %v5202_v49 = vld [vmem:[#allocation79_spill] sm:$0xff]  ;;  %s4419_s27 = sld [smem:[#allocation12 + $0x4]] }
 0x201   : > { %v1179_v58 = vadd.f32 %v1177_v59, %v1169_v2  ;;  %v1178_v38 = vadd.f32 %v1176_v32, %v1168_v31  ;;  %v684_v42 = vadd.f32 %v5196_v16, %v678_v53  ;;  %v683_v52 = vadd.f32 %v5197_v21, %v677_v61  ;;  %v5206_v2 = vld [vmem:[#allocation87_spill] sm:$0xff]  ;;  %v5207_v31 = vld [vmem:[#allocation88_spill] sm:$0xff]  ;;  %v4191_v21 = vpop.permute.xlu1 %1257 }
 0x202   : > { %v948_v0 = vmul.f32 %v5199_v25, %v5198_v17  ;;  %v5201_v40 = vmov %v5199_v25  ;;  %v5203_v45 = vstv %s3781_s7  ;;  %v940_v25 = vadd.f32 %v5206_v2, %v934_v7  ;;  %v5214_v7 = vld [vmem:[#allocation97_spill] sm:$0xff]  ;;  %s4257_s7 = sld [smem:[#allocation4 + $0x32]] }
 0x203   : > { %v947_v35 = vmul.f32 %v5201_v40, %v5200_v19  ;;  %v704_v33 = vmul.f32 %v5203_v45, %v5202_v49  ;;  %v5205_v59 = vmov %v5203_v45  ;;  %v1191_v53 = vadd.f32 %v1189_v5, %v1179_v58  ;;  %v4193_v40 = vpop.permute.xlu0 %1255  ;;  %v5208_v49 = vld [vmem:[#allocation93_spill] sm:$0xff]  ;;  %v5212_v5 = vld [vmem:[#allocation96_spill] sm:$0xff] }
 0x204   : > { %v703_v32 = vmul.f32 %v5205_v59, %v5204_v56  ;;  %v1190_v61 = vadd.f32 %v1188_v14, %v1178_v38  ;;  %v939_v16 = vadd.f32 %v5207_v31, %v933_v51  ;;  %v694_v17 = vadd.f32 %v692_v57, %v684_v42  ;;  %v5210_v59 = vld [vmem:[#allocation94_spill] sm:$0xff] }
 0x205   : > { %v693_v19 = vadd.f32 %v691_v28, %v683_v52  ;;  %v5209_v56 = vstv %s3787_s5  ;;  %v5213_v14 = vstv %s3807_s25  ;;  %v4209_v31 = vmul.f32 %v1020_v43, %v5186_v11  ;;  %v5216_v52 = vld [vmem:[#allocation89_spill] sm:$0xff]  ;;  %v4219_v2 = vpop.permute.xlu1 %1269  ;;  %s4233_s5 = sld [smem:[#allocation4 + $0x17]]  ;;  %s4259_s25 = sld [smem:[#allocation4 + $0x18]] }
 0x206   : > { %v960_v45 = vmul.f32 %v5209_v56, %v5208_v49  ;;  %v5211_v30 = vmov %v5209_v56  ;;  %v1205_v58 = vmul.f32 %v5213_v14, %v5212_v5  ;;  %v5215_v38 = vmov %v5213_v14 }
 0x207   : > { %v959_v20 = vmul.f32 %v5211_v30, %v5210_v59  ;;  %v1204_v51 = vmul.f32 %v5215_v38, %v5214_v7  ;;  %v950_v46 = vadd.f32 %v948_v0, %v940_v25  ;;  %v949_v57 = vadd.f32 %v947_v35, %v939_v16  ;;  %v5217_v30 = vld [vmem:[#allocation90_spill] sm:$0xff]  ;;  %v5218_v59 = vld [vmem:[#allocation103_spill] sm:$0xff]  ;;  %v4221_v0 = vpop.permute.xlu0 %1267  ;;  %v5222_v16 = vld [vmem:[#allocation105_spill] sm:$0xff] }
 0x208   : > { %v706_v28 = vadd.f32 %v704_v33, %v694_v17  ;;  %v705_v42 = vadd.f32 %v703_v32, %v693_v19  ;;  %v1197_v49 = vadd.f32 %v5216_v52, %v1191_v53  ;;  %v1196_v56 = vadd.f32 %v5217_v30, %v1190_v61  ;;  %v5224_v19 = vld [vmem:[#allocation107_spill] sm:$0xff] }
 0x209   : > { %v5219_v5 = vstv %s3817_s12  ;;  %v962_v35 = vadd.f32 %v960_v45, %v950_v46  ;;  %v961_v33 = vadd.f32 %v959_v20, %v949_v57  ;;  %v4224_v32 = vmul.f32 %v1020_v43, %v5195_v12  ;;  %v5226_v46 = vld [vmem:[#allocation95_spill] sm:$0xff]  ;;  %v5227_v45 = vld [vmem:[#allocation106_spill] sm:$0xff]  ;;  %s4344_s12 = sld [smem:[#allocation4 + $0x4e]] }
 0x20a   : > { %v1217_v14 = vmul.f32 %v5219_v5, %v5218_v59  ;;  %v5221_v7 = vmov %v5219_v5  ;;  %v1277_v53 = vstv %s4169_s2  ;;  %v1207_v61 = vadd.f32 %v1205_v58, %v1197_v49  ;;  %s4423_s2 = sld [smem:[#allocation12 + $0x6]] }
 0x20b   : > { %v1216_v38 = vmul.f32 %v5221_v7, %v5220_v9  ;;  %v1206_v25 = vadd.f32 %v1204_v51, %v1196_v56  ;;  %v5223_v17 = vstv %s3843_s16  ;;  %v712_v20 = vadd.f32 %v5226_v46, %v706_v28  ;;  %s4346_s16 = sld [smem:[#allocation4 + $0x1a]] }
 0x20c   : > { %v720_v9 = vmul.f32 %v5223_v17, %v5222_v16  ;;  %v5225_v52 = vmov %v5223_v17  ;;  %v711_v43 = vadd.f32 %v5227_v45, %v705_v42  ;;  %v1259_v57 = vstv %s4185_s4  ;;  %v4247_v16 = vpop.permute.xlu1 %772  ;;  %v4249_v17 = vpop.permute.xlu0 %770  ;;  %s4425_s4 = sld [smem:[#allocation12 + $0x7]] }
 0x20d   : > { %v719_v30 = vmul.f32 %v5225_v52, %v5224_v19  ;;  %v1271_v59 = vstv %s4187_s24  ;;  %v1219_v58 = vadd.f32 %v1217_v14, %v1207_v61  ;;  %v1218_v51 = vadd.f32 %v1216_v38, %v1206_v25  ;;  %v5232_v19 = vld [vmem:[#allocation108_spill] sm:$0xff]  ;;  %s4427_s24 = sld [smem:[#allocation13 + $0x1]] }
 0x20e   : > { %v5228_v49 = vstv %s3863_s8  ;;  %v5230_v28 = vstv %s3861_s14  ;;  %v722_v38 = vadd.f32 %v720_v9, %v712_v20  ;;  %v968_v52 = vadd.f32 %v5232_v19, %v962_v35  ;;  %s4359_s14 = sld [smem:[#allocation4 + $0x4f]]  ;;  %s4366_s8 = sld [smem:[#allocation7]] }
 0x20f   : > { %v732_v56 = vmul.f32 %v5228_v49, %v3945_v34  ;;  %v5229_v5 = vmov %v5228_v49  ;;  %v976_v42 = vmul.f32 %v5230_v28, %v3916_v63  ;;  %v5231_v14 = vmov %v5230_v28 }
 0x210   : > { %v731_v7 = vmul.f32 %v5229_v5, %v3947_v55  ;;  %v975_v61 = vmul.f32 %v5231_v14, %v3918_v26  ;;  %v4262_v34 = vmul.f32 %v1277_v53, %v5186_v11  ;;  %v4265_v55 = vmul.f32 %v1277_v53, %v5195_v12  ;;  %v4285_v20 = vpop.permute.xlu0 %1026 }
 0x211   : > { %v721_v25 = vadd.f32 %v719_v30, %v711_v43  ;;  %v967_v63 = vadd.f32 %v3887_v6, %v961_v33  ;;  %v5233_v26 = vstv %s3902_s30  ;;  %v5235_v11 = vstv %s3970_s29  ;;  %s4369_s30 = sld [smem:[#allocation4 + $0x35]]  ;;  %s4399_s29 = sld [smem:[#allocation10]] }
 0x212   : > { %v988_v46 = vmul.f32 %v5233_v26, %v3977_v39  ;;  %v5234_v45 = vmov %v5233_v26  ;;  %v1233_v12 = vmul.f32 %v5235_v11, %v4007_v1  ;;  %v5236_v53 = vmov %v5235_v11  ;;  %v4283_v39 = vpop.permute.xlu1 %1028 }
 0x213   : > { %v987_v49 = vmul.f32 %v5234_v45, %v3979_v23  ;;  %v1232_v9 = vmul.f32 %v5236_v53, %v4009_v8  ;;  %v734_v30 = vadd.f32 %v732_v56, %v722_v38  ;;  %v733_v35 = vadd.f32 %v731_v7, %v721_v25 }
 0x214   : > { %v1225_v6 = vadd.f32 %v3905_v4, %v1219_v58  ;;  %v1224_v33 = vadd.f32 %v3921_v13, %v1218_v51  ;;  %v978_v23 = vadd.f32 %v976_v42, %v968_v52  ;;  %v977_v43 = vadd.f32 %v975_v61, %v967_v63  ;;  %v783_v63 = vpop.permute.xlu0 %782 }
 0x215   : > { %v5237_v1 = vstv %s4011_s13  ;;  %v5239_v4 = vstv %s4077_s11  ;;  %v774_v56 = vstv %s4233_s5  ;;  %v792_v7 = vstv %s4235_s6  ;;  %s4403_s13 = sld [smem:[#allocation10 + $0x2]]  ;;  %s4411_s11 = sld [smem:[#allocation12 + $0x1]] }
 0x216   : > { %v1245_v5 = vmul.f32 %v5237_v1, %v4035_v18  ;;  %v5238_v8 = vmov %v5237_v1  ;;  %v748_v13 = vmul.f32 %v5239_v4, %v4064_v29  ;;  %v5240_v58 = vmov %v5239_v4  ;;  %s4429_s5 = sld [smem:[#allocation12 + $0x8]]  ;;  %s4431_s6 = sld [smem:[#allocation13 + $0x2]] }
 0x217   : > { %v1244_v28 = vmul.f32 %v5238_v8, %v4037_v3  ;;  %v747_v51 = vmul.f32 %v5240_v58, %v4066_v22  ;;  %v990_v42 = vadd.f32 %v988_v46, %v978_v23  ;;  %v989_v18 = vadd.f32 %v987_v49, %v977_v43  ;;  %v785_v22 = vpop.permute.xlu1 %784 }
 0x218   : > { %v1235_v14 = vadd.f32 %v1233_v12, %v1225_v6  ;;  %v1234_v3 = vadd.f32 %v1232_v9, %v1224_v33  ;;  %v740_v61 = vadd.f32 %v3952_v62, %v734_v30  ;;  %v739_v38 = vadd.f32 %v3955_v15, %v733_v35  ;;  %v5245_v30 = vld [vmem:[#allocation44_spill] sm:$0xff]  ;;  %v5246_v6 = vld [vmem:[#allocation45_spill] sm:$0xff] }
 0x219   : > { %v5241_v25 = vstv %s4089_s21  ;;  %v1030_v45 = vstv %s4257_s7  ;;  %v786_v49 = vstv %s4259_s25  ;;  %v5243_v15 = vstv %s4079_s20  ;;  %s4413_s20 = sld [smem:[#allocation12 + $0x2]]  ;;  %s4415_s21 = sld [smem:[#allocation13]] }
 0x21a   : > { %v760_v29 = vmul.f32 %v5241_v25, %v4129_v10  ;;  %v5242_v19 = vmov %v5241_v25  ;;  %v1247_v26 = vadd.f32 %v1245_v5, %v1235_v14  ;;  %v1246_v46 = vadd.f32 %v1244_v28, %v1234_v3  ;;  %s5249_s7 = smov 1   ;;  %s5250_s25 = smov 127  }
 0x21b   : > { %v759_v52 = vmul.f32 %v5242_v19, %v4131_v24  ;;  %v750_v11 = vadd.f32 %v748_v13, %v740_v61  ;;  %v749_v62 = vadd.f32 %v747_v51, %v739_v38  ;;  %v1004_v12 = vmul.f32 %v5243_v15, %v4097_v44  ;;  %v1041_v8 = vpop.permute.xlu1 %1040 }
 0x21c   : > { %v5244_v10 = vmov %v5243_v15  ;;  %v996_v24 = vadd.f32 %v4014_v47, %v990_v42  ;;  %v995_v9 = vadd.f32 %v4017_v48, %v989_v18  ;;  %v4326_v35 = vmul.f32 %v792_v7, %v5245_v30  ;;  %v1039_v47 = vpop.permute.xlu0 %1038 }
 0x21d   : > { %v1003_v53 = vmul.f32 %v5244_v10, %v4099_v54  ;;  %v4329_v33 = vmul.f32 %v792_v7, %v5246_v6  ;;  %v762_v23 = vadd.f32 %v760_v29, %v750_v11  ;;  %v761_v43 = vadd.f32 %v759_v52, %v749_v62  ;;  %v2684_v10 = vld [vmem:[#allocation2 + $0x49] sm:$0xff] }
 0x21e   : > { %v5247_v44 = vstv %s4141_s26  ;;  %v1261_v48 = vmul.f32 %v1259_v57, %v4191_v21  ;;  %v1260_v28 = vmul.f32 %v1259_v57, %v4193_v40  ;;  %v1042_v4 = vstv %s4293_s0  ;;  %s4421_s26 = sld [smem:[#allocation12 + $0x5]]  ;;  %s1495_s0 = sld [smem:[#allocation15]] }
 0x21f   : > { %v1016_v54 = vmul.f32 %v5247_v44, %v4155_v50  ;;  %v5248_v1 = vmov %v5247_v44  ;;  %v1048_v13 = vstv %s4295_s3  ;;  %v1006_v58 = vadd.f32 %v1004_v12, %v996_v24  ;;  %s2444_s3 = sld [smem:[#allocation15 + $0x1]] }
 0x220   : > { %v1015_v5 = vmul.f32 %v5248_v1, %v4157_v27  ;;  %v1005_v51 = vadd.f32 %v1003_v53, %v995_v9  ;;  %v1253_v50 = vadd.f32 %v4069_v60, %v1247_v26  ;;  %v1252_v27 = vadd.f32 %v4102_v36, %v1246_v46  ;;  %v1286_v36 = vpop.permute.xlu1 %1285  ;;  %v1284_v3 = vpop.permute.xlu0 %1283 }
 0x221   : > { %v1273_v7 = vmul.f32 %v1271_v59, %v4219_v2  ;;  %v1272_v21 = vmul.f32 %v1271_v59, %v4221_v0  ;;  %v776_v40 = vmul.f32 %v774_v56, %v4247_v16  ;;  %v775_v57 = vmul.f32 %v774_v56, %v4249_v17 }
 0x222   : > { %v1018_v42 = vadd.f32 %v1016_v54, %v1006_v58  ;;  %v1017_v18 = vadd.f32 %v1015_v5, %v1005_v51  ;;  %v768_v14 = vadd.f32 %v4147_v41, %v762_v23  ;;  %v767_v60 = vadd.f32 %v4166_v37, %v761_v43 }
 0x223   : > { %v1263_v61 = vadd.f32 %v1261_v48, %v1253_v50  ;;  %v1262_v2 = vadd.f32 %v1260_v28, %v1252_v27  ;;  %v788_v38 = vmul.f32 %v786_v49, %v785_v22  ;;  %v787_v25 = vmul.f32 %v786_v49, %v783_v63 }
 0x224   : > { %v1032_v0 = vmul.f32 %v1030_v45, %v4283_v39  ;;  %v1031_v59 = vmul.f32 %v1030_v45, %v4285_v20  ;;  %v1287_v16 = vstv %s4321_s1  ;;  %v1050_v17 = vmul.f32 %v1048_v13, %v5245_v30  ;;  %v1298_v20 = vpop.permute.xlu1 %1297  ;;  %v1296_v63 = vpop.permute.xlu0 %1295  ;;  %s2445_s1 = sld [smem:[#allocation15 + $0x2]] }
 0x225   : > { %v1275_v41 = vadd.f32 %v1273_v7, %v1263_v61  ;;  %v1274_v37 = vadd.f32 %v1272_v21, %v1262_v2  ;;  %v778_v56 = vadd.f32 %v776_v40, %v768_v14  ;;  %v777_v29 = vadd.f32 %v775_v57, %v767_v60 }
 0x226   : > { %v1024_v19 = vadd.f32 %v4209_v31, %v1018_v42  ;;  %v1023_v52 = vadd.f32 %v4224_v32, %v1017_v18  ;;  %v1044_v39 = vmul.f32 %v1042_v4, %v1041_v8  ;;  %v1043_v22 = vmul.f32 %v1042_v4, %v1039_v47 }
 0x227   : > { %v790_v26 = vadd.f32 %v788_v38, %v778_v56  ;;  %v789_v46 = vadd.f32 %v787_v25, %v777_v29  ;;  %v1299_v45 = vstv %s4344_s12  ;;  %v802_v49 = vstv %s4346_s16  ;;  %s2456_s12 = sld [smem:[#allocation15 + $0x9]]  ;;  %s4565_s16 = sld [smem:[#allocation15 + $0xa]] }
 0x228   : > { %v1034_v11 = vadd.f32 %v1032_v0, %v1024_v19  ;;  %v1033_v62 = vadd.f32 %v1031_v59, %v1023_v52  ;;  %v1289_v15 = vmul.f32 %v1287_v16, %v1286_v36  ;;  %v1288_v12 = vmul.f32 %v1287_v16, %v1284_v3  ;;  %v801_v43 = vpop.permute.xlu1 %800  ;;  %v799_v44 = vpop.permute.xlu0 %798 }
 0x229   : > { %v1281_v31 = vadd.f32 %v4262_v34, %v1275_v41  ;;  %v1280_v32 = vadd.f32 %v4265_v55, %v1274_v37  ;;  %v1049_v53 = vmul.f32 %v2684_v10, %v1048_v13  ;;  %v1305_v24 = vstv %s4359_s14  ;;  %v2685_v13 = vld [vmem:[#allocation2 + $0x51] sm:$0xff]  ;;  %s2458_s14 = sld [smem:[#allocation15 + $0xb]] }
 0x22a   : > { %v1046_v9 = vadd.f32 %v1044_v39, %v1034_v11  ;;  %v1045_v30 = vadd.f32 %v1043_v22, %v1033_v62  ;;  %v1301_v6 = vmul.f32 %v1299_v45, %v1298_v20  ;;  %v1300_v23 = vmul.f32 %v1299_v45, %v1296_v63 }
 0x22b   : > { %v796_v54 = vadd.f32 %v4326_v35, %v790_v26  ;;  %v804_v1 = vmul.f32 %v802_v49, %v801_v43  ;;  %v795_v5 = vadd.f32 %v4329_v33, %v789_v46  ;;  %v803_v8 = vmul.f32 %v802_v49, %v799_v44 }
 0x22c   : > { %v1291_v34 = vadd.f32 %v1289_v15, %v1281_v31  ;;  %v1290_v47 = vadd.f32 %v1288_v12, %v1280_v32  ;;  %v808_v55 = vstv %s4366_s8  ;;  %v1058_v48 = vstv %s4369_s30  ;;  %v1057_v7 = vpop.permute.xlu1 %1056  ;;  %v1055_v33 = vpop.permute.xlu0 %1054  ;;  %s4567_s8 = sld [smem:[#allocation15 + $0x3]]  ;;  %s4569_s30 = sld [smem:[#allocation15 + $0x4]] }
 0x22d   : > { %v806_v28 = vadd.f32 %v804_v1, %v796_v54  ;;  %v805_v4 = vadd.f32 %v803_v8, %v795_v5  ;;  %v1307_v58 = vmul.f32 %v2685_v13, %v1305_v24  ;;  %v1306_v51 = vmul.f32 %v2684_v10, %v1305_v24 }
 0x22e   : > { %v1303_v50 = vadd.f32 %v1301_v6, %v1291_v34  ;;  %v1302_v27 = vadd.f32 %v1300_v23, %v1290_v47  ;;  %v1052_v35 = vadd.f32 %v1050_v17, %v1046_v9  ;;  %v1051_v21 = vadd.f32 %v1049_v53, %v1045_v30 }
 0x22f   : > { %v810_v40 = vadd.f32 %v808_v55, %v806_v28  ;;  %v809_v57 = vadd.f32 %v808_v55, %v805_v4  ;;  %v1060_v42 = vmul.f32 %v1058_v48, %v1057_v7  ;;  %v1059_v18 = vmul.f32 %v1058_v48, %v1055_v33 }
 0x230   : > { %v1064_v14 = vstv %s4375_s15  ;;  %v1315_v60 = vstv %s4377_s17  ;;  %v1309_v61 = vadd.f32 %v1307_v58, %v1303_v50  ;;  %v1314_v2 = vpop.permute.xlu1 %1313  ;;  %v1308_v38 = vadd.f32 %v1306_v51, %v1302_v27  ;;  %v1312_v25 = vpop.permute.xlu0 %1311  ;;  %s4571_s15 = sld [smem:[#allocation15 + $0xc]]  ;;  %s4573_s17 = sld [smem:[#allocation15 + $0xd]] }
 0x231   : > { %812 = vst.msk [vmem:[#allocation3 + $0x8] sm:$0xff] %vm544_vm1, %v810_v40  ;;  %811 = vst.msk [vmem:[#allocation3] sm:$0xff] %vm544_vm1, %v809_v57  ;;  %v1062_v36 = vadd.f32 %v1060_v42, %v1052_v35  ;;  %v1061_v3 = vadd.f32 %v1059_v18, %v1051_v21  ;;  %v1317_v16 = vmul.f32 %v1315_v60, %v1314_v2  ;;  %v1321_v41 = vstv %s4386_s9  ;;  %s4583_s9 = sld [smem:[#allocation15 + $0x5]] }
 0x232   : > { %v1316_v17 = vmul.f32 %v1315_v60, %v1312_v25  ;;  %v1364_v4 = vstv %s4397_s10  ;;  %v1368_v13 = vstv %s4399_s29  ;;  %v1380_v58 = vstv %s2430_s22  ;;  %s2461_s10 = sld [smem:[#allocation15 + $0xe]]  ;;  %s2450_s22 = sld [smem:[#allocation15 + $0x7]] }
 0x233   : > { %v1066_v0 = vadd.f32 %v1064_v14, %v1062_v36  ;;  %v1065_v59 = vadd.f32 %v1064_v14, %v1061_v3  ;;  %v1319_v37 = vadd.f32 %v1317_v16, %v1309_v61  ;;  %v1396_v51 = vstv %s2432_s23  ;;  %s2449_s29 = sld [smem:[#allocation15 + $0x6]]  ;;  %s4591_s23 = sld [smem:[#allocation15 + $0xf]] }
 0x234   : > { %v1318_v56 = vadd.f32 %v1316_v17, %v1308_v38  ;;  %v1384_v27 = vstv %s4401_s28  ;;  %v1400_v33 = vstv %s4403_s13  ;;  %v1408_v17 = vstv %s4408_s19  ;;  %s4593_s28 = sld [smem:[#allocation15 + $0x10]] }
 0x235   : > { %1069 = vst.msk [vmem:[#allocation3 + $0x18] sm:$0xff] %vm544_vm1, %v1066_v0  ;;  %1068 = vst.msk [vmem:[#allocation3 + $0x10] sm:$0xff] %vm544_vm1, %v1065_v59  ;;  %v1323_v29 = vadd.f32 %v1321_v41, %v1319_v37  ;;  %v1436_v37 = vstv %s4417_s18  ;;  %s4595_s13 = sld [smem:[#allocation15 + $0x8]]  ;;  %s4614_s18 = sld [smem:[#allocation15 + $0x13]] }
 0x236   : > { %v1322_v19 = vadd.f32 %v1321_v41, %v1318_v56  ;;  %v1414_v41 = vstv %s4411_s11  ;;  %v1422_v56 = vstv %s4413_s20  ;;  %s4598_s19 = sld [smem:[#allocation16]]  ;;  %s4600_s11 = sld [smem:[#allocation15 + $0x11]] }
 0x237   : > { %1326 = vst.msk [vmem:[#allocation3 + $0x28] sm:$0xff] %vm544_vm1, %v1323_v29  ;;  %v1442_v29 = vstv %s4419_s27  ;;  %s4606_s20 = sld [smem:[#allocation16 + $0x1]]  ;;  %s4616_s27 = sld [smem:[#allocation15 + $0x14]] }
 0x238   : > { %1325 = vst.msk [vmem:[#allocation3 + $0x20] sm:$0xff] %vm544_vm1, %v1322_v19  ;;  %v1328_v22 = vld [vmem:[#allocation3 + $0x8] sm:$0xff]  ;;  %v1327_v20 = vld [vmem:[#allocation3] sm:$0xff]  ;;  %v1464_v19 = vstv %s4423_s2  ;;  %s4627_s2 = sld [smem:[#allocation15 + $0x16]] }
 0x23c   : > { %v1330_v52 = vld [vmem:[#allocation3 + $0x18] sm:$0xff]  ;;  %v1329_v39 = vld [vmem:[#allocation3 + $0x10] sm:$0xff] }
 0x23d   : > { %v1332_v63 = vadd.f32 %v1330_v52, %v1328_v22  ;;  %v1331_v26 = vadd.f32 %v1329_v39, %v1327_v20 }
 0x23e   : > { %v1334_v46 = vld [vmem:[#allocation3 + $0x28] sm:$0xff] }
 0x23f   : > { %v1333_v45 = vld [vmem:[#allocation3 + $0x20] sm:$0xff]  ;;  %v1336_v49 = vadd.f32 %v1334_v46, %v1332_v63  ;;  %v1478_v63 = vstv %s4429_s5  ;;  %s4661_s5 = sld [smem:[#allocation15 + $0x18]] }
 0x240   : > { %v1335_v11 = vadd.f32 %v1333_v45, %v1331_v26 }
 0x241   : > { %v1338_v62 = vmul.f32 0.33333334, %v1336_v49  ;;  %v1484_v49 = vstv %s4431_s6  ;;  %s4669_s6 = sld [smem:[#allocation15 + $0x1a]] }
 0x242   : > { %v1337_v15 = vmul.f32 0.33333334, %v1335_v11 }
 0x243   : > { %v1340_v12 = vsub.f32 %v1328_v22, %v1338_v62  ;;  %v1344_v31 = vsub.f32 %v1330_v52, %v1338_v62  ;;  %v1350_v32 = vsub.f32 %v1334_v46, %v1338_v62  ;;  %v1470_v52 = vstv %s4425_s4  ;;  %s4642_s4 = sld [smem:[#allocation15 + $0x17]] }
 0x244   : > { %v1339_v10 = vsub.f32 %v1327_v20, %v1337_v15  ;;  %v1343_v53 = vsub.f32 %v1329_v39, %v1337_v15  ;;  %v1349_v24 = vsub.f32 %v1333_v45, %v1337_v15  ;;  %v1428_v39 = vstv %s4415_s21  ;;  %s4612_s21 = sld [smem:[#allocation15 + $0x12]] }
 0x245   : > { %v1342_v9 = vmul.f32 %v1340_v12, %v1340_v12  ;;  %v1346_v30 = vmul.f32 %v1344_v31, %v1344_v31  ;;  %v1352_v44 = vmul.f32 %v1350_v32, %v1350_v32  ;;  %v1450_v22 = vstv %s4421_s26  ;;  %s4625_s26 = sld [smem:[#allocation15 + $0x15]] }
 0x246   : > { %v1341_v6 = vmul.f32 %v1339_v10, %v1339_v10  ;;  %v1345_v23 = vmul.f32 %v1343_v53, %v1343_v53  ;;  %v1351_v1 = vmul.f32 %v1349_v24, %v1349_v24  ;;  %v1456_v20 = vstv %s4427_s24  ;;  %s4647_s24 = sld [smem:[#allocation15 + $0x19]] }
 0x247   : > { %v1348_v43 = vadd.f32 %v1346_v30, %v1342_v9 }
 0x248   : > { %v1347_v54 = vadd.f32 %v1345_v23, %v1341_v6 }
 0x249   : > { %v1354_v5 = vadd.f32 %v1352_v44, %v1348_v43 }
 0x24a   : > { %v1353_v8 = vadd.f32 %v1351_v1, %v1347_v54 }
 0x24b   : > { %v1356_v34 = vmul.f32 0.33333334, %v1354_v5 }
 0x24c   : > { %v1355_v47 = vmul.f32 0.33333334, %v1353_v8 }
 0x24d   : > { %v1358_v55 = vadd.f32 1e-05, %v1356_v34 }
 0x24e   : > { %v1357_v48 = vadd.f32 1e-05, %v1355_v47 }
 0x24f   : > { %2650 = vrsqrt.f32 %v1358_v55 }
 0x250   : > { %2652 = vrsqrt.f32 %v1357_v48 }
 0x259   : > { %v2651_v28 = vpop.eup %2650 }
 0x25a   : > { %v2653_v50 = vpop.eup %2652  ;;  %v1362_v35 = vmul.f32 %v2651_v28, %v1340_v12  ;;  %v1378_v7 = vmul.f32 %v2651_v28, %v1344_v31  ;;  %v1394_v21 = vmul.f32 %v2651_v28, %v1350_v32 }
 0x25b   : > { %v1361_v40 = vmul.f32 %v2653_v50, %v1339_v10  ;;  %v1377_v57 = vmul.f32 %v2653_v50, %v1343_v53  ;;  %v1393_v42 = vmul.f32 %v2653_v50, %v1349_v24 }
 0x25c   : > { %v1366_v18 = vmul.f32 %v1364_v4, %v1362_v35  ;;  %v1382_v14 = vmul.f32 %v1380_v58, %v1378_v7  ;;  %v1398_v60 = vmul.f32 %v1396_v51, %v1394_v21 }
 0x25d   : > { %v1365_v36 = vmul.f32 %v1364_v4, %v1361_v40  ;;  %v1381_v3 = vmul.f32 %v1380_v58, %v1377_v57  ;;  %v1397_v61 = vmul.f32 %v1396_v51, %v1393_v42 }
 0x25e   : > { %v1370_v2 = vadd.f32 %v1368_v13, %v1366_v18  ;;  %v1386_v38 = vadd.f32 %v1384_v27, %v1382_v14  ;;  %v1402_v25 = vadd.f32 %v1400_v33, %v1398_v60 }
 0x25f   : > { %v1369_v0 = vadd.f32 %v1368_v13, %v1365_v36  ;;  %v1385_v59 = vadd.f32 %v1384_v27, %v1381_v3  ;;  %v1401_v16 = vadd.f32 %v1400_v33, %v1397_v61 }
 0x260   : > { %1372 = vst.msk [vmem:[#allocation2 + $0x70] sm:$0xff] %vm544_vm1, %v1370_v2  ;;  %1388 = vst.msk [vmem:[#allocation2 + $0x90] sm:$0xff] %vm544_vm1, %v1386_v38 }
 0x261   : > { %1404 = vst.msk [vmem:[#allocation2 + $0xb0] sm:$0xff] %vm544_vm1, %v1402_v25  ;;  %1371 = vst.msk [vmem:[#allocation2 + $0x68] sm:$0xff] %vm544_vm1, %v1369_v0 }
 0x262   : > { %1387 = vst.msk [vmem:[#allocation2 + $0x88] sm:$0xff] %vm544_vm1, %v1385_v59  ;;  %1403 = vst.msk [vmem:[#allocation2 + $0xa8] sm:$0xff] %vm544_vm1, %v1401_v16 }
 0x267   : > { %v1406_v26 = vld [vmem:[#allocation2 + $0x72] sm:$0xff] }
 0x268   : > { %v1412_v46 = vld [vmem:[#allocation2 + $0x91] sm:$0xff]  ;;  %v1410_v11 = vmul.f32 %v1408_v17, %v1406_v26  ;;  %v1438_v15 = vmul.f32 %v1436_v37, %v1406_v26  ;;  %v1466_v53 = vmul.f32 %v1464_v19, %v1406_v26 }
 0x269   : > { %v1420_v45 = vld [vmem:[#allocation2 + $0xb0] sm:$0xff]  ;;  %v1416_v62 = vmul.f32 %v1414_v41, %v1412_v46  ;;  %v1444_v10 = vmul.f32 %v1442_v29, %v1412_v46  ;;  %v1472_v24 = vmul.f32 %v1470_v52, %v1412_v46  ;;  %v1419_v9 = vld [vmem:[#allocation2 + $0xa8] sm:$0xff]  ;;  %v1496_v46 = vstv %s1495_s0  ;;  %s2937_s0 = smov 126  }
 0x26a   : > { %v1405_v12 = vld [vmem:[#allocation2 + $0x6a] sm:$0xff]  ;;  %v1424_v32 = vmul.f32 %v1422_v56, %v1420_v45  ;;  %v1452_v6 = vmul.f32 %v1450_v22, %v1420_v45  ;;  %v1480_v1 = vmul.f32 %v1478_v63, %v1420_v45  ;;  %v1423_v47 = vmul.f32 %v1422_v56, %v1419_v9 }
 0x26b   : > { %v1411_v31 = vld [vmem:[#allocation2 + $0x89] sm:$0xff]  ;;  %v1418_v30 = vadd.f32 %v1416_v62, %v1410_v11  ;;  %v1409_v23 = vmul.f32 %v1408_v17, %v1405_v12  ;;  %v1446_v44 = vadd.f32 %v1444_v10, %v1438_v15  ;;  %v1474_v54 = vadd.f32 %v1472_v24, %v1466_v53 }
 0x26c   : > { %v1415_v43 = vmul.f32 %v1414_v41, %v1411_v31  ;;  %v1437_v5 = vmul.f32 %v1436_v37, %v1405_v12  ;;  %v1443_v55 = vmul.f32 %v1442_v29, %v1411_v31  ;;  %v1465_v4 = vmul.f32 %v1464_v19, %v1405_v12 }
 0x26d   : > { %v1426_v8 = vadd.f32 %v1424_v32, %v1418_v30  ;;  %v1454_v48 = vadd.f32 %v1452_v6, %v1446_v44  ;;  %v1482_v28 = vadd.f32 %v1480_v1, %v1474_v54  ;;  %v1471_v13 = vmul.f32 %v1470_v52, %v1411_v31 }
 0x26e   : > { %v1417_v34 = vadd.f32 %v1415_v43, %v1409_v23  ;;  %v1445_v50 = vadd.f32 %v1443_v55, %v1437_v5  ;;  %v1451_v27 = vmul.f32 %v1450_v22, %v1419_v9  ;;  %v1479_v33 = vmul.f32 %v1478_v63, %v1419_v9 }
 0x26f   : > { %v1430_v58 = vadd.f32 %v1428_v39, %v1426_v8  ;;  %v1458_v35 = vadd.f32 %v1456_v20, %v1454_v48  ;;  %v1486_v7 = vadd.f32 %v1484_v49, %v1482_v28  ;;  %v1473_v21 = vadd.f32 %v1471_v13, %v1465_v4 }
 0x270   : > { %v1425_v51 = vadd.f32 %v1423_v47, %v1417_v34  ;;  %v1453_v57 = vadd.f32 %v1451_v27, %v1445_v50  ;;  %v1500_v11 = vstv %s2444_s3  ;;  %v1510_v62 = vstv %s2445_s1  ;;  %s1915_s3 = sld [smem:[#allocation18]]  ;;  %s2484_s1 = sld [smem:[#allocation18 + $0x1]] }
 0x271   : > { %1432 = vst.msk [vmem:[#allocation2 + $0x10] sm:$0xff] %vm544_vm1, %v1430_v58  ;;  %1460 = vst.msk [vmem:[#allocation2 + $0x30] sm:$0xff] %vm544_vm1, %v1458_v35  ;;  %v1481_v42 = vadd.f32 %v1479_v33, %v1473_v21  ;;  %v1636_v31 = vstv %s2456_s12  ;;  %v1640_v10 = vstv %s4565_s16  ;;  %v1650_v23 = vstv %s2458_s14  ;;  %s2485_s12 = sld [smem:[#allocation18 + $0x2]]  ;;  %s4759_s16 = sld [smem:[#allocation18 + $0x3]] }
 0x272   : > { %v1429_v40 = vadd.f32 %v1428_v39, %v1425_v51  ;;  %1488 = vst.msk [vmem:[#allocation2 + $0x50] sm:$0xff] %vm544_vm1, %v1486_v7  ;;  %v1457_v18 = vadd.f32 %v1456_v20, %v1453_v57  ;;  %v1522_v54 = vstv %s4567_s8  ;;  %v1528_v1 = vstv %s4569_s30  ;;  %s4761_s14 = sld [smem:[#allocation18 + $0x4]]  ;;  %s4763_s8 = sld [smem:[#allocation19]] }
 0x273   : > { %v1485_v14 = vadd.f32 %v1484_v49, %v1481_v42  ;;  %v1662_v7 = vstv %s4571_s15  ;;  %v1668_v42 = vstv %s4573_s17  ;;  %s4767_s30 = sld [smem:[#allocation18 + $0x5]]  ;;  %s4775_s15 = sld [smem:[#allocation18 + $0x7]] }
 0x274   : > { %1431 = vst.msk [vmem:[#allocation2 + $0x8] sm:$0xff] %vm544_vm1, %v1429_v40  ;;  %1459 = vst.msk [vmem:[#allocation2 + $0x28] sm:$0xff] %vm544_vm1, %v1457_v18  ;;  %s4777_s17 = sld [smem:[#allocation19 + $0x1]] }
 0x275   : > { %1487 = vst.msk [vmem:[#allocation2 + $0x48] sm:$0xff] %vm544_vm1, %v1485_v14 }
 0x278   : > { %v4481_v2 = vld [vmem:[#allocation2 + $0x10] sm:$0xff] }
 0x279   : > { %v4489_v25 = vld [vmem:[#allocation2 + $0x30] sm:$0xff]  ;;  %v1530_v21 = vmul.f32 %v1528_v1, %v4481_v2 }
 0x27a   : > { %v4505_v59 = vld [vmem:[#allocation2 + $0x11] sm:$0xff] }
 0x27b   : > { %v4457_v60 = vld [vmem:[#allocation2 + $0xf] sm:$0xff]  ;;  %v4459_v36 = vld [vmem:[#allocation2 + $0x7] sm:$0xff] }
 0x27c   : > { %1493 = vrot.lane.b32.xlu1 %v4457_v60, %s5249_s7  ;;  %1491 = vrot.lane.b32.xlu0 %v4459_v36, %s5249_s7  ;;  %v4465_v3 = vld [vmem:[#allocation2 + $0x2f] sm:$0xff]  ;;  %v4467_v61 = vld [vmem:[#allocation2 + $0x27] sm:$0xff]  ;;  %v1502_v32 = vmul.f32 %v1500_v11, %v4457_v60  ;;  %v1501_v9 = vmul.f32 %v1500_v11, %v4459_v36 }
 0x27d   : > { %v4483_v38 = vld [vmem:[#allocation2 + $0x8] sm:$0xff]  ;;  %v4513_v17 = vld [vmem:[#allocation2 + $0x31] sm:$0xff]  ;;  %v1642_v34 = vmul.f32 %v1640_v10, %v4465_v3  ;;  %v1641_v47 = vmul.f32 %v1640_v10, %v4467_v61  ;;  %v1550_v10 = vstv %s2449_s29  ;;  %s5251_s29 = sld [smem:[#allocation30_spill]] }
 0x27e   : > { %v4491_v0 = vld [vmem:[#allocation2 + $0x28] sm:$0xff]  ;;  %v4541_v29 = vld [vmem:[#allocation2 + $0x50] sm:$0xff]  ;;  %v1529_v33 = vmul.f32 %v1528_v1, %v4483_v38 }
 0x27f   : > { %v4507_v16 = vld [vmem:[#allocation2 + $0x9] sm:$0xff]  ;;  %v4553_v52 = vld [vmem:[#allocation2 + $0x51] sm:$0xff] }
 0x280   : > { %1633 = vrot.lane.b32.xlu1 %v4465_v3, %s5249_s7  ;;  %1631 = vrot.lane.b32.xlu0 %v4467_v61, %s5249_s7  ;;  %v4515_v41 = vld [vmem:[#allocation2 + $0x29] sm:$0xff] }
 0x281   : > { %v4529_v37 = vld [vmem:[#allocation2 + $0x4f] sm:$0xff]  ;;  %v4531_v56 = vld [vmem:[#allocation2 + $0x47] sm:$0xff] }
 0x282   : > { %v4543_v19 = vld [vmem:[#allocation2 + $0x48] sm:$0xff] }
 0x283   : > { %v4555_v39 = vld [vmem:[#allocation2 + $0x49] sm:$0xff] }
 0x284   : > { %1507 = vrot.lane.b32.xlu1 %v4457_v60, %s5250_s25  ;;  %1505 = vrot.lane.b32.xlu0 %v4459_v36, %s5250_s25 }
 0x288   : > { %1647 = vrot.lane.b32.xlu1 %v4465_v3, %s5250_s25  ;;  %1645 = vrot.lane.b32.xlu0 %v4467_v61, %s5250_s25 }
 0x28c   : > { %1519 = vrot.lane.b32.xlu1 %v4481_v2, %s5249_s7  ;;  %1517 = vrot.lane.b32.xlu0 %v4483_v38, %s5249_s7 }
 0x290   : > { %1659 = vrot.lane.b32.xlu1 %v4489_v25, %s5249_s7  ;;  %1657 = vrot.lane.b32.xlu0 %v4491_v0, %s5249_s7 }
 0x294   : > { %1535 = vrot.lane.b32.xlu1 %v4481_v2, %s5250_s25  ;;  %1533 = vrot.lane.b32.xlu0 %v4483_v38, %s5250_s25  ;;  %v1669_v2 = vmul.f32 %v1668_v42, %v4491_v0 }
 0x298   : > { %1675 = vrot.lane.b32.xlu1 %v4489_v25, %s5250_s25  ;;  %1673 = vrot.lane.b32.xlu0 %v4491_v0, %s5250_s25  ;;  %v1556_v0 = vstv %s2450_s22  ;;  %s504_s22 = sand.u32 1, %s5251_s29  }
 0x299   : > { %v1558_v1 = vmul.f32 %v1556_v0, %v4505_v59 }
 0x29c   : > { %1547 = vrot.lane.b32.xlu1 %v4505_v59, %s5249_s7  ;;  %1545 = vrot.lane.b32.xlu0 %v4507_v16, %s5249_s7 }
 0x2a0   : > { %1687 = vrot.lane.b32.xlu1 %v4513_v17, %s5249_s7  ;;  %1685 = vrot.lane.b32.xlu0 %v4515_v41, %s5249_s7 }
 0x2a4   : > { %1563 = vrot.lane.b32.xlu1 %v4505_v59, %s5250_s25  ;;  %1561 = vrot.lane.b32.xlu0 %v4507_v16, %s5250_s25 }
 0x2a8   : > { %1703 = vrot.lane.b32.xlu1 %v4513_v17, %s5250_s25  ;;  %1701 = vrot.lane.b32.xlu0 %v4515_v41, %s5250_s25 }
 0x2ac   : > { %1773 = vrot.lane.b32.xlu1 %v4529_v37, %s5249_s7  ;;  %1771 = vrot.lane.b32.xlu0 %v4531_v56, %s5249_s7 }
 0x2b0   : > { %1787 = vrot.lane.b32.xlu1 %v4529_v37, %s5250_s25  ;;  %1785 = vrot.lane.b32.xlu0 %v4531_v56, %s5250_s25 }
 0x2b4   : > { %1799 = vrot.lane.b32.xlu1 %v4541_v29, %s5249_s7  ;;  %1797 = vrot.lane.b32.xlu0 %v4543_v19, %s5249_s7 }
 0x2b8   : > { %1815 = vrot.lane.b32.xlu1 %v4541_v29, %s5250_s25  ;;  %1813 = vrot.lane.b32.xlu0 %v4543_v19, %s5250_s25 }
 0x2bc   : > { %1827 = vrot.lane.b32.xlu1 %v4553_v52, %s5249_s7  ;;  %1825 = vrot.lane.b32.xlu0 %v4555_v39, %s5249_s7  ;;  %s4675_s7 = sld [smem:[#allocation16 + $0x2]] }
 0x2c0   : > { %1843 = vrot.lane.b32.xlu1 %v4553_v52, %s5250_s25  ;;  %1841 = vrot.lane.b32.xlu0 %v4555_v39, %s5250_s25 }
 0x2ee   : > { %v1494_v22 = vpop.permute.xlu1 %1493  ;;  %v1492_v20 = vpop.permute.xlu0 %1491 }
 0x2ef   : > { %v1498_v15 = vmul.f32 %v1496_v46, %v1494_v22  ;;  %v1497_v12 = vmul.f32 %v1496_v46, %v1492_v20 }
 0x2f1   : > { %v1504_v5 = vadd.f32 %v1502_v32, %v1498_v15  ;;  %v1503_v8 = vadd.f32 %v1501_v9, %v1497_v12 }
 0x2f2   : > { %v1634_v63 = vpop.permute.xlu1 %1633  ;;  %v1632_v26 = vpop.permute.xlu0 %1631 }
 0x2f3   : > { %v1638_v43 = vmul.f32 %v1636_v31, %v1634_v63  ;;  %v1637_v44 = vmul.f32 %v1636_v31, %v1632_v26  ;;  %v1670_v63 = vmul.f32 %v1668_v42, %v4489_v25  ;;  %v1678_v25 = vstv %s2461_s10  ;;  %s4793_s10 = sld [smem:[#allocation19 + $0x2]] }
 0x2f5   : > { %v1644_v27 = vadd.f32 %v1642_v34, %v1638_v43  ;;  %v1643_v35 = vadd.f32 %v1641_v47, %v1637_v44  ;;  %v1696_v47 = vstv %s4593_s28  ;;  %s2501_s28 = smul.u32 48, %s504_s22 }
 0x2f6   : > { %v1508_v45 = vpop.permute.xlu1 %1507  ;;  %v1506_v49 = vpop.permute.xlu0 %1505  ;;  %v1698_v59 = vmul.f32 %v1696_v47, %v4513_v17 }
 0x2f7   : > { %v1512_v30 = vmul.f32 %v1510_v62, %v1508_v45  ;;  %v1511_v6 = vmul.f32 %v1510_v62, %v1506_v49  ;;  %v1538_v62 = vstv %s4583_s9  ;;  %s4780_s9 = sld [smem:[#allocation18 + $0x8]] }
 0x2f9   : > { %v1514_v13 = vadd.f32 %v1512_v30, %v1504_v5  ;;  %v1513_v58 = vadd.f32 %v1511_v6, %v1503_v8  ;;  %v1557_v5 = vmul.f32 %v1556_v0, %v4507_v16  ;;  %v1697_v16 = vmul.f32 %v1696_v47, %v4515_v41 }
 0x2fa   : > { %v1648_v53 = vpop.permute.xlu1 %1647  ;;  %v1646_v24 = vpop.permute.xlu0 %1645  ;;  %v1780_v0 = vstv %s4614_s18 }
 0x2fb   : > { %v1652_v55 = vmul.f32 %v1650_v23, %v1648_v53  ;;  %v1651_v48 = vmul.f32 %v1650_v23, %v1646_v24 }
 0x2fd   : > { %v1654_v18 = vadd.f32 %v1652_v55, %v1644_v27  ;;  %v1653_v14 = vadd.f32 %v1651_v48, %v1643_v35  ;;  %v1566_v27 = vstv %s4595_s13  ;;  %s506_s13 = scalar_lea.vmem [#allocation21], %s2501_s28 }
 0x2fe   : > { %v1520_v28 = vpop.permute.xlu1 %1519  ;;  %v1518_v4 = vpop.permute.xlu0 %1517 }
 0x2ff   : > { %v1524_v51 = vmul.f32 %v1522_v54, %v1520_v28  ;;  %v1523_v50 = vmul.f32 %v1522_v54, %v1518_v4  ;;  %v1690_v54 = vstv %s4591_s23  ;;  %s5252_s23 = sld [smem:[#allocation33_spill]] }
 0x301   : > { %v1526_v40 = vadd.f32 %v1524_v51, %v1514_v13  ;;  %v1525_v57 = vadd.f32 %v1523_v50, %v1513_v58 }
 0x302   : > { %v1660_v60 = vpop.permute.xlu1 %1659  ;;  %v1658_v36 = vpop.permute.xlu0 %1657 }
 0x303   : > { %v1664_v3 = vmul.f32 %v1662_v7, %v1660_v60  ;;  %v1663_v61 = vmul.f32 %v1662_v7, %v1658_v36  ;;  %v1532_v22 = vadd.f32 %v1530_v21, %v1526_v40  ;;  %v1531_v20 = vadd.f32 %v1529_v33, %v1525_v57 }
 0x304   : > { %v1706_v60 = vstv %s4600_s11  ;;  %s5253_s11 = sld [smem:[#allocation36_spill]] }
 0x305   : > { %v1666_v26 = vadd.f32 %v1664_v3, %v1654_v18  ;;  %v1665_v38 = vadd.f32 %v1663_v61, %v1653_v14  ;;  %v1572_v14 = vstv %s4598_s19  ;;  %s2503_s19 = smul.u32 768, %s5252_s23 }
 0x306   : > { %v1536_v46 = vpop.permute.xlu1 %1535  ;;  %v1534_v45 = vpop.permute.xlu0 %1533 }
 0x307   : > { %v1672_v49 = vadd.f32 %v1670_v63, %v1666_v26  ;;  %v1671_v11 = vadd.f32 %v1669_v2, %v1665_v38  ;;  %v1540_v31 = vmul.f32 %v1538_v62, %v1536_v46  ;;  %v1539_v32 = vmul.f32 %v1538_v62, %v1534_v45 }
 0x308   : > { %v1712_v2 = vstv %s4606_s20  ;;  %s2159_s20 = sshll.u32 %s506_s13, 4  ;;  %s4852_s20 = int_to_ptr.vmem [resolvable:$true] %s2159_s20 }
 0x309   : > { %v1542_v6 = vadd.f32 %v1540_v31, %v1532_v22  ;;  %v1541_v23 = vadd.f32 %v1539_v32, %v1531_v20  ;;  %v1776_v32 = vstv %s4612_s21 }
 0x30a   : > { %v1676_v15 = vpop.permute.xlu1 %1675  ;;  %v1674_v12 = vpop.permute.xlu0 %1673  ;;  %p5255_p11 = scmp.ne.s32.totalorder %s5253_s11, 0 }
 0x30b   : > { %v1680_v53 = vmul.f32 %v1678_v25, %v1676_v15  ;;  %v1679_v24 = vmul.f32 %v1678_v25, %v1674_v12 }
 0x30d   : > { %v1682_v55 = vadd.f32 %v1680_v53, %v1672_v49  ;;  %v1681_v48 = vadd.f32 %v1679_v24, %v1671_v11 }
 0x30e   : > { %v1548_v9 = vpop.permute.xlu1 %1547  ;;  %v1546_v30 = vpop.permute.xlu0 %1545 }
 0x30f   : > { %v1552_v43 = vmul.f32 %v1550_v10, %v1548_v9  ;;  %v1551_v44 = vmul.f32 %v1550_v10, %v1546_v30  ;;  %v1790_v9 = vstv %s4616_s27  ;;  %s5254_s27 = sld [smem:[#allocation120_spill]] }
 0x311   : > { %v1554_v8 = vadd.f32 %v1552_v43, %v1542_v6  ;;  %v1553_v34 = vadd.f32 %v1551_v44, %v1541_v23 }
 0x312   : > { %v1688_v28 = vpop.permute.xlu1 %1687  ;;  %v1686_v4 = vpop.permute.xlu0 %1685 }
 0x313   : > { %v1692_v13 = vmul.f32 %v1690_v54, %v1688_v28  ;;  %v1691_v58 = vmul.f32 %v1690_v54, %v1686_v4  ;;  %v1560_v51 = vadd.f32 %v1558_v1, %v1554_v8  ;;  %v1559_v50 = vadd.f32 %v1557_v5, %v1553_v34 }
 0x314   : > { %v1782_v8 = vmul.f32 %v1780_v0, %v4529_v37  ;;  %v1781_v34 = vmul.f32 %v1780_v0, %v4531_v56  ;;  %v1802_v4 = vstv %s4625_s26 }
 0x315   : > { %v1694_v35 = vadd.f32 %v1692_v13, %v1682_v55  ;;  %v1693_v7 = vadd.f32 %v1691_v58, %v1681_v48  ;;  %s4850_s26 = scalar_lea.hbm %s5254_s27, %s2503_s19 }
 0x316   : > { %v1564_v21 = vpop.permute.xlu1 %1563  ;;  %v1562_v33 = vpop.permute.xlu0 %1561 }
 0x317   : > { %v1568_v40 = vmul.f32 %v1566_v27, %v1564_v21  ;;  %v1567_v57 = vmul.f32 %v1566_v27, %v1562_v33  ;;  %v1700_v42 = vadd.f32 %v1698_v59, %v1694_v35  ;;  %v1699_v18 = vadd.f32 %v1697_v16, %v1693_v7 }
 0x318   : > { %v1818_v16 = vstv %s4642_s4  ;;  %s2836_s4 = scalar_lea.vmem %s4852_s20, 768 }
 0x319   : > { %v1570_v36 = vadd.f32 %v1568_v40, %v1560_v51  ;;  %v1569_v3 = vadd.f32 %v1567_v57, %v1559_v50  ;;  %v1808_v51 = vstv %s4627_s2  ;;  %v1836_v40 = vstv %s4647_s24  ;;  %s4858_s2 = scalar_lea.sflag [#allocation5], %s504_s22  ;;  %p2837_p10 = scmp.ne.s32.totalorder %s4852_s20, %s2836_s4 }
 0x31a   : > { %v1704_v17 = vpop.permute.xlu1 %1703  ;;  %v1702_v61 = vpop.permute.xlu0 %1701  ;;  %v1810_v33 = vmul.f32 %v1808_v51, %v4541_v29  ;;  %s2938_s24 = smov [#allocation21]  }
 0x31b   : > { %v4618_v41 = vadd.f32 %v1572_v14, %v1570_v36  ;;  %v4620_v22 = vadd.f32 %v1572_v14, %v1569_v3  ;;  %v1708_v20 = vmul.f32 %v1706_v60, %v1704_v17  ;;  %v1707_v63 = vmul.f32 %v1706_v60, %v1702_v61  ;;  %p2838_p13 = pnand %p2837_p10, %p5255_p11 }
 0x31c   : > { %v1830_v17 = vstv %s4661_s5  ;;  %s2840_s5 = sshll.u32 %s2938_s24, 4  ;;  %s2841_s5 = int_to_ptr.vmem [resolvable:$false] %s2840_s5 }
 0x31d   : > { %v1576_v26 = vand.u32 2147483647, %v4618_v41  ;;  %v1575_v38 = vand.u32 2147483647, %v4620_v22  ;;  %v1710_v46 = vadd.f32 %v1708_v20, %v1700_v42  ;;  %v1709_v45 = vadd.f32 %v1707_v63, %v1699_v18  ;;  %p2839_p0 = pneg %p2838_p13  ;;  %p2843_p1 = scmp.lt.s32.totalorder %s4852_s20, %s2841_s5 }
 0x31e   : > { %v1774_v49 = vpop.permute.xlu1 %1773  ;;  %v1772_v11 = vpop.permute.xlu0 %1771  ;;  %v1809_v18 = vmul.f32 %v1808_v51, %v4543_v19  ;;  %v1838_v63 = vmul.f32 %v1836_v40, %v4553_v52 }
 0x31f   : > { %v4631_v62 = vmul.f32 0.70710677, %v1576_v26  ;;  %v4635_v15 = vmul.f32 0.70710677, %v1575_v38  ;;  %v4637_v12 = vadd.f32 %v1712_v2, %v1710_v46  ;;  %v4639_v31 = vadd.f32 %v1712_v2, %v1709_v45 }
 0x320   : > { %v1778_v44 = vmul.f32 %v1776_v32, %v1774_v49  ;;  %v1777_v54 = vmul.f32 %v1776_v32, %v1772_v11 }
 0x321   : > { %v1580_v25 = vmul.f32 0.3275911, %v4631_v62  ;;  %v1579_v10 = vmul.f32 0.3275911, %v4635_v15  ;;  %v1716_v53 = vand.u32 2147483647, %v4637_v12 }
 0x322   : > { %v1715_v24 = vand.u32 2147483647, %v4639_v31  ;;  %v1788_v30 = vpop.permute.xlu1 %1787  ;;  %v1786_v6 = vpop.permute.xlu0 %1785  ;;  %v1784_v50 = vadd.f32 %v1782_v8, %v1778_v44  ;;  %v1783_v37 = vadd.f32 %v1781_v34, %v1777_v54  ;;  %v1610_v0 = vsub.f32 0.0, %v4631_v62 }
 0x323   : > { %v1582_v23 = vadd.f32 1.0, %v1580_v25  ;;  %v1581_v43 = vadd.f32 1.0, %v1579_v10  ;;  %v4654_v1 = vmul.f32 0.70710677, %v1716_v53  ;;  %v1792_v47 = vmul.f32 %v1790_v9, %v1788_v30 }
 0x324   : > { %v4658_v5 = vmul.f32 0.70710677, %v1715_v24  ;;  %v1791_v55 = vmul.f32 %v1790_v9, %v1786_v6  ;;  %v1837_v25 = vmul.f32 %v1836_v40, %v4555_v39  ;;  %v1846_v9 = vstv %s4669_s6  ;;  %s2842_s6 = scalar_lea.vmem %s2841_s5, 1536 }
 0x325   : > { %2654 = vrcp.f32 %v1582_v23  ;;  %v1720_v48 = vmul.f32 0.3275911, %v4654_v1  ;;  %v1794_v56 = vadd.f32 %v1792_v47, %v1784_v50  ;;  %v1609_v6 = vsub.f32 0.0, %v4635_v15  ;;  %p2844_p2 = scmp.lt.s32.totalorder %s2842_s6, %s2836_s4 }
 0x326   : > { %2656 = vrcp.f32 %v1581_v43  ;;  %v1719_v28 = vmul.f32 0.3275911, %v4658_v5  ;;  %v1800_v13 = vpop.permute.xlu1 %1799  ;;  %v1798_v58 = vpop.permute.xlu0 %1797  ;;  %v1793_v35 = vadd.f32 %v1791_v55, %v1783_v37  ;;  %v1750_v8 = vsub.f32 0.0, %v4654_v1 }
 0x327   : > { %v1722_v27 = vadd.f32 1.0, %v1720_v48  ;;  %v1804_v7 = vmul.f32 %v1802_v4, %v1800_v13  ;;  %v1803_v21 = vmul.f32 %v1802_v4, %v1798_v58  ;;  %v1612_v13 = vmul.f32 %v1610_v0, %v4631_v62  ;;  %p2845_p12 = por %p2844_p2, %p2843_p1 }
 0x328   : > { %v1721_v59 = vadd.f32 1.0, %v1719_v28  ;;  %v1852_v58 = vstv %s4675_s7  ;;  %v1611_v37 = vmul.f32 %v1609_v6, %v4635_v15  ;;  %v1752_v62 = vmul.f32 %v1750_v8, %v4654_v1 }
 0x329   : > { %2658 = vrcp.f32 %v1722_v27  ;;  %v1806_v14 = vadd.f32 %v1804_v7, %v1794_v56  ;;  %v1805_v60 = vadd.f32 %v1803_v21, %v1793_v35  ;;  %v1749_v21 = vsub.f32 0.0, %v4658_v5  ;;  %p2846_p3 = pnand %p2845_p12, %p2839_p0 }
 0x32a   : > { %v1816_v57 = vpop.permute.xlu1 %1815  ;;  %v1814_v42 = vpop.permute.xlu0 %1813  ;;  %2660 = vrcp.f32 %v1721_v59 }
 0x32b   : > { %v1820_v36 = vmul.f32 %v1818_v16, %v1816_v57  ;;  %v1819_v3 = vmul.f32 %v1818_v16, %v1814_v42  ;;  %v1812_v61 = vadd.f32 %v1810_v33, %v1806_v14  ;;  %v1811_v20 = vadd.f32 %v1809_v18, %v1805_v60 }
 0x32c   : > { %v1615_v14 = vmul.f32 1.442695, %v1612_v13 }
 0x32d   : > { %v1822_v45 = vadd.f32 %v1820_v36, %v1812_v61  ;;  %v1821_v49 = vadd.f32 %v1819_v3, %v1811_v20  ;;  %v1751_v20 = vmul.f32 %v1749_v21, %v4658_v5 }
 0x32e   : > { %v1828_v29 = vpop.permute.xlu1 %1827  ;;  %v1826_v2 = vpop.permute.xlu0 %1825  ;;  %2662 = vpow2.f32 %v1615_v14 }
 0x32f   : > { %v2655_v46 = vpop.eup %2654  ;;  %v1832_v11 = vmul.f32 %v1830_v17, %v1828_v29  ;;  %v1831_v19 = vmul.f32 %v1830_v17, %v1826_v2  ;;  %v1755_v2 = vmul.f32 1.442695, %v1752_v62  ;;  %v1753_v6 = vmul.f32 1.442695, %v1751_v20 }
 0x330   : > { %v2657_v32 = vpop.eup %2656  ;;  %v1586_v10 = vmul.f32 %v2655_v46, %v1582_v23 }
 0x331   : > { %v1585_v30 = vmul.f32 %v2657_v32, %v1581_v43  ;;  %v1834_v44 = vadd.f32 %v1832_v11, %v1822_v45  ;;  %v1833_v52 = vadd.f32 %v1831_v19, %v1821_v49 }
 0x332   : > { %v1588_v54 = vsub.f32 2.0, %v1586_v10  ;;  %v1844_v34 = vpop.permute.xlu1 %1843  ;;  %v1842_v47 = vpop.permute.xlu0 %1841 }
 0x333   : > { %v1587_v55 = vsub.f32 2.0, %v1585_v30  ;;  %v1840_v48 = vadd.f32 %v1838_v63, %v1834_v44  ;;  %v1848_v28 = vmul.f32 %v1846_v9, %v1844_v34  ;;  %v1839_v4 = vadd.f32 %v1837_v25, %v1833_v52  ;;  %v2659_v39 = vpop.eup %2658 }
 0x334   : > { %v4683_v23 = vmul.f32 %v2655_v46, %v1588_v54  ;;  %v1847_v43 = vmul.f32 %v1846_v9, %v1842_v47  ;;  %v2661_v51 = vpop.eup %2660  ;;  %v1726_v16 = vmul.f32 %v2659_v39, %v1722_v27  ;;  %v1613_v27 = vmul.f32 1.442695, %v1611_v37 }
 0x335   : > { %v4687_v50 = vmul.f32 %v2657_v32, %v1587_v55  ;;  %v1850_v56 = vadd.f32 %v1848_v28, %v1840_v48  ;;  %v1725_v7 = vmul.f32 %v2661_v51, %v1721_v59 }
 0x336   : > { %v1592_v35 = vmul.f32 1.0614054, %v4683_v23  ;;  %v1849_v33 = vadd.f32 %v1847_v43, %v1839_v4  ;;  %v1728_v57 = vsub.f32 2.0, %v1726_v16  ;;  %2664 = vpow2.f32 %v1613_v27 }
 0x337   : > { %v1591_v40 = vmul.f32 1.0614054, %v4687_v50  ;;  %v4694_v42 = vadd.f32 %v1852_v58, %v1850_v56  ;;  %v1727_v60 = vsub.f32 2.0, %v1725_v7  ;;  %2666 = vpow2.f32 %v1755_v2 }
 0x338   : > { %v2453_v18 = vadd.f32 -1.4531521, %v1592_v35  ;;  %v4696_v36 = vadd.f32 %v1852_v58, %v1849_v33  ;;  %v1730_v3 = vmul.f32 %v2659_v39, %v1728_v57  ;;  %v2663_v16 = vpop.eup %2662 }
 0x339   : > { %v2452_v15 = vadd.f32 -1.4531521, %v1591_v40  ;;  %v1856_v59 = vand.u32 2147483647, %v4694_v42  ;;  %v1729_v61 = vmul.f32 %v2661_v51, %v1727_v60 }
 0x33a   : > { %v1596_v17 = vmul.f32 %v2453_v18, %v4683_v23  ;;  %v1855_v63 = vand.u32 2147483647, %v4696_v36  ;;  %v1732_v29 = vmul.f32 1.0614054, %v1730_v3 }
 0x33b   : > { %v1595_v1 = vmul.f32 %v2452_v15, %v4687_v50  ;;  %v4705_v46 = vmul.f32 0.70710677, %v1856_v59  ;;  %v1731_v49 = vmul.f32 1.0614054, %v1729_v61 }
 0x33c   : > { %v1598_v45 = vadd.f32 1.4214138, %v1596_v17  ;;  %v4709_v11 = vmul.f32 0.70710677, %v1855_v63  ;;  %v2467_v32 = vadd.f32 -1.4531521, %v1732_v29 }
 0x33d   : > { %v1597_v19 = vadd.f32 1.4214138, %v1595_v1  ;;  %v1860_v5 = vmul.f32 0.3275911, %v4705_v46  ;;  %v2466_v10 = vadd.f32 -1.4531521, %v1731_v49 }
 0x33e   : > { %v1600_v25 = vmul.f32 %v1598_v45, %v4683_v23  ;;  %v1859_v0 = vmul.f32 0.3275911, %v4709_v11  ;;  %v1736_v30 = vmul.f32 %v2467_v32, %v1730_v3  ;;  %v1890_v45 = vsub.f32 0.0, %v4705_v46 }
 0x33f   : > { %v1599_v9 = vmul.f32 %v1597_v19, %v4687_v50  ;;  %v1862_v44 = vadd.f32 1.0, %v1860_v5  ;;  %v1735_v54 = vmul.f32 %v2466_v10, %v1729_v61 }
 0x340   : > { %v2455_v52 = vadd.f32 -0.28449672, %v1600_v25  ;;  %v1861_v8 = vadd.f32 1.0, %v1859_v0  ;;  %v1738_v47 = vadd.f32 1.4214138, %v1736_v30  ;;  %v2665_v7 = vpop.eup %2664 }
 0x341   : > { %v2454_v34 = vadd.f32 -0.28449672, %v1599_v9  ;;  %2668 = vrcp.f32 %v1862_v44  ;;  %v1737_v48 = vadd.f32 1.4214138, %v1735_v54  ;;  %v2667_v62 = vpop.eup %2666 }
 0x342   : > { %v1604_v55 = vmul.f32 %v2455_v52, %v4683_v23  ;;  %2670 = vrcp.f32 %v1861_v8  ;;  %v1740_v4 = vmul.f32 %v1738_v47, %v1730_v3 }
 0x343   : > { %v1603_v28 = vmul.f32 %v2454_v34, %v4687_v50  ;;  %2672 = vpow2.f32 %v1753_v6  ;;  %v1739_v13 = vmul.f32 %v1737_v48, %v1729_v61  ;;  %v1892_v6 = vmul.f32 %v1890_v45, %v4705_v46 }
 0x344   : > { %v1606_v39 = vadd.f32 0.2548296, %v1604_v55  ;;  %v2469_v43 = vadd.f32 -0.28449672, %v1740_v4 }
 0x345   : > { %v1605_v58 = vadd.f32 0.2548296, %v1603_v28  ;;  %v2468_v37 = vadd.f32 -0.28449672, %v1739_v13  ;;  %v1895_v55 = vmul.f32 1.442695, %v1892_v6 }
 0x346   : > { %v1608_v51 = vmul.f32 %v1606_v39, %v4683_v23  ;;  %v1744_v35 = vmul.f32 %v2469_v43, %v1730_v3  ;;  %v1940_v6 = vld [vmem:[#allocation3 + $0x8] sm:$0xff] }
 0x347   : > { %v1607_v56 = vmul.f32 %v1605_v58, %v4687_v50  ;;  %v1743_v33 = vmul.f32 %v2468_v37, %v1729_v61  ;;  %2674 = vpow2.f32 %v1895_v55 }
 0x348   : > { %v1618_v21 = vmul.f32 %v2663_v16, %v1608_v51  ;;  %v1746_v57 = vadd.f32 0.2548296, %v1744_v35 }
 0x349   : > { %v1617_v40 = vmul.f32 %v2665_v7, %v1607_v56  ;;  %v1745_v14 = vadd.f32 0.2548296, %v1743_v33 }
 0x34a   : > { %v1620_v18 = vsub.f32 1.0, %v1618_v21  ;;  %v1748_v27 = vmul.f32 %v1746_v57, %v1730_v3  ;;  %v1889_v3 = vsub.f32 0.0, %v4709_v11 }
 0x34b   : > { %v2669_v60 = vpop.eup %2668  ;;  %v1619_v15 = vsub.f32 1.0, %v1617_v40  ;;  %v1747_v20 = vmul.f32 %v1745_v14, %v1729_v61 }
 0x34c   : > { %v2671_v17 = vpop.eup %2670  ;;  %v1622_v23 = vmul.f32 %v1620_v18, %v1576_v26  ;;  %v1866_v1 = vmul.f32 %v2669_v60, %v1862_v44  ;;  %v1758_v2 = vmul.f32 %v2667_v62, %v1748_v27 }
 0x34d   : > { %v2673_v29 = vpop.eup %2672  ;;  %v1621_v50 = vmul.f32 %v1619_v15, %v1575_v38  ;;  %v1865_v49 = vmul.f32 %v2671_v17, %v1861_v8 }
 0x34e   : > { %v1624_v19 = vadd.f32 %v1622_v23, %v4618_v41  ;;  %v1757_v32 = vmul.f32 %v2673_v29, %v1747_v20  ;;  %v1868_v5 = vsub.f32 2.0, %v1866_v1  ;;  %v1760_v10 = vsub.f32 1.0, %v1758_v2 }
 0x34f   : > { %v1623_v25 = vadd.f32 %v1621_v50, %v4620_v22  ;;  %v1867_v26 = vsub.f32 2.0, %v1865_v49  ;;  %v1891_v22 = vmul.f32 %v1889_v3, %v4709_v11  ;;  %v1934_v2 = vstv %s2485_s12 }
 0x350   : > { %v1626_v61 = vmul.f32 0.5, %v1624_v19  ;;  %v1759_v0 = vsub.f32 1.0, %v1757_v32  ;;  %v1870_v9 = vmul.f32 %v2669_v60, %v1868_v5  ;;  %v1762_v38 = vmul.f32 %v1760_v10, %v1716_v53 }
 0x351   : > { %v1625_v30 = vmul.f32 0.5, %v1623_v25  ;;  %v1869_v44 = vmul.f32 %v2671_v17, %v1867_v26  ;;  %v1893_v4 = vmul.f32 1.442695, %v1891_v22  ;;  %v2675_v40 = vpop.eup %2674  ;;  %v1944_v22 = vstv %s4763_s8 }
 0x352   : > { %1628 = vst.msk [vmem:[#allocation2 + $0x70] sm:$0xff] %vm544_vm1, %v1626_v61  ;;  %v1761_v41 = vmul.f32 %v1759_v0, %v1715_v24  ;;  %v1872_v52 = vmul.f32 1.0614054, %v1870_v9  ;;  %v1764_v54 = vadd.f32 %v1762_v38, %v4637_v12 }
 0x353   : > { %1627 = vst.msk [vmem:[#allocation2 + $0x68] sm:$0xff] %vm544_vm1, %v1625_v30  ;;  %v1871_v8 = vmul.f32 1.0614054, %v1869_v44  ;;  %2676 = vpow2.f32 %v1893_v4 }
 0x354   : > { %v1763_v34 = vadd.f32 %v1761_v41, %v4639_v31  ;;  %v2481_v47 = vadd.f32 -1.4531521, %v1872_v52  ;;  %v1766_v53 = vmul.f32 0.5, %v1764_v54  ;;  %v1994_v41 = vstv %s4759_s16 }
 0x355   : > { %v2480_v46 = vadd.f32 -1.4531521, %v1871_v8  ;;  %v2004_v52 = vstv %s4761_s14  ;;  %v1939_v8 = vld [vmem:[#allocation3] sm:$0xff] }
 0x356   : > { %v1765_v48 = vmul.f32 0.5, %v1763_v34  ;;  %v1876_v28 = vmul.f32 %v2481_v47, %v1870_v9  ;;  %1768 = vst.msk [vmem:[#allocation2 + $0x90] sm:$0xff] %vm544_vm1, %v1766_v53  ;;  %v2012_v47 = vstv %s4767_s30 }
 0x357   : > { %v1875_v24 = vmul.f32 %v2480_v46, %v1869_v44 }
 0x358   : > { %1767 = vst.msk [vmem:[#allocation2 + $0x88] sm:$0xff] %vm544_vm1, %v1765_v48  ;;  %v1878_v11 = vadd.f32 1.4214138, %v1876_v28 }
 0x359   : > { %v1877_v39 = vadd.f32 1.4214138, %v1875_v24  ;;  %v1910_v13 = vld [vmem:[#allocation2 + $0x70] sm:$0xff] }
 0x35a   : > { %v1880_v12 = vmul.f32 %v1878_v11, %v1870_v9  ;;  %1913 = vrot.lane.b32.xlu1 %v1910_v13, %s2937_s0  ;;  %v1909_v31 = vld [vmem:[#allocation2 + $0x68] sm:$0xff] }
 0x35b   : > { %v1879_v58 = vmul.f32 %v1877_v39, %v1869_v44  ;;  %1911 = vrot.lane.b32.xlu0 %v1909_v31, %s2937_s0 }
 0x35c   : > { %v2483_v43 = vadd.f32 -0.28449672, %v1880_v12 }
 0x35d   : > { %v2482_v51 = vadd.f32 -0.28449672, %v1879_v58  ;;  %v1920_v16 = vld [vmem:[#allocation2 + $0x90] sm:$0xff]  ;;  %v2677_v62 = vpop.eup %2676 }
 0x35e   : > { %v1884_v37 = vmul.f32 %v2483_v43, %v1870_v9  ;;  %1923 = vrot.lane.b32.xlu1 %v1920_v16, %s5250_s25 }
 0x35f   : > { %v1883_v56 = vmul.f32 %v2482_v51, %v1869_v44  ;;  %v1919_v35 = vld [vmem:[#allocation2 + $0x88] sm:$0xff] }
 0x360   : > { %v1886_v7 = vadd.f32 0.2548296, %v1884_v37  ;;  %1921 = vrot.lane.b32.xlu0 %v1919_v35, %s5250_s25 }
 0x361   : > { %v1885_v21 = vadd.f32 0.2548296, %v1883_v56 }
 0x362   : > { %v1888_v33 = vmul.f32 %v1886_v7, %v1870_v9  ;;  %1991 = vrot.lane.b32.xlu1 %v1910_v13, %s2937_s0  ;;  %v2083_v7 = vstv %s4775_s15 }
 0x363   : > { %v1887_v57 = vmul.f32 %v1885_v21, %v1869_v44  ;;  %v2018_v21 = vld [vmem:[#allocation3 + $0x18] sm:$0xff] }
 0x364   : > { %v1898_v18 = vmul.f32 %v2675_v40, %v1888_v33  ;;  %1989 = vrot.lane.b32.xlu0 %v1909_v31, %s2937_s0  ;;  %v2017_v33 = vld [vmem:[#allocation3 + $0x10] sm:$0xff]  ;;  %v2022_v40 = vstv %s4777_s17 }
 0x365   : > { %v1897_v14 = vmul.f32 %v2677_v62, %v1887_v57 }
 0x366   : > { %v1900_v60 = vsub.f32 1.0, %v1898_v18  ;;  %2001 = vrot.lane.b32.xlu1 %v1920_v16, %s5250_s25  ;;  %v2091_v18 = vstv %s4780_s9 }
 0x367   : > { %v1899_v15 = vsub.f32 1.0, %v1897_v14 }
 0x368   : > { %v1902_v27 = vmul.f32 %v1900_v60, %v1856_v59  ;;  %1999 = vrot.lane.b32.xlu0 %v1919_v35, %s5250_s25 }
 0x369   : > { %v1901_v17 = vmul.f32 %v1899_v15, %v1855_v63  ;;  %v1926_v63 = vstv %s2484_s1 }
 0x36a   : > { %v1904_v23 = vadd.f32 %v1902_v27, %v4694_v42  ;;  %2070 = vrot.lane.b32.xlu1 %v1910_v13, %s2937_s0 }
 0x36b   : > { %v1903_v20 = vadd.f32 %v1901_v17, %v4696_v36  ;;  %v1916_v36 = vstv %s1915_s3 }
 0x36c   : > { %v1906_v1 = vmul.f32 0.5, %v1904_v23  ;;  %2068 = vrot.lane.b32.xlu0 %v1909_v31, %s2937_s0 }
 0x36d   : > { %v1905_v29 = vmul.f32 0.5, %v1903_v20 }
 0x36e   : > { %1908 = vst.msk [vmem:[#allocation2 + $0xb0] sm:$0xff] %vm544_vm1, %v1906_v1  ;;  %2080 = vrot.lane.b32.xlu1 %v1920_v16, %s5250_s25 }
 0x36f   : > { %1907 = vst.msk [vmem:[#allocation2 + $0xa8] sm:$0xff] %vm544_vm1, %v1905_v29 }
 0x370   : > { %2078 = vrot.lane.b32.xlu0 %v1919_v35, %s5250_s25  ;;  %s4773_s25 = sld [smem:[#allocation18 + $0x6]] }
 0x375   : > { %v4765_v50 = vld [vmem:[#allocation2 + $0xb0] sm:$0xff] }
 0x376   : > { %v1931_v32 = vld [vmem:[#allocation2 + $0xa8] sm:$0xff]  ;;  %v1936_v10 = vmul.f32 %v1934_v2, %v4765_v50  ;;  %v2014_v39 = vmul.f32 %v2012_v47, %v4765_v50  ;;  %v2073_v35 = vstv %s4773_s25  ;;  %v2093_v1 = vmul.f32 %v2091_v18, %v4765_v50 }
 0x377   : > { %v1935_v61 = vmul.f32 %v1934_v2, %v1931_v32  ;;  %v2013_v31 = vmul.f32 %v2012_v47, %v1931_v32 }
 0x3cc   : > { %v1914_v42 = vpop.permute.xlu1 %1913 }
 0x3cd   : > { %v1912_v59 = vpop.permute.xlu0 %1911  ;;  %v1918_v49 = vmul.f32 %v1916_v36, %v1914_v42  ;;  %v2092_v42 = vmul.f32 %v2091_v18, %v1931_v32 }
 0x3ce   : > { %v1917_v3 = vmul.f32 %v1916_v36, %v1912_v59 }
 0x3d0   : > { %v1924_v45 = vpop.permute.xlu1 %1923 }
 0x3d1   : > { %v1928_v19 = vmul.f32 %v1926_v63, %v1924_v45  ;;  %v2097_v45 = vld [vmem:[#allocation3 + $0x28] sm:$0xff] }
 0x3d2   : > { %v1922_v5 = vpop.permute.xlu0 %1921 }
 0x3d3   : > { %v1927_v25 = vmul.f32 %v1926_v63, %v1922_v5  ;;  %v1930_v26 = vadd.f32 %v1928_v19, %v1918_v49  ;;  %v2101_v19 = vstv %s4793_s10 }
 0x3d4   : > { %v1992_v9 = vpop.permute.xlu1 %1991 }
 0x3d5   : > { %v1929_v0 = vadd.f32 %v1927_v25, %v1917_v3  ;;  %v1938_v30 = vadd.f32 %v1936_v10, %v1930_v26  ;;  %v1996_v55 = vmul.f32 %v1994_v41, %v1992_v9  ;;  %v2096_v3 = vld [vmem:[#allocation3 + $0x20] sm:$0xff] }
 0x3d6   : > { %v1990_v38 = vpop.permute.xlu0 %1989 }
 0x3d7   : > { %v1937_v44 = vadd.f32 %v1935_v61, %v1929_v0  ;;  %v1942_v54 = vadd.f32 %v1940_v6, %v1938_v30  ;;  %v1995_v4 = vmul.f32 %v1994_v41, %v1990_v38 }
 0x3d8   : > { %v2002_v53 = vpop.permute.xlu1 %2001 }
 0x3d9   : > { %v1941_v34 = vadd.f32 %v1939_v8, %v1937_v44  ;;  %v2006_v46 = vmul.f32 %v2004_v52, %v2002_v53  ;;  %v4782_v28 = vadd.f32 %v1944_v22, %v1942_v54 }
 0x3da   : > { %v2000_v48 = vpop.permute.xlu0 %1999 }
 0x3db   : > { %v2005_v24 = vmul.f32 %v2004_v52, %v2000_v48  ;;  %v4784_v11 = vadd.f32 %v1944_v22, %v1941_v34  ;;  %v2008_v13 = vadd.f32 %v2006_v46, %v1996_v55  ;;  %v1950_v12 = vsel %vm544_vm1, %v4782_v28, 0.0 }
 0x3dc   : > { %1951 = vadd.xlane.f32.xlu1 %v1950_v12  ;;  %v2071_v43 = vpop.permute.xlu1 %2070  ;;  %v1961_v0 = vmul.f32 %v4782_v28, %v4782_v28 }
 0x3dd   : > { %v2007_v58 = vadd.f32 %v2005_v24, %v1995_v4  ;;  %v1947_v51 = vsel %vm544_vm1, %v4784_v11, 0.0  ;;  %v2016_v37 = vadd.f32 %v2014_v39, %v2008_v13  ;;  %v2075_v60 = vmul.f32 %v2073_v35, %v2071_v43 }
 0x3de   : > { %1948 = vadd.xlane.f32.xlu0 %v1947_v51  ;;  %v2069_v16 = vpop.permute.xlu0 %2068  ;;  %v1960_v9 = vmul.f32 %v4784_v11, %v4784_v11  ;;  %v1965_v30 = vsel %vm544_vm1, %v1961_v0, 0.0 }
 0x3df   : > { %v2015_v56 = vadd.f32 %v2013_v31, %v2007_v58  ;;  %v2020_v57 = vadd.f32 %v2018_v21, %v2016_v37  ;;  %v2074_v17 = vmul.f32 %v2073_v35, %v2069_v16 }
 0x3e0   : > { %v2081_v14 = vpop.permute.xlu1 %2080  ;;  %v1962_v38 = vsel %vm544_vm1, %v1960_v9, 0.0 }
 0x3e1   : > { %v2019_v62 = vadd.f32 %v2017_v33, %v2015_v56  ;;  %v2085_v15 = vmul.f32 %v2083_v7, %v2081_v14  ;;  %v4802_v63 = vadd.f32 %v2022_v40, %v2020_v57 }
 0x3e2   : > { %v2079_v27 = vpop.permute.xlu0 %2078 }
 0x3e3   : > { %v2084_v23 = vmul.f32 %v2083_v7, %v2079_v27  ;;  %v4797_v20 = vadd.f32 %v2022_v40, %v2019_v62  ;;  %v2087_v29 = vadd.f32 %v2085_v15, %v2075_v60  ;;  %v2028_v10 = vsel %vm544_vm1, %v4802_v63, 0.0 }
 0x3e4   : > { %v2039_v6 = vmul.f32 %v4802_v63, %v4802_v63 }
 0x3e5   : > { %v2086_v59 = vadd.f32 %v2084_v23, %v2074_v17  ;;  %v2025_v36 = vsel %vm544_vm1, %v4797_v20, 0.0  ;;  %v2095_v2 = vadd.f32 %v2093_v1, %v2087_v29  ;;  %v2038_v44 = vmul.f32 %v4797_v20, %v4797_v20 }
 0x3e6   : > { %2026 = vadd.xlane.f32.xlu0 %v2025_v36  ;;  %v2043_v41 = vsel %vm544_vm1, %v2039_v6, 0.0 }
 0x3e7   : > { %v2094_v49 = vadd.f32 %v2092_v42, %v2086_v59  ;;  %v2099_v5 = vadd.f32 %v2097_v45, %v2095_v2  ;;  %v2040_v52 = vsel %vm544_vm1, %v2038_v44, 0.0 }
 0x3e9   : > { %v2098_v25 = vadd.f32 %v2096_v3, %v2094_v49  ;;  %v4807_v50 = vadd.f32 %v2101_v19, %v2099_v5 }
 0x3ea   : > { %2029 = vadd.xlane.f32.xlu0 %v2028_v10 }
 0x3eb   : > { %v4809_v32 = vadd.f32 %v2101_v19, %v2098_v25  ;;  %v2107_v26 = vsel %vm544_vm1, %v4807_v50, 0.0  ;;  %v2118_v22 = vmul.f32 %v4807_v50, %v4807_v50 }
 0x3ed   : > { %v2104_v61 = vsel %vm544_vm1, %v4809_v32, 0.0  ;;  %v2117_v54 = vmul.f32 %v4809_v32, %v4809_v32  ;;  %v2122_v8 = vsel %vm544_vm1, %v2118_v22, 0.0 }
 0x3ee   : > { %2108 = vadd.xlane.f32.xlu0 %v2107_v26  ;;  %2105 = vadd.xlane.f32.xlu1 %v2104_v61 }
 0x3ef   : > { %v2119_v34 = vsel %vm544_vm1, %v2117_v54, 0.0 }
 0x3f2   : > { %1966 = vadd.xlane.f32.xlu0 %v1965_v30  ;;  %1963 = vadd.xlane.f32.xlu1 %v1962_v38 }
 0x3f6   : > { %2044 = vadd.xlane.f32.xlu0 %v2043_v41  ;;  %2041 = vadd.xlane.f32.xlu1 %v2040_v52 }
 0x3fa   : > { %2123 = vadd.xlane.f32.xlu0 %v2122_v8  ;;  %2120 = vadd.xlane.f32.xlu1 %v2119_v34 }
 0x469   : > { %v1952_v47 = vpop.xlane.xlu1 %1951 }
 0x46b   : > { %v1949_v53 = vpop.xlane.xlu0 %1948 }
 0x46c   : > { %v1953_v55 = vadd.f32 %v1952_v47, %v1949_v53 }
 0x46e   : > { %v1954_v46 = vrot.slane %v1953_v55, 4 }
 0x470   : > { %v1955_v4 = vadd.f32 %v1954_v46, %v1953_v55 }
 0x472   : > { %v1956_v13 = vrot.slane %v1955_v4, 2 }
 0x473   : > { %v2027_v48 = vpop.xlane.xlu0 %2026 }
 0x474   : > { %v1957_v37 = vadd.f32 %v1956_v13, %v1955_v4 }
 0x476   : > { %v1958_v40 = vrot.slane %v1957_v37, 1 }
 0x477   : > { %v2030_v24 = vpop.xlane.xlu0 %2029 }
 0x478   : > { %v2031_v39 = vadd.f32 %v2030_v24, %v2027_v48  ;;  %v1959_v17 = vadd.f32 %v1958_v40, %v1957_v37 }
 0x47a   : > { %v2032_v12 = vrot.slane %v2031_v39, 4  ;;  %v1975_v19 = vmul.f32 0.00390625, %v1959_v17 }
 0x47b   : > { %v2106_v31 = vpop.xlane.xlu1 %2105  ;;  %v2109_v58 = vpop.xlane.xlu0 %2108 }
 0x47c   : > { %v2033_v43 = vadd.f32 %v2032_v12, %v2031_v39  ;;  %v2110_v51 = vadd.f32 %v2109_v58, %v2106_v31  ;;  %v1977_v30 = vmul.f32 %v1975_v19, %v1975_v19  ;;  %v1979_v58 = vsub.f32 %v4784_v11, %v1975_v19 }
 0x47e   : > { %v2111_v16 = vrot.slane %v2110_v51, 4  ;;  %v2034_v56 = vrot.slane %v2033_v43, 2 }
 0x47f   : > { %v1964_v35 = vpop.xlane.xlu1 %1963  ;;  %v1967_v7 = vpop.xlane.xlu0 %1966 }
 0x480   : > { %v2112_v21 = vadd.f32 %v2111_v16, %v2110_v51  ;;  %v1968_v33 = vadd.f32 %v1967_v7, %v1964_v35  ;;  %v2035_v62 = vadd.f32 %v2034_v56, %v2033_v43  ;;  %v1980_v43 = vsub.f32 %v4782_v28, %v1975_v19 }
 0x482   : > { %v1969_v57 = vrot.slane %v1968_v33, 4  ;;  %v2113_v18 = vrot.slane %v2112_v21, 2  ;;  %v2036_v29 = vrot.slane %v2035_v62, 1 }
 0x483   : > { %v2042_v14 = vpop.xlane.xlu1 %2041  ;;  %v2045_v60 = vpop.xlane.xlu0 %2044 }
 0x484   : > { %v1970_v15 = vadd.f32 %v1969_v57, %v1968_v33  ;;  %v2046_v27 = vadd.f32 %v2045_v60, %v2042_v14  ;;  %v2114_v42 = vadd.f32 %v2113_v18, %v2112_v21  ;;  %v2037_v3 = vadd.f32 %v2036_v29, %v2035_v62 }
 0x486   : > { %v1971_v23 = vrot.slane %v1970_v15, 2  ;;  %v2047_v1 = vrot.slane %v2046_v27, 4  ;;  %v2115_v25 = vrot.slane %v2114_v42, 1  ;;  %v2053_v6 = vmul.f32 0.00390625, %v2037_v3 }
 0x487   : > { %v2121_v59 = vpop.xlane.xlu1 %2120  ;;  %v2124_v36 = vpop.xlane.xlu0 %2123 }
 0x488   : > { %v1972_v2 = vadd.f32 %v1971_v23, %v1970_v15  ;;  %v2048_v45 = vadd.f32 %v2047_v1, %v2046_v27  ;;  %v2125_v49 = vadd.f32 %v2124_v36, %v2121_v59  ;;  %v2116_v44 = vadd.f32 %v2115_v25, %v2114_v42 }
 0x489   : > { %v2055_v53 = vmul.f32 %v2053_v6, %v2053_v6  ;;  %v2057_v56 = vsub.f32 %v4797_v20, %v2053_v6  ;;  %v2058_v35 = vsub.f32 %v4802_v63, %v2053_v6 }
 0x48a   : > { %v1973_v5 = vrot.slane %v1972_v2, 1  ;;  %v2049_v10 = vrot.slane %v2048_v45, 2  ;;  %v2126_v26 = vrot.slane %v2125_v49, 4  ;;  %v2132_v47 = vmul.f32 0.00390625, %v2116_v44 }
 0x48c   : > { %v1974_v61 = vadd.f32 %v1973_v5, %v1972_v2  ;;  %v2050_v0 = vadd.f32 %v2049_v10, %v2048_v45  ;;  %v2127_v9 = vadd.f32 %v2126_v26, %v2125_v49  ;;  %v2134_v39 = vmul.f32 %v2132_v47, %v2132_v47 }
 0x48d   : > { %v2136_v28 = vsub.f32 %v4809_v32, %v2132_v47  ;;  %v2137_v33 = vsub.f32 %v4807_v50, %v2132_v47 }
 0x48e   : > { %v1976_v38 = vmul.f32 0.00390625, %v1974_v61  ;;  %v2051_v41 = vrot.slane %v2050_v0, 1  ;;  %v2128_v52 = vrot.slane %v2127_v9, 2 }
 0x490   : > { %v1978_v22 = vsub.f32 %v1976_v38, %v1977_v30  ;;  %v2052_v54 = vadd.f32 %v2051_v41, %v2050_v0  ;;  %v2129_v8 = vadd.f32 %v2128_v52, %v2127_v9 }
 0x492   : > { %v1981_v34 = vadd.f32 1e-05, %v1978_v22  ;;  %v2054_v55 = vmul.f32 0.00390625, %v2052_v54  ;;  %v2130_v46 = vrot.slane %v2129_v8, 1 }
 0x494   : > { %2678 = vrsqrt.f32 %v1981_v34  ;;  %v2056_v48 = vsub.f32 %v2054_v55, %v2055_v53  ;;  %v2131_v4 = vadd.f32 %v2130_v46, %v2129_v8 }
 0x496   : > { %v2059_v24 = vadd.f32 1e-05, %v2056_v48  ;;  %v2133_v13 = vmul.f32 0.00390625, %v2131_v4 }
 0x498   : > { %2680 = vrsqrt.f32 %v2059_v24  ;;  %v2135_v12 = vsub.f32 %v2133_v13, %v2134_v39 }
 0x49a   : > { %v2138_v31 = vadd.f32 1e-05, %v2135_v12 }
 0x49c   : > { %2682 = vrsqrt.f32 %v2138_v31 }
 0x49e   : > { %v2679_v51 = vpop.eup %2678 }
 0x49f   : > { %v1983_v37 = vmul.f32 %v2679_v51, %v1979_v58  ;;  %v1984_v16 = vmul.f32 %v2679_v51, %v1980_v43 }
 0x4a1   : > { %1985 = vst.msk [vmem:[%s506_s13] sm:$0xff] %vm544_vm1, %v1983_v37  ;;  %1986 = vst.msk [vmem:[%s506_s13 + $0x8] sm:$0xff] %vm544_vm1, %v1984_v16 }
 0x4a2   : > { %v2681_v7 = vpop.eup %2680 }
 0x4a3   : > { %v2061_v21 = vmul.f32 %v2681_v7, %v2057_v56  ;;  %v2062_v11 = vmul.f32 %v2681_v7, %v2058_v35 }
 0x4a5   : > { %2490 = vst.msk [vmem:[%s506_s13 + $0x10] sm:$0xff] %vm544_vm1, %v2061_v21  ;;  %2491 = vst.msk [vmem:[%s506_s13 + $0x18] sm:$0xff] %vm544_vm1, %v2062_v11 }
 0x4a6   : > { %v2683_v40 = vpop.eup %2682 }
 0x4a7   : > { %v2140_v20 = vmul.f32 %v2683_v40, %v2136_v28  ;;  %v2141_v63 = vmul.f32 %v2683_v40, %v2137_v33 }
 0x4a9   : > { %2496 = vst.msk [vmem:[%s506_s13 + $0x20] sm:$0xff] %vm544_vm1, %v2140_v20  ;;  %2497 = vst.msk [vmem:[%s506_s13 + $0x28] sm:$0xff] %vm544_vm1, %v2141_v63 }
 0x4aa   : > { %2849 = shalt.err (!%p2846_p3)
}
 0x4ab   : > { %s2850_s7 = scalar_lea.hbm %s4850_s26, 768  ;;  %s2854_s1 = scalar_lea.hbm %s5254_s27, 1536 }
 0x4ac   : > { %p2851_p4 = scmp.ne.s32.totalorder %s4850_s26, %s2850_s7  ;;  %p2855_p8 = scmp.lt.u32.totalorder %s4850_s26, %s5254_s27 }
 0x4ad   : > { %p2856_p5 = scmp.lt.u32.totalorder %s2854_s1, %s2850_s7  ;;  %p2858_p10 = scmp.lt.u32.totalorder %s2850_s7, %s4850_s26 }
 0x4ae   : > { %p2852_p9 = pnand %p2851_p4, %p5255_p11 }
 0x4af   : > { %p2857_p6 = por %p2856_p5, %p2855_p8 }
 0x4b0   : > { %p2853_p7 = pneg %p2852_p9 }
 0x4b1   : > { %p2859_p13 = por %p2858_p10, %p2857_p6 }
 0x4b3   : > { %p2860_p0 = pnand %p2859_p13, %p2853_p7 }
 0x4b5   : > { %2863 = shalt.err (!%p2860_p0)
}
 0x4b6   : > { %s2939_s14 = smov 128   ;;  %s2940_s8 = smov 8  }
 0x4b7   : > { %2544 = dma.vmem_to_hbm [thread:$0]  (%p5255_p11), %s4852_s20, 768, %s4850_s26, %s4858_s2, %s2939_s14, %s2939_s14, %s2940_s8  }
 0x4b8 PF: > { %s5256_s30 = sld [smem:[#allocation32_spill]]  ;;  %s5257_s25 = sld [smem:[#allocation29_spill]] }
 0x4b9   : > { %s5258_s15 = sld [smem:[#allocation37_spill]] }
 0x4be   : > { %p2601_p1 = scmp.ge.s32.totalorder %s5256_s30, 2  ;;  %s2174_s17 = sand.u32 1, %s5257_s25  }
 0x4bf   : > { %p5259_p2 = scmp.ne.s32.totalorder %s5258_s15, 0  ;;  %s2175_s9 = scalar_lea.sflag [#allocation5], %s2174_s17 }
 0x4c1   : > { %p2578_p12 = pnand %p2601_p1, %p5259_p2 }
 0x4c3   : > { %2905 = dma.done.wait (!%p2578_p12), %s2175_s9, 768  }
 0x4c4   : > { %2907 = vsyncadd (!%p2578_p12), %s2175_s9, 4294966528  ;;  %s5260_s20 = sld [smem:[#allocation34_spill]]  ;;  %s5261_s17 = sld [smem:[#allocation30_spill]] }
 0x4c5   : > { %s5262_s18 = sld [smem:[#allocation31_spill]]  ;;  %s5263_s19 = sld [smem:[#allocation35_spill]] }
 0x4ca   : > { %p27_p3 = scmp.ge.s32.totalorder %s5260_s20, 4  }
 0x4cc   :  { %29 = sbr.rel (!%p27_p3) target bundleno = 22 (0x16), region = 151 }
 0x4d3   :  { %2180 = vsyncpa [#allocation5], 1 }
 0x4d4   :  { %2182 = vsyncpa [#allocation5 + $0x1], 1 }
 0x4d5   :  { %2183 = vsyncpa [#allocation6], 1 }
 0x4d6   :  { %2185 = vsyncpa [#allocation6 + $0x1], 1 }
 0x4d7   :  { %2186 = vsyncpa [#allocation8], 1 }
 0x4d8   :  { %2187 = vsyncpa [#allocation11], 1 }
 0x4d9   :  { %2188 = vsyncpa [#allocation14], 1 }
 0x4da   :  { %2189 = vsyncpa [#allocation17], 1 }
 0x4db   :  { %2190 = vsyncpa [#allocation20], 1 }

</bundles_post_ra>
